<compile_context>
chip_gen: v7x
topology: tpu7x:2x2x1
jax: 0.10.0
libtpu: 0.0.40
codegen_flags: <defaults>
</compile_context>

<pallas_src>
import math

import numpy as np

import jax
import jax.numpy as jnp
from jax.experimental import pallas as pl
from jax.experimental.pallas import tpu as pltpu


# ---------------------------------------------------------------------------
# In-kernel helpers (traced inside Pallas kernel bodies)
# ---------------------------------------------------------------------------

def _add_layernorm(a, b):
    """LayerNorm(a + b), elementwise_affine=False, eps=1e-5 (PyTorch default)."""
    s = a + b
    mu = jnp.mean(s, axis=-1, keepdims=True)
    d = s - mu
    var = jnp.mean(d * d, axis=-1, keepdims=True)
    return d * jax.lax.rsqrt(var + 1e-5)


def _softmax_lastdim(s):
    """Max-subtracted softmax; denominator via approx reciprocal (EUP slot)."""
    m = jnp.max(s, axis=-1, keepdims=True)
    e = jnp.exp(s - m)
    return e * pl.reciprocal(jnp.sum(e, axis=-1, keepdims=True), approx=True)


# ---------------------------------------------------------------------------
# Pallas kernels
# ---------------------------------------------------------------------------

def _matmul_kernel(x_ref, w_ref, o_ref):
    o_ref[...] = jnp.dot(x_ref[...], w_ref[...], preferred_element_type=jnp.float32)


def linear(x2d, w):
    """x2d: [M, K], w: [K, N]  ->  [M, N]   (bias-free Linear)"""
    M, _ = x2d.shape
    _, N = w.shape
    return pl.pallas_call(
        _matmul_kernel,
        out_shape=jax.ShapeDtypeStruct((M, N), jnp.float32),
    )(x2d, w)


def _proj_softmax_kernel(x_ref, w_ref, o_ref):
    logits = jnp.dot(x_ref[...], w_ref[...], preferred_element_type=jnp.float32)
    m = jnp.max(logits, axis=-1, keepdims=True)
    e = jnp.exp(logits - m)
    # exact divide so output rows sum to 1 tightly (final model output)
    o_ref[...] = e / jnp.sum(e, axis=-1, keepdims=True)


def proj_softmax(x2d, w):
    """Final proj_out followed by softmax over the last dim, fused."""
    M, _ = x2d.shape
    _, N = w.shape
    return pl.pallas_call(
        _proj_softmax_kernel,
        out_shape=jax.ShapeDtypeStruct((M, N), jnp.float32),
    )(x2d, w)


def _enc1_layer_kernel(x_ref, wq_ref, wk_ref, wv_ref, wqr_ref, wkr_ref, wo_ref,
                       cos_ref, sin_ref, w1_ref, b1_ref, w2_ref, b2_ref, o_ref):
    """Fused self-attention encoder layer (RoPE) for one batch element:
       z = LN(y + FFN(y)),  y = LN(x + SelfAttn_RoPE(x))"""
    x = x_ref[0]                      # [L, D]
    cos = cos_ref[...]                # [L, hd] (same table for every head)
    sin = sin_ref[...]
    num_heads = wq_ref.shape[0]
    head_dim = wq_ref.shape[2]
    scale = 1.0 / math.sqrt(head_dim)

    attn = jnp.zeros(x.shape, jnp.float32)
    for h in range(num_heads):        # static unroll; all heads in one dispatch
        q = jnp.dot(x, wq_ref[h], preferred_element_type=jnp.float32)
        q = q * cos + jnp.dot(x, wqr_ref[h], preferred_element_type=jnp.float32) * sin
        k = jnp.dot(x, wk_ref[h], preferred_element_type=jnp.float32)
        k = k * cos + jnp.dot(x, wkr_ref[h], preferred_element_type=jnp.float32) * sin
        v = jnp.dot(x, wv_ref[h], preferred_element_type=jnp.float32)

        s = jnp.einsum('qd,kd->qk', q, k, preferred_element_type=jnp.float32) * scale
        p = _softmax_lastdim(s)
        o_h = jnp.dot(p, v, preferred_element_type=jnp.float32)
        attn = attn + jnp.dot(o_h, wo_ref[h], preferred_element_type=jnp.float32)

    y = _add_layernorm(x, attn)
    hid = jnp.maximum(
        jnp.dot(y, w1_ref[...], preferred_element_type=jnp.float32) + b1_ref[...], 0.0)
    f = jnp.dot(hid, w2_ref[...], preferred_element_type=jnp.float32) + b2_ref[...]
    o_ref[0] = _add_layernorm(y, f)


def encoder1_layer(x, lp, cos_h, sin_h):
    B, L, D = x.shape
    H, _, hd = lp['wq'].shape
    F = lp['w1'].shape[1]
    return pl.pallas_call(
        _enc1_layer_kernel,
        out_shape=jax.ShapeDtypeStruct((B, L, D), jnp.float32),
        grid=(B,),
        in_specs=[
            pl.BlockSpec((1, L, D), lambda b: (b, 0, 0)),      # x (per batch)
            pl.BlockSpec((H, D, hd), lambda b: (0, 0, 0)),     # Wq  per-head cols
            pl.BlockSpec((H, D, hd), lambda b: (0, 0, 0)),     # Wk
            pl.BlockSpec((H, D, hd), lambda b: (0, 0, 0)),     # Wv
            pl.BlockSpec((H, D, hd), lambda b: (0, 0, 0)),     # Wq @ R (RoPE folded)
            pl.BlockSpec((H, D, hd), lambda b: (0, 0, 0)),     # Wk @ R
            pl.BlockSpec((H, hd, D), lambda b: (0, 0, 0)),     # Wo  per-head rows
            pl.BlockSpec((L, hd), lambda b: (0, 0)),           # cos table
            pl.BlockSpec((L, hd), lambda b: (0, 0)),           # sin table
            pl.BlockSpec((D, F), lambda b: (0, 0)),            # FFN w1
            pl.BlockSpec((1, F), lambda b: (0, 0)),            # FFN b1
            pl.BlockSpec((F, D), lambda b: (0, 0)),            # FFN w2
            pl.BlockSpec((1, D), lambda b: (0, 0)),            # FFN b2
        ],
        out_specs=pl.BlockSpec((1, L, D), lambda b: (b, 0, 0)),
        compiler_params=pltpu.CompilerParams(dimension_semantics=("parallel",)),
    )(x, lp['wq'], lp['wk'], lp['wv'], lp['wqr'], lp['wkr'], lp['wo'],
      cos_h, sin_h, lp['w1'], lp['b1'], lp['w2'], lp['b2'])


def _enc2_layer_kernel(x_ref, mem_ref, wq_ref, wk_ref, wv_ref, wo_ref,
                       w1_ref, b1_ref, w2_ref, b2_ref, o_ref):
    """Fused cross-attention encoder layer for one batch element:
       z = LN(y + FFN(y)),  y = LN(x + CrossAttn(x, mem))"""
    x = x_ref[0]                      # [LQ, D]
    mem = mem_ref[0]                  # [LM, D]
    num_heads = wq_ref.shape[0]
    head_dim = wq_ref.shape[2]
    scale = 1.0 / math.sqrt(head_dim)

    attn = jnp.zeros(x.shape, jnp.float32)
    for h in range(num_heads):
        q = jnp.dot(x, wq_ref[h], preferred_element_type=jnp.float32)
        k = jnp.dot(mem, wk_ref[h], preferred_element_type=jnp.float32)
        v = jnp.dot(mem, wv_ref[h], preferred_element_type=jnp.float32)

        s = jnp.einsum('qd,kd->qk', q, k, preferred_element_type=jnp.float32) * scale
        p = _softmax_lastdim(s)
        o_h = jnp.dot(p, v, preferred_element_type=jnp.float32)
        attn = attn + jnp.dot(o_h, wo_ref[h], preferred_element_type=jnp.float32)

    y = _add_layernorm(x, attn)
    hid = jnp.maximum(
        jnp.dot(y, w1_ref[...], preferred_element_type=jnp.float32) + b1_ref[...], 0.0)
    f = jnp.dot(hid, w2_ref[...], preferred_element_type=jnp.float32) + b2_ref[...]
    o_ref[0] = _add_layernorm(y, f)


def encoder2_layer(x, mem, lp):
    B, LQ, D = x.shape
    LM = mem.shape[1]
    H, _, hd = lp['wq'].shape
    F = lp['w1'].shape[1]
    return pl.pallas_call(
        _enc2_layer_kernel,
        out_shape=jax.ShapeDtypeStruct((B, LQ, D), jnp.float32),
        grid=(B,),
        in_specs=[
            pl.BlockSpec((1, LQ, D), lambda b: (b, 0, 0)),     # x (queries)
            pl.BlockSpec((1, LM, D), lambda b: (b, 0, 0)),     # memory (K/V source)
            pl.BlockSpec((H, D, hd), lambda b: (0, 0, 0)),     # Wq
            pl.BlockSpec((H, D, hd), lambda b: (0, 0, 0)),     # Wk
            pl.BlockSpec((H, D, hd), lambda b: (0, 0, 0)),     # Wv
            pl.BlockSpec((H, hd, D), lambda b: (0, 0, 0)),     # Wo
            pl.BlockSpec((D, F), lambda b: (0, 0)),            # FFN w1
            pl.BlockSpec((1, F), lambda b: (0, 0)),            # FFN b1
            pl.BlockSpec((F, D), lambda b: (0, 0)),            # FFN w2
            pl.BlockSpec((1, D), lambda b: (0, 0)),            # FFN b2
        ],
        out_specs=pl.BlockSpec((1, LQ, D), lambda b: (b, 0, 0)),
        compiler_params=pltpu.CompilerParams(dimension_semantics=("parallel",)),
    )(x, mem, lp['wq'], lp['wk'], lp['wv'], lp['wo'],
      lp['w1'], lp['b1'], lp['w2'], lp['b2'])


# ---------------------------------------------------------------------------
# One-time parameter preparation (plain JAX / numpy, outside all kernels)
# ---------------------------------------------------------------------------

def make_rope_tables(seq_len, head_dim, base=10000.0):
    """Replicates the PyTorch RotaryPositionalEmbedding math exactly, including
    its permute(1,0,2).reshape(1, L, 1, half) step applied to sin/cos."""
    half = head_dim // 2
    pos = jnp.arange(seq_len, dtype=jnp.float32)[:, None]
    freq_seq = jnp.arange(half, dtype=jnp.float32)[None, :]
    freq = base ** (-2.0 * freq_seq / head_dim)
    angle = pos * freq                                        # [L, half]
    sin = jnp.sin(angle)[:, :, None]                          # [L, half, 1]
    cos = jnp.cos(angle)[:, :, None]
    # exact same op sequence as the torch module (permute then reshape):
    sin_s = jnp.transpose(sin, (1, 0, 2)).reshape(1, seq_len, 1, half)[0, :, 0, :]
    cos_s = jnp.transpose(cos, (1, 0, 2)).reshape(1, seq_len, 1, half)[0, :, 0, :]
    # pair interleave: table[:, 2i] = table[:, 2i+1] = s[:, i]   -> [L, head_dim]
    cos_h = jnp.repeat(cos_s, 2, axis=-1)
    sin_h = jnp.repeat(sin_s, 2, axis=-1)
    return cos_h, sin_h


def _pair_rotation_matrix(head_dim):
    """R such that (q @ R)[2i] = -q[2i+1], (q @ R)[2i+1] = q[2i]."""
    R = np.zeros((head_dim, head_dim), dtype=np.float32)
    for j in range(0, head_dim, 2):
        R[j + 1, j] = -1.0
        R[j, j + 1] = 1.0
    return jnp.asarray(R)


def _split_cols_per_head(w, num_heads):
    # [D_in, D_out] -> [H, D_in, hd]  (head h uses output columns h*hd:(h+1)*hd)
    d_in, d_out = w.shape
    hd = d_out // num_heads
    return jnp.transpose(w.reshape(d_in, num_heads, hd), (1, 0, 2))


def _split_rows_per_head(w, num_heads):
    # [D_in, D_out] -> [H, hd, D_out]  (head h uses input rows h*hd:(h+1)*hd)
    d_in, d_out = w.shape
    hd = d_in // num_heads
    return w.reshape(num_heads, hd, d_out)


def prepare_params(params, num_heads, seq_len):
    d_model = params['w_in1'].shape[1]
    head_dim = d_model // num_heads
    R = _pair_rotation_matrix(head_dim)
    cos_h, sin_h = make_rope_tables(seq_len, head_dim)

    def prep_common(p):
        return dict(
            wq=_split_cols_per_head(p['wq'], num_heads),
            wk=_split_cols_per_head(p['wk'], num_heads),
            wv=_split_cols_per_head(p['wv'], num_heads),
            wo=_split_rows_per_head(p['wo'], num_heads),
            w1=p['w1'], b1=p['b1'].reshape(1, -1),
            w2=p['w2'], b2=p['b2'].reshape(1, -1),
        )

    enc1 = []
    for p in params['enc1']:
        lp = prep_common(p)
        # fold RoPE pair rotation into extra projection weights (done once):
        lp['wqr'] = jnp.einsum('hdk,km->hdm', lp['wq'], R)
        lp['wkr'] = jnp.einsum('hdk,km->hdm', lp['wk'], R)
        enc1.append(lp)

    enc2 = [prep_common(p) for p in params['enc2']]

    return dict(
        libcell_emb=params['libcell_emb'],
        libcell_type_emb=params['libcell_type_emb'],
        w_in1=params['w_in1'], w_in2=params['w_in2'], w_out=params['w_out'],
        cos=cos_h, sin=sin_h, enc1=enc1, enc2=enc2,
    )


# ---------------------------------------------------------------------------
# Forward pass
# ---------------------------------------------------------------------------

def two_encoder_transformer_forward(pp, num_data, libcell_ids, type_ids):
    B, L, _ = num_data.shape
    L2 = type_ids.shape[1]
    D_model = pp['w_in1'].shape[1]

    # masked_fill(ids == -1, 0) + frozen embedding lookup
    # TODO(synk): embedding gather is a tiny data-dependent gather; kept in plain JAX.
    ids1 = jnp.where(libcell_ids == -1, 0, libcell_ids)
    emb1 = jnp.take(pp['libcell_emb'], ids1, axis=0)
    data1 = jnp.concatenate([num_data, emb1], axis=-1)          # [B, L, D_in+D_emb]

    ids2 = jnp.where(type_ids == -1, 0, type_ids)
    data2 = jnp.take(pp['libcell_type_emb'], ids2, axis=0)      # [B, L2, D_emb]

    x1 = linear(data1.reshape(B * L, data1.shape[-1]), pp['w_in1']).reshape(B, L, D_model)
    for lp in pp['enc1']:
        x1 = encoder1_layer(x1, lp, pp['cos'], pp['sin'])

    x2 = linear(data2.reshape(B * L2, data2.shape[-1]), pp['w_in2']).reshape(B, L2, D_model)
    for lp in pp['enc2']:
        x2 = encoder2_layer(x2, x1, lp)

    D_out = pp['w_out'].shape[1]
    out = proj_softmax(x2.reshape(B * L2, D_model), pp['w_out']).reshape(B, L2, D_out)
    return out


# ---------------------------------------------------------------------------
# Deterministic parameters + example run
# ---------------------------------------------------------------------------

if __name__ == "__main__":
    B, L, L2 = 2, 8, 8
    D_in, D_emb, D_model, FF_hidden, D_out = 4, 8, 32, 64, 4
    num_heads = 4
    num_layers1, num_layers2 = 2, 2
    V1, V2 = 16, 12

    key = jax.random.PRNGKey(0)
    all_keys = iter(jax.random.split(key, 64))

    def nrm(shape, scale=0.1):
        return scale * jax.random.normal(next(all_keys), shape, dtype=jnp.float32)

    def make_layer_params():
        return dict(
            wq=nrm((D_model, D_model)), wk=nrm((D_model, D_model)),
            wv=nrm((D_model, D_model)), wo=nrm((D_model, D_model)),
            w1=nrm((D_model, FF_hidden)), b1=nrm((FF_hidden,)),
            w2=nrm((FF_hidden, D_model)), b2=nrm((D_model,)),
        )

    params = dict(
        libcell_emb=nrm((V1, D_emb), 1.0),
        libcell_type_emb=nrm((V2, D_emb), 1.0),
        w_in1=nrm((D_in + D_emb, D_model)),
        w_in2=nrm((D_emb, D_model)),
        w_out=nrm((D_model, D_out)),
        enc1=[make_layer_params() for _ in range(num_layers1)],
        enc2=[make_layer_params() for _ in range(num_layers2)],
    )

    encoder_1_numeric_data = jax.random.normal(next(all_keys), (B, L, D_in), dtype=jnp.float32)
    encoder_1_libcell_ids = jax.random.randint(next(all_keys), (B, L), -1, V1)        # includes -1 padding
    encoder_2_libcell_type_ids = jax.random.randint(next(all_keys), (B, L2), -1, V2)  # includes -1 padding

    prepped = prepare_params(params, num_heads, L)
    fwd = jax.jit(two_encoder_transformer_forward)

    out = fwd(prepped, encoder_1_numeric_data, encoder_1_libcell_ids,
              encoder_2_libcell_type_ids)
    out = jax.block_until_ready(out)

    assert out.shape == (B, L2, D_out)
    assert bool(jnp.all(jnp.isfinite(out)))
    # rows of the final softmax must sum to 1
    assert bool(jnp.allclose(jnp.sum(out, axis=-1), 1.0, atol=1e-5))
    print("KERNEL_OK")
</pallas_src>

<mosaic_0001>
module attributes {stable_mosaic.version = 11 : i64} {
  func.func @_matmul_kernel(%arg0: memref<16x12xf32, #tpu.memory_space<vmem>>, %arg1: memref<12x32xf32, #tpu.memory_space<vmem>>, %arg2: memref<16x32xf32, #tpu.memory_space<vmem>>) attributes {dimension_semantics = [], scalar_prefetch = 0 : i64, scratch_operands = 0 : i64, tpu.core_type = #tpu.core_type<tc>} {
    %c0 = arith.constant 0 : index
    %c0_0 = arith.constant 0 : index
    %0 = vector.load %arg0[%c0, %c0_0] : memref<16x12xf32, #tpu.memory_space<vmem>>, vector<16x12xf32>
    %c0_1 = arith.constant 0 : index
    %c0_2 = arith.constant 0 : index
    %1 = vector.load %arg1[%c0_1, %c0_2] : memref<12x32xf32, #tpu.memory_space<vmem>>, vector<12x32xf32>
    %cst = arith.constant dense<0.000000e+00> : vector<16x32xf32>
    %2 = tpu.matmul %0, %1, %cst {dimension_numbers = #tpu.dot_dimension_numbers<[1], [0], [0], [1], [0, 0, 1, 1], [], []>} : vector<16x12xf32>, vector<12x32xf32>, vector<16x32xf32> -> vector<16x32xf32>
    %c0_3 = arith.constant 0 : index
    %c0_4 = arith.constant 0 : index
    %3 = vector.load %arg2[%c0_3, %c0_4] : memref<16x32xf32, #tpu.memory_space<vmem>>, vector<16x32xf32>
    tpu.vector_store %arg2[%c0_3, %c0_4], %2 {strides = array<i32>} : memref<16x32xf32, #tpu.memory_space<vmem>>, vector<16x32xf32>,
    return
  }
}

module attributes {stable_mosaic.version = 11 : i64} {
  func.func @_enc1_layer_kernel(%arg0: i32, %arg1: memref<1x8x32xf32, #tpu.memory_space<vmem>>, %arg2: memref<4x32x8xf32, #tpu.memory_space<vmem>>, %arg3: memref<4x32x8xf32, #tpu.memory_space<vmem>>, %arg4: memref<4x32x8xf32, #tpu.memory_space<vmem>>, %arg5: memref<4x32x8xf32, #tpu.memory_space<vmem>>, %arg6: memref<4x32x8xf32, #tpu.memory_space<vmem>>, %arg7: memref<4x8x32xf32, #tpu.memory_space<vmem>>, %arg8: memref<8x8xf32, #tpu.memory_space<vmem>>, %arg9: memref<8x8xf32, #tpu.memory_space<vmem>>, %arg10: memref<32x64xf32, #tpu.memory_space<vmem>>, %arg11: memref<1x64xf32, #tpu.memory_space<vmem>>, %arg12: memref<64x32xf32, #tpu.memory_space<vmem>>, %arg13: memref<1x32xf32, #tpu.memory_space<vmem>>, %arg14: memref<1x8x32xf32, #tpu.memory_space<vmem>>) attributes {dimension_semantics = [#tpu.dimension_semantics<parallel>], iteration_bounds = array<i64: 2>, scalar_prefetch = 0 : i64, scratch_operands = 0 : i64, tpu.core_type = #tpu.core_type<tc>, window_params = [{transform_indices = @transform_0, window_bounds = array<i64: 1, 8, 32>}, {pipeline_mode = #tpu.pipeline_mode<synchronous>, transform_indices = @transform_1, window_bounds = array<i64: 4, 32, 8>}, {pipeline_mode = #tpu.pipeline_mode<synchronous>, transform_indices = @transform_2, window_bounds = array<i64: 4, 32, 8>}, {pipeline_mode = #tpu.pipeline_mode<synchronous>, transform_indices = @transform_3, window_bounds = array<i64: 4, 32, 8>}, {pipeline_mode = #tpu.pipeline_mode<synchronous>, transform_indices = @transform_4, window_bounds = array<i64: 4, 32, 8>}, {pipeline_mode = #tpu.pipeline_mode<synchronous>, transform_indices = @transform_5, window_bounds = array<i64: 4, 32, 8>}, {pipeline_mode = #tpu.pipeline_mode<synchronous>, transform_indices = @transform_6, window_bounds = array<i64: 4, 8, 32>}, {pipeline_mode = #tpu.pipeline_mode<synchronous>, transform_indices = @transform_7, window_bounds = array<i64: 8, 8>}, {pipeline_mode = #tpu.pipeline_mode<synchronous>, transform_indices = @transform_8, window_bounds = array<i64: 8, 8>}, {pipeline_mode = #tpu.pipeline_mode<synchronous>, transform_indices = @transform_9, window_bounds = array<i64: 32, 64>}, {pipeline_mode = #tpu.pipeline_mode<synchronous>, transform_indices = @transform_10, window_bounds = array<i64: 1, 64>}, {pipeline_mode = #tpu.pipeline_mode<synchronous>, transform_indices = @transform_11, window_bounds = array<i64: 64, 32>}, {pipeline_mode = #tpu.pipeline_mode<synchronous>, transform_indices = @transform_12, window_bounds = array<i64: 1, 32>}, {transform_indices = @transform_13, window_bounds = array<i64: 1, 8, 32>}]} {
    %c0 = arith.constant 0 : index
    %c0_0 = arith.constant 0 : index
    %c0_1 = arith.constant 0 : index
    %0 = vector.load %arg1[%c0, %c0_0, %c0_1] : memref<1x8x32xf32, #tpu.memory_space<vmem>>, vector<1x8x32xf32>
    %1 = vector.shape_cast %0 : vector<1x8x32xf32> to vector<8x32xf32>
    %c0_2 = arith.constant 0 : index
    %c0_3 = arith.constant 0 : index
    %2 = vector.load %arg8[%c0_2, %c0_3] : memref<8x8xf32, #tpu.memory_space<vmem>>, vector<8x8xf32>
    %c0_4 = arith.constant 0 : index
    %c0_5 = arith.constant 0 : index
    %3 = vector.load %arg9[%c0_4, %c0_5] : memref<8x8xf32, #tpu.memory_space<vmem>>, vector<8x8xf32>
    %cst = arith.constant 0.000000e+00 : f32
    %4 = vector.broadcast %cst : f32 to vector<8x32xf32>
    %c0_6 = arith.constant 0 : index
    %c0_7 = arith.constant 0 : index
    %c0_8 = arith.constant 0 : index
    %5 = vector.load %arg2[%c0_6, %c0_7, %c0_8] : memref<4x32x8xf32, #tpu.memory_space<vmem>>, vector<1x32x8xf32>
    %6 = vector.shape_cast %5 : vector<1x32x8xf32> to vector<32x8xf32>
    %cst_9 = arith.constant dense<0.000000e+00> : vector<8x8xf32>
    %7 = tpu.matmul %1, %6, %cst_9 {dimension_numbers = #tpu.dot_dimension_numbers<[1], [0], [0], [1], [0, 0, 1, 1], [], []>} : vector<8x32xf32>, vector<32x8xf32>, vector<8x8xf32> -> vector<8x8xf32>
    %8 = arith.mulf %7, %2 : vector<8x8xf32>
    %c0_10 = arith.constant 0 : index
    %c0_11 = arith.constant 0 : index
    %c0_12 = arith.constant 0 : index
    %9 = vector.load %arg5[%c0_10, %c0_11, %c0_12] : memref<4x32x8xf32, #tpu.memory_space<vmem>>, vector<1x32x8xf32>
    %10 = vector.shape_cast %9 : vector<1x32x8xf32> to vector<32x8xf32>
    %cst_13 = arith.constant dense<0.000000e+00> : vector<8x8xf32>
    %11 = tpu.matmul %1, %10, %cst_13 {dimension_numbers = #tpu.dot_dimension_numbers<[1], [0], [0], [1], [0, 0, 1, 1], [], []>} : vector<8x32xf32>, vector<32x8xf32>, vector<8x8xf32> -> vector<8x8xf32>
    %12 = arith.mulf %11, %3 : vector<8x8xf32>
    %13 = arith.addf %8, %12 : vector<8x8xf32>
    %c0_14 = arith.constant 0 : index
    %c0_15 = arith.constant 0 : index
    %c0_16 = arith.constant 0 : index
    %14 = vector.load %arg3[%c0_14, %c0_15, %c0_16] : memref<4x32x8xf32, #tpu.memory_space<vmem>>, vector<1x32x8xf32>
    %15 = vector.shape_cast %14 : vector<1x32x8xf32> to vector<32x8xf32>
    %cst_17 = arith.constant dense<0.000000e+00> : vector<8x8xf32>
    %16 = tpu.matmul %1, %15, %cst_17 {dimension_numbers = #tpu.dot_dimension_numbers<[1], [0], [0], [1], [0, 0, 1, 1], [], []>} : vector<8x32xf32>, vector<32x8xf32>, vector<8x8xf32> -> vector<8x8xf32>
    %17 = arith.mulf %16, %2 : vector<8x8xf32>
    %c0_18 = arith.constant 0 : index
    %c0_19 = arith.constant 0 : index
    %c0_20 = arith.constant 0 : index
    %18 = vector.load %arg6[%c0_18, %c0_19, %c0_20] : memref<4x32x8xf32, #tpu.memory_space<vmem>>, vector<1x32x8xf32>
    %19 = vector.shape_cast %18 : vector<1x32x8xf32> to vector<32x8xf32>
    %cst_21 = arith.constant dense<0.000000e+00> : vector<8x8xf32>
    %20 = tpu.matmul %1, %19, %cst_21 {dimension_numbers = #tpu.dot_dimension_numbers<[1], [0], [0], [1], [0, 0, 1, 1], [], []>} : vector<8x32xf32>, vector<32x8xf32>, vector<8x8xf32> -> vector<8x8xf32>
    %21 = arith.mulf %20, %3 : vector<8x8xf32>
    %22 = arith.addf %17, %21 : vector<8x8xf32>
    %c0_22 = arith.constant 0 : index
    %c0_23 = arith.constant 0 : index
    %c0_24 = arith.constant 0 : index
    %23 = vector.load %arg4[%c0_22, %c0_23, %c0_24] : memref<4x32x8xf32, #tpu.memory_space<vmem>>, vector<1x32x8xf32>
    %24 = vector.shape_cast %23 : vector<1x32x8xf32> to vector<32x8xf32>
    %cst_25 = arith.constant dense<0.000000e+00> : vector<8x8xf32>
    %25 = tpu.matmul %1, %24, %cst_25 {dimension_numbers = #tpu.dot_dimension_numbers<[1], [0], [0], [1], [0, 0, 1, 1], [], []>} : vector<8x32xf32>, vector<32x8xf32>, vector<8x8xf32> -> vector<8x8xf32>
    "tpu.trace_start"() <{level = 10 : i32, message = "qd,kd->qk"}> : () -> ()
    %cst_26 = arith.constant dense<0.000000e+00> : vector<8x8xf32>
    %26 = tpu.matmul %13, %22, %cst_26 {dimension_numbers = #tpu.dot_dimension_numbers<[1], [1], [0], [0], [0, 0, 1, 0], [], []>} : vector<8x8xf32>, vector<8x8xf32>, vector<8x8xf32> -> vector<8x8xf32>
    "tpu.trace_stop"() : () -> ()
    %cst_27 = arith.constant 0.353553385 : f32
    %27 = vector.broadcast %cst_27 : f32 to vector<8x8xf32>
    %28 = arith.mulf %26, %27 : vector<8x8xf32>
    %cst_28 = arith.constant dense<0xFF800000> : vector<8xf32>
    %29 = vector.multi_reduction <maximumf>, %28, %cst_28 [1] : vector<8x8xf32> to vector<8xf32>
    %30 = vector.shape_cast %29 : vector<8xf32> to vector<8x1xf32>
    %31 = vector.broadcast %30 : vector<8x1xf32> to vector<8x8xf32>
    %32 = arith.subf %28, %31 : vector<8x8xf32>
    %33 = math.exp %32 : vector<8x8xf32>
    %cst_29 = arith.constant dense<0.000000e+00> : vector<8xf32>
    %34 = vector.multi_reduction <add>, %33, %cst_29 [1] : vector<8x8xf32> to vector<8xf32>
    %35 = vector.shape_cast %34 : vector<8xf32> to vector<8x1xf32>
    %36 = tpu.reciprocal %35 {approx = true} : vector<8x1xf32> -> vector<8x1xf32>
    %37 = vector.broadcast %36 : vector<8x1xf32> to vector<8x8xf32>
    %38 = arith.mulf %33, %37 : vector<8x8xf32>
    %cst_30 = arith.constant dense<0.000000e+00> : vector<8x8xf32>
    %39 = tpu.matmul %38, %25, %cst_30 {dimension_numbers = #tpu.dot_dimension_numbers<[1], [0], [0], [1], [0, 0, 1, 1], [], []>} : vector<8x8xf32>, vector<8x8xf32>, vector<8x8xf32> -> vector<8x8xf32>
    %c0_31 = arith.constant 0 : index
    %c0_32 = arith.constant 0 : index
    %c0_33 = arith.constant 0 : index
    %40 = vector.load %arg7[%c0_31, %c0_32, %c0_33] : memref<4x8x32xf32, #tpu.memory_space<vmem>>, vector<1x8x32xf32>
    %41 = vector.shape_cast %40 : vector<1x8x32xf32> to vector<8x32xf32>
    %cst_34 = arith.constant dense<0.000000e+00> : vector<8x32xf32>
    %42 = tpu.matmul %39, %41, %cst_34 {dimension_numbers = #tpu.dot_dimension_numbers<[1], [0], [0], [1], [0, 0, 1, 1], [], []>} : vector<8x8xf32>, vector<8x32xf32>, vector<8x32xf32> -> vector<8x32xf32>
    %43 = arith.addf %4, %42 : vector<8x32xf32>
    %c1 = arith.constant 1 : index
    %c0_35 = arith.constant 0 : index
    %c0_36 = arith.constant 0 : index
    %44 = vector.load %arg2[%c1, %c0_35, %c0_36] : memref<4x32x8xf32, #tpu.memory_space<vmem>>, vector<1x32x8xf32>
    %45 = vector.shape_cast %44 : vector<1x32x8xf32> to vector<32x8xf32>
    %cst_37 = arith.constant dense<0.000000e+00> : vector<8x8xf32>
    %46 = tpu.matmul %1, %45, %cst_37 {dimension_numbers = #tpu.dot_dimension_numbers<[1], [0], [0], [1], [0, 0, 1, 1], [], []>} : vector<8x32xf32>, vector<32x8xf32>, vector<8x8xf32> -> vector<8x8xf32>
    %47 = arith.mulf %46, %2 : vector<8x8xf32>
    %c1_38 = arith.constant 1 : index
    %c0_39 = arith.constant 0 : index
    %c0_40 = arith.constant 0 : index
    %48 = vector.load %arg5[%c1_38, %c0_39, %c0_40] : memref<4x32x8xf32, #tpu.memory_space<vmem>>, vector<1x32x8xf32>
    %49 = vector.shape_cast %48 : vector<1x32x8xf32> to vector<32x8xf32>
    %cst_41 = arith.constant dense<0.000000e+00> : vector<8x8xf32>
    %50 = tpu.matmul %1, %49, %cst_41 {dimension_numbers = #tpu.dot_dimension_numbers<[1], [0], [0], [1], [0, 0, 1, 1], [], []>} : vector<8x32xf32>, vector<32x8xf32>, vector<8x8xf32> -> vector<8x8xf32>
    %51 = arith.mulf %50, %3 : vector<8x8xf32>
    %52 = arith.addf %47, %51 : vector<8x8xf32>
    %c1_42 = arith.constant 1 : index
    %c0_43 = arith.constant 0 : index
    %c0_44 = arith.constant 0 : index
    %53 = vector.load %arg3[%c1_42, %c0_43, %c0_44] : memref<4x32x8xf32, #tpu.memory_space<vmem>>, vector<1x32x8xf32>
    %54 = vector.shape_cast %53 : vector<1x32x8xf32> to vector<32x8xf32>
    %cst_45 = arith.constant dense<0.000000e+00> : vector<8x8xf32>
    %55 = tpu.matmul %1, %54, %cst_45 {dimension_numbers = #tpu.dot_dimension_numbers<[1], [0], [0], [1], [0, 0, 1, 1], [], []>} : vector<8x32xf32>, vector<32x8xf32>, vector<8x8xf32> -> vector<8x8xf32>
    %56 = arith.mulf %55, %2 : vector<8x8xf32>
    %c1_46 = arith.constant 1 : index
    %c0_47 = arith.constant 0 : index
    %c0_48 = arith.constant 0 : index
    %57 = vector.load %arg6[%c1_46, %c0_47, %c0_48] : memref<4x32x8xf32, #tpu.memory_space<vmem>>, vector<1x32x8xf32>
    %58 = vector.shape_cast %57 : vector<1x32x8xf32> to vector<32x8xf32>
    %cst_49 = arith.constant dense<0.000000e+00> : vector<8x8xf32>
    %59 = tpu.matmul %1, %58, %cst_49 {dimension_numbers = #tpu.dot_dimension_numbers<[1], [0], [0], [1], [0, 0, 1, 1], [], []>} : vector<8x32xf32>, vector<32x8xf32>, vector<8x8xf32> -> vector<8x8xf32>
    %60 = arith.mulf %59, %3 : vector<8x8xf32>
    %61 = arith.addf %56, %60 : vector<8x8xf32>
    %c1_50 = arith.constant 1 : index
    %c0_51 = arith.constant 0 : index
    %c0_52 = arith.constant 0 : index
    %62 = vector.load %arg4[%c1_50, %c0_51, %c0_52] : memref<4x32x8xf32, #tpu.memory_space<vmem>>, vector<1x32x8xf32>
    %63 = vector.shape_cast %62 : vector<1x32x8xf32> to vector<32x8xf32>
    %cst_53 = arith.constant dense<0.000000e+00> : vector<8x8xf32>
    %64 = tpu.matmul %1, %63, %cst_53 {dimension_numbers = #tpu.dot_dimension_numbers<[1], [0], [0], [1], [0, 0, 1, 1], [], []>} : vector<8x32xf32>, vector<32x8xf32>, vector<8x8xf32> -> vector<8x8xf32>
    "tpu.trace_start"() <{level = 10 : i32, message = "qd,kd->qk"}> : () -> ()
    %cst_54 = arith.constant dense<0.000000e+00> : vector<8x8xf32>
    %65 = tpu.matmul %52, %61, %cst_54 {dimension_numbers = #tpu.dot_dimension_numbers<[1], [1], [0], [0], [0, 0, 1, 0], [], []>} : vector<8x8xf32>, vector<8x8xf32>, vector<8x8xf32> -> vector<8x8xf32>
    "tpu.trace_stop"() : () -> ()
    %cst_55 = arith.constant 0.353553385 : f32
    %66 = vector.broadcast %cst_55 : f32 to vector<8x8xf32>
    %67 = arith.mulf %65, %66 : vector<8x8xf32>
    %cst_56 = arith.constant dense<0xFF800000> : vector<8xf32>
    %68 = vector.multi_reduction <maximumf>, %67, %cst_56 [1] : vector<8x8xf32> to vector<8xf32>
    %69 = vector.shape_cast %68 : vector<8xf32> to vector<8x1xf32>
    %70 = vector.broadcast %69 : vector<8x1xf32> to vector<8x8xf32>
    %71 = arith.subf %67, %70 : vector<8x8xf32>
    %72 = math.exp %71 : vector<8x8xf32>
    %cst_57 = arith.constant dense<0.000000e+00> : vector<8xf32>
    %73 = vector.multi_reduction <add>, %72, %cst_57 [1] : vector<8x8xf32> to vector<8xf32>
    %74 = vector.shape_cast %73 : vector<8xf32> to vector<8x1xf32>
    %75 = tpu.reciprocal %74 {approx = true} : vector<8x1xf32> -> vector<8x1xf32>
    %76 = vector.broadcast %75 : vector<8x1xf32> to vector<8x8xf32>
    %77 = arith.mulf %72, %76 : vector<8x8xf32>
    %cst_58 = arith.constant dense<0.000000e+00> : vector<8x8xf32>
    %78 = tpu.matmul %77, %64, %cst_58 {dimension_numbers = #tpu.dot_dimension_numbers<[1], [0], [0], [1], [0, 0, 1, 1], [], []>} : vector<8x8xf32>, vector<8x8xf32>, vector<8x8xf32> -> vector<8x8xf32>
    %c1_59 = arith.constant 1 : index
    %c0_60 = arith.constant 0 : index
    %c0_61 = arith.constant 0 : index
    %79 = vector.load %arg7[%c1_59, %c0_60, %c0_61] : memref<4x8x32xf32, #tpu.memory_space<vmem>>, vector<1x8x32xf32>
    %80 = vector.shape_cast %79 : vector<1x8x32xf32> to vector<8x32xf32>
    %cst_62 = arith.constant dense<0.000000e+00> : vector<8x32xf32>
    %81 = tpu.matmul %78, %80, %cst_62 {dimension_numbers = #tpu.dot_dimension_numbers<[1], [0], [0], [1], [0, 0, 1, 1], [], []>} : vector<8x8xf32>, vector<8x32xf32>, vector<8x32xf32> -> vector<8x32xf32>
    %82 = arith.addf %43, %81 : vector<8x32xf32>
    %c2 = arith.constant 2 : index
    %c0_63 = arith.constant 0 : index
    %c0_64 = arith.constant 0 : index
    %83 = vector.load %arg2[%c2, %c0_63, %c0_64] : memref<4x32x8xf32, #tpu.memory_space<vmem>>, vector<1x32x8xf32>
    %84 = vector.shape_cast %83 : vector<1x32x8xf32> to vector<32x8xf32>
    %cst_65 = arith.constant dense<0.000000e+00> : vector<8x8xf32>
    %85 = tpu.matmul %1, %84, %cst_65 {dimension_numbers = #tpu.dot_dimension_numbers<[1], [0], [0], [1], [0, 0, 1, 1], [], []>} : vector<8x32xf32>, vector<32x8xf32>, vector<8x8xf32> -> vector<8x8xf32>
    %86 = arith.mulf %85, %2 : vector<8x8xf32>
    %c2_66 = arith.constant 2 : index
    %c0_67 = arith.constant 0 : index
    %c0_68 = arith.constant 0 : index
    %87 = vector.load %arg5[%c2_66, %c0_67, %c0_68] : memref<4x32x8xf32, #tpu.memory_space<vmem>>, vector<1x32x8xf32>
    %88 = vector.shape_cast %87 : vector<1x32x8xf32> to vector<32x8xf32>
    %cst_69 = arith.constant dense<0.000000e+00> : vector<8x8xf32>
    %89 = tpu.matmul %1, %88, %cst_69 {dimension_numbers = #tpu.dot_dimension_numbers<[1], [0], [0], [1], [0, 0, 1, 1], [], []>} : vector<8x32xf32>, vector<32x8xf32>, vector<8x8xf32> -> vector<8x8xf32>
    %90 = arith.mulf %89, %3 : vector<8x8xf32>
    %91 = arith.addf %86, %90 : vector<8x8xf32>
    %c2_70 = arith.constant 2 : index
    %c0_71 = arith.constant 0 : index
    %c0_72 = arith.constant 0 : index
    %92 = vector.load %arg3[%c2_70, %c0_71, %c0_72] : memref<4x32x8xf32, #tpu.memory_space<vmem>>, vector<1x32x8xf32>
    %93 = vector.shape_cast %92 : vector<1x32x8xf32> to vector<32x8xf32>
    %cst_73 = arith.constant dense<0.000000e+00> : vector<8x8xf32>
    %94 = tpu.matmul %1, %93, %cst_73 {dimension_numbers = #tpu.dot_dimension_numbers<[1], [0], [0], [1], [0, 0, 1, 1], [], []>} : vector<8x32xf32>, vector<32x8xf32>, vector<8x8xf32> -> vector<8x8xf32>
    %95 = arith.mulf %94, %2 : vector<8x8xf32>
    %c2_74 = arith.constant 2 : index
    %c0_75 = arith.constant 0 : index
    %c0_76 = arith.constant 0 : index
    %96 = vector.load %arg6[%c2_74, %c0_75, %c0_76] : memref<4x32x8xf32, #tpu.memory_space<vmem>>, vector<1x32x8xf32>
    %97 = vector.shape_cast %96 : vector<1x32x8xf32> to vector<32x8xf32>
    %cst_77 = arith.constant dense<0.000000e+00> : vector<8x8xf32>
    %98 = tpu.matmul %1, %97, %cst_77 {dimension_numbers = #tpu.dot_dimension_numbers<[1], [0], [0], [1], [0, 0, 1, 1], [], []>} : vector<8x32xf32>, vector<32x8xf32>, vector<8x8xf32> -> vector<8x8xf32>
    %99 = arith.mulf %98, %3 : vector<8x8xf32>
    %100 = arith.addf %95, %99 : vector<8x8xf32>
    %c2_78 = arith.constant 2 : index
    %c0_79 = arith.constant 0 : index
    %c0_80 = arith.constant 0 : index
    %101 = vector.load %arg4[%c2_78, %c0_79, %c0_80] : memref<4x32x8xf32, #tpu.memory_space<vmem>>, vector<1x32x8xf32>
    %102 = vector.shape_cast %101 : vector<1x32x8xf32> to vector<32x8xf32>
    %cst_81 = arith.constant dense<0.000000e+00> : vector<8x8xf32>
    %103 = tpu.matmul %1, %102, %cst_81 {dimension_numbers = #tpu.dot_dimension_numbers<[1], [0], [0], [1], [0, 0, 1, 1], [], []>} : vector<8x32xf32>, vector<32x8xf32>, vector<8x8xf32> -> vector<8x8xf32>
    "tpu.trace_start"() <{level = 10 : i32, message = "qd,kd->qk"}> : () -> ()
    %cst_82 = arith.constant dense<0.000000e+00> : vector<8x8xf32>
    %104 = tpu.matmul %91, %100, %cst_82 {dimension_numbers = #tpu.dot_dimension_numbers<[1], [1], [0], [0], [0, 0, 1, 0], [], []>} : vector<8x8xf32>, vector<8x8xf32>, vector<8x8xf32> -> vector<8x8xf32>
    "tpu.trace_stop"() : () -> ()
    %cst_83 = arith.constant 0.353553385 : f32
    %105 = vector.broadcast %cst_83 : f32 to vector<8x8xf32>
    %106 = arith.mulf %104, %105 : vector<8x8xf32>
    %cst_84 = arith.constant dense<0xFF800000> : vector<8xf32>
    %107 = vector.multi_reduction <maximumf>, %106, %cst_84 [1] : vector<8x8xf32> to vector<8xf32>
    %108 = vector.shape_cast %107 : vector<8xf32> to vector<8x1xf32>
    %109 = vector.broadcast %108 : vector<8x1xf32> to vector<8x8xf32>
    %110 = arith.subf %106, %109 : vector<8x8xf32>
    %111 = math.exp %110 : vector<8x8xf32>
    %cst_85 = arith.constant dense<0.000000e+00> : vector<8xf32>
    %112 = vector.multi_reduction <add>, %111, %cst_85 [1] : vector<8x8xf32> to vector<8xf32>
    %113 = vector.shape_cast %112 : vector<8xf32> to vector<8x1xf32>
    %114 = tpu.reciprocal %113 {approx = true} : vector<8x1xf32> -> vector<8x1xf32>
    %115 = vector.broadcast %114 : vector<8x1xf32> to vector<8x8xf32>
    %116 = arith.mulf %111, %115 : vector<8x8xf32>
    %cst_86 = arith.constant dense<0.000000e+00> : vector<8x8xf32>
    %117 = tpu.matmul %116, %103, %cst_86 {dimension_numbers = #tpu.dot_dimension_numbers<[1], [0], [0], [1], [0, 0, 1, 1], [], []>} : vector<8x8xf32>, vector<8x8xf32>, vector<8x8xf32> -> vector<8x8xf32>
    %c2_87 = arith.constant 2 : index
    %c0_88 = arith.constant 0 : index
    %c0_89 = arith.constant 0 : index
    %118 = vector.load %arg7[%c2_87, %c0_88, %c0_89] : memref<4x8x32xf32, #tpu.memory_space<vmem>>, vector<1x8x32xf32>
    %119 = vector.shape_cast %118 : vector<1x8x32xf32> to vector<8x32xf32>
    %cst_90 = arith.constant dense<0.000000e+00> : vector<8x32xf32>
    %120 = tpu.matmul %117, %119, %cst_90 {dimension_numbers = #tpu.dot_dimension_numbers<[1], [0], [0], [1], [0, 0, 1, 1], [], []>} : vector<8x8xf32>, vector<8x32xf32>, vector<8x32xf32> -> vector<8x32xf32>
    %121 = arith.addf %82, %120 : vector<8x32xf32>
    %c3 = arith.constant 3 : index
    %c0_91 = arith.constant 0 : index
    %c0_92 = arith.constant 0 : index
    %122 = vector.load %arg2[%c3, %c0_91, %c0_92] : memref<4x32x8xf32, #tpu.memory_space<vmem>>, vector<1x32x8xf32>
    %123 = vector.shape_cast %122 : vector<1x32x8xf32> to vector<32x8xf32>
    %cst_93 = arith.constant dense<0.000000e+00> : vector<8x8xf32>
    %124 = tpu.matmul %1, %123, %cst_93 {dimension_numbers = #tpu.dot_dimension_numbers<[1], [0], [0], [1], [0, 0, 1, 1], [], []>} : vector<8x32xf32>, vector<32x8xf32>, vector<8x8xf32> -> vector<8x8xf32>
    %125 = arith.mulf %124, %2 : vector<8x8xf32>
    %c3_94 = arith.constant 3 : index
    %c0_95 = arith.constant 0 : index
    %c0_96 = arith.constant 0 : index
    %126 = vector.load %arg5[%c3_94, %c0_95, %c0_96] : memref<4x32x8xf32, #tpu.memory_space<vmem>>, vector<1x32x8xf32>
    %127 = vector.shape_cast %126 : vector<1x32x8xf32> to vector<32x8xf32>
    %cst_97 = arith.constant dense<0.000000e+00> : vector<8x8xf32>
    %128 = tpu.matmul %1, %127, %cst_97 {dimension_numbers = #tpu.dot_dimension_numbers<[1], [0], [0], [1], [0, 0, 1, 1], [], []>} : vector<8x32xf32>, vector<32x8xf32>, vector<8x8xf32> -> vector<8x8xf32>
    %129 = arith.mulf %128, %3 : vector<8x8xf32>
    %130 = arith.addf %125, %129 : vector<8x8xf32>
    %c3_98 = arith.constant 3 : index
    %c0_99 = arith.constant 0 : index
    %c0_100 = arith.constant 0 : index
    %131 = vector.load %arg3[%c3_98, %c0_99, %c0_100] : memref<4x32x8xf32, #tpu.memory_space<vmem>>, vector<1x32x8xf32>
    %132 = vector.shape_cast %131 : vector<1x32x8xf32> to vector<32x8xf32>
    %cst_101 = arith.constant dense<0.000000e+00> : vector<8x8xf32>
    %133 = tpu.matmul %1, %132, %cst_101 {dimension_numbers = #tpu.dot_dimension_numbers<[1], [0], [0], [1], [0, 0, 1, 1], [], []>} : vector<8x32xf32>, vector<32x8xf32>, vector<8x8xf32> -> vector<8x8xf32>
    %134 = arith.mulf %133, %2 : vector<8x8xf32>
    %c3_102 = arith.constant 3 : index
    %c0_103 = arith.constant 0 : index
    %c0_104 = arith.constant 0 : index
    %135 = vector.load %arg6[%c3_102, %c0_103, %c0_104] : memref<4x32x8xf32, #tpu.memory_space<vmem>>, vector<1x32x8xf32>
    %136 = vector.shape_cast %135 : vector<1x32x8xf32> to vector<32x8xf32>
    %cst_105 = arith.constant dense<0.000000e+00> : vector<8x8xf32>
    %137 = tpu.matmul %1, %136, %cst_105 {dimension_numbers = #tpu.dot_dimension_numbers<[1], [0], [0], [1], [0, 0, 1, 1], [], []>} : vector<8x32xf32>, vector<32x8xf32>, vector<8x8xf32> -> vector<8x8xf32>
    %138 = arith.mulf %137, %3 : vector<8x8xf32>
    %139 = arith.addf %134, %138 : vector<8x8xf32>
    %c3_106 = arith.constant 3 : index
    %c0_107 = arith.constant 0 : index
    %c0_108 = arith.constant 0 : index
    %140 = vector.load %arg4[%c3_106, %c0_107, %c0_108] : memref<4x32x8xf32, #tpu.memory_space<vmem>>, vector<1x32x8xf32>
    %141 = vector.shape_cast %140 : vector<1x32x8xf32> to vector<32x8xf32>
    %cst_109 = arith.constant dense<0.000000e+00> : vector<8x8xf32>
    %142 = tpu.matmul %1, %141, %cst_109 {dimension_numbers = #tpu.dot_dimension_numbers<[1], [0], [0], [1], [0, 0, 1, 1], [], []>} : vector<8x32xf32>, vector<32x8xf32>, vector<8x8xf32> -> vector<8x8xf32>
    "tpu.trace_start"() <{level = 10 : i32, message = "qd,kd->qk"}> : () -> ()
    %cst_110 = arith.constant dense<0.000000e+00> : vector<8x8xf32>
    %143 = tpu.matmul %130, %139, %cst_110 {dimension_numbers = #tpu.dot_dimension_numbers<[1], [1], [0], [0], [0, 0, 1, 0], [], []>} : vector<8x8xf32>, vector<8x8xf32>, vector<8x8xf32> -> vector<8x8xf32>
    "tpu.trace_stop"() : () -> ()
    %cst_111 = arith.constant 0.353553385 : f32
    %144 = vector.broadcast %cst_111 : f32 to vector<8x8xf32>
    %145 = arith.mulf %143, %144 : vector<8x8xf32>
    %cst_112 = arith.constant dense<0xFF800000> : vector<8xf32>
    %146 = vector.multi_reduction <maximumf>, %145, %cst_112 [1] : vector<8x8xf32> to vector<8xf32>
    %147 = vector.shape_cast %146 : vector<8xf32> to vector<8x1xf32>
    %148 = vector.broadcast %147 : vector<8x1xf32> to vector<8x8xf32>
    %149 = arith.subf %145, %148 : vector<8x8xf32>
    %150 = math.exp %149 : vector<8x8xf32>
    %cst_113 = arith.constant dense<0.000000e+00> : vector<8xf32>
    %151 = vector.multi_reduction <add>, %150, %cst_113 [1] : vector<8x8xf32> to vector<8xf32>
    %152 = vector.shape_cast %151 : vector<8xf32> to vector<8x1xf32>
    %153 = tpu.reciprocal %152 {approx = true} : vector<8x1xf32> -> vector<8x1xf32>
    %154 = vector.broadcast %153 : vector<8x1xf32> to vector<8x8xf32>
    %155 = arith.mulf %150, %154 : vector<8x8xf32>
    %cst_114 = arith.constant dense<0.000000e+00> : vector<8x8xf32>
    %156 = tpu.matmul %155, %142, %cst_114 {dimension_numbers = #tpu.dot_dimension_numbers<[1], [0], [0], [1], [0, 0, 1, 1], [], []>} : vector<8x8xf32>, vector<8x8xf32>, vector<8x8xf32> -> vector<8x8xf32>
    %c3_115 = arith.constant 3 : index
    %c0_116 = arith.constant 0 : index
    %c0_117 = arith.constant 0 : index
    %157 = vector.load %arg7[%c3_115, %c0_116, %c0_117] : memref<4x8x32xf32, #tpu.memory_space<vmem>>, vector<1x8x32xf32>
    %158 = vector.shape_cast %157 : vector<1x8x32xf32> to vector<8x32xf32>
    %cst_118 = arith.constant dense<0.000000e+00> : vector<8x32xf32>
    %159 = tpu.matmul %156, %158, %cst_118 {dimension_numbers = #tpu.dot_dimension_numbers<[1], [0], [0], [1], [0, 0, 1, 1], [], []>} : vector<8x8xf32>, vector<8x32xf32>, vector<8x32xf32> -> vector<8x32xf32>
    %160 = arith.addf %121, %159 : vector<8x32xf32>
    %161 = arith.addf %1, %160 : vector<8x32xf32>
    %cst_119 = arith.constant dense<0.000000e+00> : vector<8xf32>
    %162 = vector.multi_reduction <add>, %161, %cst_119 [1] : vector<8x32xf32> to vector<8xf32>
    %163 = vector.shape_cast %162 : vector<8xf32> to vector<8x1xf32>
    %cst_120 = arith.constant 3.200000e+01 : f32
    %164 = vector.broadcast %cst_120 : f32 to vector<8x1xf32>
    %165 = arith.divf %163, %164 : vector<8x1xf32>
    %166 = vector.broadcast %165 : vector<8x1xf32> to vector<8x32xf32>
    %167 = arith.subf %161, %166 : vector<8x32xf32>
    %168 = arith.mulf %167, %167 : vector<8x32xf32>
    %cst_121 = arith.constant dense<0.000000e+00> : vector<8xf32>
    %169 = vector.multi_reduction <add>, %168, %cst_121 [1] : vector<8x32xf32> to vector<8xf32>
    %170 = vector.shape_cast %169 : vector<8xf32> to vector<8x1xf32>
    %cst_122 = arith.constant 3.200000e+01 : f32
    %171 = vector.broadcast %cst_122 : f32 to vector<8x1xf32>
    %172 = arith.divf %170, %171 : vector<8x1xf32>
    %cst_123 = arith.constant 9.99999974E-6 : f32
    %173 = vector.broadcast %cst_123 : f32 to vector<8x1xf32>
    %174 = arith.addf %172, %173 : vector<8x1xf32>
    %175 = math.rsqrt %174 : vector<8x1xf32>
    %176 = vector.broadcast %175 : vector<8x1xf32> to vector<8x32xf32>
    %177 = arith.mulf %167, %176 : vector<8x32xf32>
    %c0_124 = arith.constant 0 : index
    %c0_125 = arith.constant 0 : index
    %178 = vector.load %arg10[%c0_124, %c0_125] : memref<32x64xf32, #tpu.memory_space<vmem>>, vector<32x64xf32>
    %cst_126 = arith.constant dense<0.000000e+00> : vector<8x64xf32>
    %179 = tpu.matmul %177, %178, %cst_126 {dimension_numbers = #tpu.dot_dimension_numbers<[1], [0], [0], [1], [0, 0, 1, 1], [], []>} : vector<8x32xf32>, vector<32x64xf32>, vector<8x64xf32> -> vector<8x64xf32>
    %c0_127 = arith.constant 0 : index
    %c0_128 = arith.constant 0 : index
    %180 = vector.load %arg11[%c0_127, %c0_128] : memref<1x64xf32, #tpu.memory_space<vmem>>, vector<1x64xf32>
    %181 = vector.broadcast %180 : vector<1x64xf32> to vector<8x64xf32>
    %182 = arith.addf %179, %181 : vector<8x64xf32>
    %cst_129 = arith.constant 0.000000e+00 : f32
    %183 = vector.broadcast %cst_129 : f32 to vector<8x64xf32>
    %184 = arith.maximumf %182, %183 : vector<8x64xf32>
    %c0_130 = arith.constant 0 : index
    %c0_131 = arith.constant 0 : index
    %185 = vector.load %arg12[%c0_130, %c0_131] : memref<64x32xf32, #tpu.memory_space<vmem>>, vector<64x32xf32>
    %cst_132 = arith.constant dense<0.000000e+00> : vector<8x32xf32>
    %186 = tpu.matmul %184, %185, %cst_132 {dimension_numbers = #tpu.dot_dimension_numbers<[1], [0], [0], [1], [0, 0, 1, 1], [], []>} : vector<8x64xf32>, vector<64x32xf32>, vector<8x32xf32> -> vector<8x32xf32>
    %c0_133 = arith.constant 0 : index
    %c0_134 = arith.constant 0 : index
    %187 = vector.load %arg13[%c0_133, %c0_134] : memref<1x32xf32, #tpu.memory_space<vmem>>, vector<1x32xf32>
    %188 = vector.broadcast %187 : vector<1x32xf32> to vector<8x32xf32>
    %189 = arith.addf %186, %188 : vector<8x32xf32>
    %190 = arith.addf %177, %189 : vector<8x32xf32>
    %cst_135 = arith.constant dense<0.000000e+00> : vector<8xf32>
    %191 = vector.multi_reduction <add>, %190, %cst_135 [1] : vector<8x32xf32> to vector<8xf32>
    %192 = vector.shape_cast %191 : vector<8xf32> to vector<8x1xf32>
    %cst_136 = arith.constant 3.200000e+01 : f32
    %193 = vector.broadcast %cst_136 : f32 to vector<8x1xf32>
    %194 = arith.divf %192, %193 : vector<8x1xf32>
    %195 = vector.broadcast %194 : vector<8x1xf32> to vector<8x32xf32>
    %196 = arith.subf %190, %195 : vector<8x32xf32>
    %197 = arith.mulf %196, %196 : vector<8x32xf32>
    %cst_137 = arith.constant dense<0.000000e+00> : vector<8xf32>
    %198 = vector.multi_reduction <add>, %197, %cst_137 [1] : vector<8x32xf32> to vector<8xf32>
    %199 = vector.shape_cast %198 : vector<8xf32> to vector<8x1xf32>
    %cst_138 = arith.constant 3.200000e+01 : f32
    %200 = vector.broadcast %cst_138 : f32 to vector<8x1xf32>
    %201 = arith.divf %199, %200 : vector<8x1xf32>
    %cst_139 = arith.constant 9.99999974E-6 : f32
    %202 = vector.broadcast %cst_139 : f32 to vector<8x1xf32>
    %203 = arith.addf %201, %202 : vector<8x1xf32>
    %204 = math.rsqrt %203 : vector<8x1xf32>
    %205 = vector.broadcast %204 : vector<8x1xf32> to vector<8x32xf32>
    %206 = arith.mulf %196, %205 : vector<8x32xf32>
    %c0_140 = arith.constant 0 : index
    %c0_141 = arith.constant 0 : index
    %c0_142 = arith.constant 0 : index
    %207 = vector.load %arg14[%c0_140, %c0_141, %c0_142] : memref<1x8x32xf32, #tpu.memory_space<vmem>>, vector<1x8x32xf32>
    %208 = vector.shape_cast %207 : vector<1x8x32xf32> to vector<8x32xf32>
    %209 = vector.shape_cast %206 : vector<8x32xf32> to vector<1x8x32xf32>
    tpu.vector_store %arg14[%c0_140, %c0_141, %c0_142], %209 {strides = array<i32>} : memref<1x8x32xf32, #tpu.memory_space<vmem>>, vector<1x8x32xf32>,
    return
  }
  func.func @transform_0(%arg0: i32) -> (i32, i32, i32) {
    %c0_i32 = arith.constant 0 : i32
    %c0_i32_0 = arith.constant 0 : i32
    %c0_i32_1 = arith.constant 0 : i32
    return %arg0, %c0_i32, %c0_i32_0 : i32, i32, i32
  }
  func.func @transform_1(%arg0: i32) -> (i32, i32, i32) {
    %c0_i32 = arith.constant 0 : i32
    %c0_i32_0 = arith.constant 0 : i32
    %c0_i32_1 = arith.constant 0 : i32
    %c0_i32_2 = arith.constant 0 : i32
    return %c0_i32, %c0_i32_0, %c0_i32_1 : i32, i32, i32
  }
  func.func @transform_2(%arg0: i32) -> (i32, i32, i32) {
    %c0_i32 = arith.constant 0 : i32
    %c0_i32_0 = arith.constant 0 : i32
    %c0_i32_1 = arith.constant 0 : i32
    %c0_i32_2 = arith.constant 0 : i32
    return %c0_i32, %c0_i32_0, %c0_i32_1 : i32, i32, i32
  }
  func.func @transform_3(%arg0: i32) -> (i32, i32, i32) {
    %c0_i32 = arith.constant 0 : i32
    %c0_i32_0 = arith.constant 0 : i32
    %c0_i32_1 = arith.constant 0 : i32
    %c0_i32_2 = arith.constant 0 : i32
    return %c0_i32, %c0_i32_0, %c0_i32_1 : i32, i32, i32
  }
  func.func @transform_4(%arg0: i32) -> (i32, i32, i32) {
    %c0_i32 = arith.constant 0 : i32
    %c0_i32_0 = arith.constant 0 : i32
    %c0_i32_1 = arith.constant 0 : i32
    %c0_i32_2 = arith.constant 0 : i32
    return %c0_i32, %c0_i32_0, %c0_i32_1 : i32, i32, i32
  }
  func.func @transform_5(%arg0: i32) -> (i32, i32, i32) {
    %c0_i32 = arith.constant 0 : i32
    %c0_i32_0 = arith.constant 0 : i32
    %c0_i32_1 = arith.constant 0 : i32
    %c0_i32_2 = arith.constant 0 : i32
    return %c0_i32, %c0_i32_0, %c0_i32_1 : i32, i32, i32
  }
  func.func @transform_6(%arg0: i32) -> (i32, i32, i32) {
    %c0_i32 = arith.constant 0 : i32
    %c0_i32_0 = arith.constant 0 : i32
    %c0_i32_1 = arith.constant 0 : i32
    %c0_i32_2 = arith.constant 0 : i32
    return %c0_i32, %c0_i32_0, %c0_i32_1 : i32, i32, i32
  }
  func.func @transform_7(%arg0: i32) -> (i32, i32) {
    %c0_i32 = arith.constant 0 : i32
    %c0_i32_0 = arith.constant 0 : i32
    %c0_i32_1 = arith.constant 0 : i32
    return %c0_i32, %c0_i32_0 : i32, i32
  }
  func.func @transform_8(%arg0: i32) -> (i32, i32) {
    %c0_i32 = arith.constant 0 : i32
    %c0_i32_0 = arith.constant 0 : i32
    %c0_i32_1 = arith.constant 0 : i32
    return %c0_i32, %c0_i32_0 : i32, i32
  }
  func.func @transform_9(%arg0: i32) -> (i32, i32) {
    %c0_i32 = arith.constant 0 : i32
    %c0_i32_0 = arith.constant 0 : i32
    %c0_i32_1 = arith.constant 0 : i32
    return %c0_i32, %c0_i32_0 : i32, i32
  }
  func.func @transform_10(%arg0: i32) -> (i32, i32) {
    %c0_i32 = arith.constant 0 : i32
    %c0_i32_0 = arith.constant 0 : i32
    %c0_i32_1 = arith.constant 0 : i32
    return %c0_i32, %c0_i32_0 : i32, i32
  }
  func.func @transform_11(%arg0: i32) -> (i32, i32) {
    %c0_i32 = arith.constant 0 : i32
    %c0_i32_0 = arith.constant 0 : i32
    %c0_i32_1 = arith.constant 0 : i32
    return %c0_i32, %c0_i32_0 : i32, i32
  }
  func.func @transform_12(%arg0: i32) -> (i32, i32) {
    %c0_i32 = arith.constant 0 : i32
    %c0_i32_0 = arith.constant 0 : i32
    %c0_i32_1 = arith.constant 0 : i32
    return %c0_i32, %c0_i32_0 : i32, i32
  }
  func.func @transform_13(%arg0: i32) -> (i32, i32, i32) {
    %c0_i32 = arith.constant 0 : i32
    %c0_i32_0 = arith.constant 0 : i32
    %c0_i32_1 = arith.constant 0 : i32
    return %arg0, %c0_i32, %c0_i32_0 : i32, i32, i32
  }
}

module attributes {stable_mosaic.version = 11 : i64} {
  func.func @_matmul_kernel(%arg0: memref<16x8xf32, #tpu.memory_space<vmem>>, %arg1: memref<8x32xf32, #tpu.memory_space<vmem>>, %arg2: memref<16x32xf32, #tpu.memory_space<vmem>>) attributes {dimension_semantics = [], scalar_prefetch = 0 : i64, scratch_operands = 0 : i64, tpu.core_type = #tpu.core_type<tc>} {
    %c0 = arith.constant 0 : index
    %c0_0 = arith.constant 0 : index
    %0 = vector.load %arg0[%c0, %c0_0] : memref<16x8xf32, #tpu.memory_space<vmem>>, vector<16x8xf32>
    %c0_1 = arith.constant 0 : index
    %c0_2 = arith.constant 0 : index
    %1 = vector.load %arg1[%c0_1, %c0_2] : memref<8x32xf32, #tpu.memory_space<vmem>>, vector<8x32xf32>
    %cst = arith.constant dense<0.000000e+00> : vector<16x32xf32>
    %2 = tpu.matmul %0, %1, %cst {dimension_numbers = #tpu.dot_dimension_numbers<[1], [0], [0], [1], [0, 0, 1, 1], [], []>} : vector<16x8xf32>, vector<8x32xf32>, vector<16x32xf32> -> vector<16x32xf32>
    %c0_3 = arith.constant 0 : index
    %c0_4 = arith.constant 0 : index
    %3 = vector.load %arg2[%c0_3, %c0_4] : memref<16x32xf32, #tpu.memory_space<vmem>>, vector<16x32xf32>
    tpu.vector_store %arg2[%c0_3, %c0_4], %2 {strides = array<i32>} : memref<16x32xf32, #tpu.memory_space<vmem>>, vector<16x32xf32>,
    return
  }
}

module attributes {stable_mosaic.version = 11 : i64} {
  func.func @_enc2_layer_kernel(%arg0: i32, %arg1: memref<1x8x32xf32, #tpu.memory_space<vmem>>, %arg2: memref<1x8x32xf32, #tpu.memory_space<vmem>>, %arg3: memref<4x32x8xf32, #tpu.memory_space<vmem>>, %arg4: memref<4x32x8xf32, #tpu.memory_space<vmem>>, %arg5: memref<4x32x8xf32, #tpu.memory_space<vmem>>, %arg6: memref<4x8x32xf32, #tpu.memory_space<vmem>>, %arg7: memref<32x64xf32, #tpu.memory_space<vmem>>, %arg8: memref<1x64xf32, #tpu.memory_space<vmem>>, %arg9: memref<64x32xf32, #tpu.memory_space<vmem>>, %arg10: memref<1x32xf32, #tpu.memory_space<vmem>>, %arg11: memref<1x8x32xf32, #tpu.memory_space<vmem>>) attributes {dimension_semantics = [#tpu.dimension_semantics<parallel>], iteration_bounds = array<i64: 2>, scalar_prefetch = 0 : i64, scratch_operands = 0 : i64, tpu.core_type = #tpu.core_type<tc>, window_params = [{transform_indices = @transform_0, window_bounds = array<i64: 1, 8, 32>}, {transform_indices = @transform_1, window_bounds = array<i64: 1, 8, 32>}, {pipeline_mode = #tpu.pipeline_mode<synchronous>, transform_indices = @transform_2, window_bounds = array<i64: 4, 32, 8>}, {pipeline_mode = #tpu.pipeline_mode<synchronous>, transform_indices = @transform_3, window_bounds = array<i64: 4, 32, 8>}, {pipeline_mode = #tpu.pipeline_mode<synchronous>, transform_indices = @transform_4, window_bounds = array<i64: 4, 32, 8>}, {pipeline_mode = #tpu.pipeline_mode<synchronous>, transform_indices = @transform_5, window_bounds = array<i64: 4, 8, 32>}, {pipeline_mode = #tpu.pipeline_mode<synchronous>, transform_indices = @transform_6, window_bounds = array<i64: 32, 64>}, {pipeline_mode = #tpu.pipeline_mode<synchronous>, transform_indices = @transform_7, window_bounds = array<i64: 1, 64>}, {pipeline_mode = #tpu.pipeline_mode<synchronous>, transform_indices = @transform_8, window_bounds = array<i64: 64, 32>}, {pipeline_mode = #tpu.pipeline_mode<synchronous>, transform_indices = @transform_9, window_bounds = array<i64: 1, 32>}, {transform_indices = @transform_10, window_bounds = array<i64: 1, 8, 32>}]} {
    %c0 = arith.constant 0 : index
    %c0_0 = arith.constant 0 : index
    %c0_1 = arith.constant 0 : index
    %0 = vector.load %arg1[%c0, %c0_0, %c0_1] : memref<1x8x32xf32, #tpu.memory_space<vmem>>, vector<1x8x32xf32>
    %1 = vector.shape_cast %0 : vector<1x8x32xf32> to vector<8x32xf32>
    %c0_2 = arith.constant 0 : index
    %c0_3 = arith.constant 0 : index
    %c0_4 = arith.constant 0 : index
    %2 = vector.load %arg2[%c0_2, %c0_3, %c0_4] : memref<1x8x32xf32, #tpu.memory_space<vmem>>, vector<1x8x32xf32>
    %3 = vector.shape_cast %2 : vector<1x8x32xf32> to vector<8x32xf32>
    %cst = arith.constant 0.000000e+00 : f32
    %4 = vector.broadcast %cst : f32 to vector<8x32xf32>
    %c0_5 = arith.constant 0 : index
    %c0_6 = arith.constant 0 : index
    %c0_7 = arith.constant 0 : index
    %5 = vector.load %arg3[%c0_5, %c0_6, %c0_7] : memref<4x32x8xf32, #tpu.memory_space<vmem>>, vector<1x32x8xf32>
    %6 = vector.shape_cast %5 : vector<1x32x8xf32> to vector<32x8xf32>
    %cst_8 = arith.constant dense<0.000000e+00> : vector<8x8xf32>
    %7 = tpu.matmul %1, %6, %cst_8 {dimension_numbers = #tpu.dot_dimension_numbers<[1], [0], [0], [1], [0, 0, 1, 1], [], []>} : vector<8x32xf32>, vector<32x8xf32>, vector<8x8xf32> -> vector<8x8xf32>
    %c0_9 = arith.constant 0 : index
    %c0_10 = arith.constant 0 : index
    %c0_11 = arith.constant 0 : index
    %8 = vector.load %arg4[%c0_9, %c0_10, %c0_11] : memref<4x32x8xf32, #tpu.memory_space<vmem>>, vector<1x32x8xf32>
    %9 = vector.shape_cast %8 : vector<1x32x8xf32> to vector<32x8xf32>
    %cst_12 = arith.constant dense<0.000000e+00> : vector<8x8xf32>
    %10 = tpu.matmul %3, %9, %cst_12 {dimension_numbers = #tpu.dot_dimension_numbers<[1], [0], [0], [1], [0, 0, 1, 1], [], []>} : vector<8x32xf32>, vector<32x8xf32>, vector<8x8xf32> -> vector<8x8xf32>
    %c0_13 = arith.constant 0 : index
    %c0_14 = arith.constant 0 : index
    %c0_15 = arith.constant 0 : index
    %11 = vector.load %arg5[%c0_13, %c0_14, %c0_15] : memref<4x32x8xf32, #tpu.memory_space<vmem>>, vector<1x32x8xf32>
    %12 = vector.shape_cast %11 : vector<1x32x8xf32> to vector<32x8xf32>
    %cst_16 = arith.constant dense<0.000000e+00> : vector<8x8xf32>
    %13 = tpu.matmul %3, %12, %cst_16 {dimension_numbers = #tpu.dot_dimension_numbers<[1], [0], [0], [1], [0, 0, 1, 1], [], []>} : vector<8x32xf32>, vector<32x8xf32>, vector<8x8xf32> -> vector<8x8xf32>
    "tpu.trace_start"() <{level = 10 : i32, message = "qd,kd->qk"}> : () -> ()
    %cst_17 = arith.constant dense<0.000000e+00> : vector<8x8xf32>
    %14 = tpu.matmul %7, %10, %cst_17 {dimension_numbers = #tpu.dot_dimension_numbers<[1], [1], [0], [0], [0, 0, 1, 0], [], []>} : vector<8x8xf32>, vector<8x8xf32>, vector<8x8xf32> -> vector<8x8xf32>
    "tpu.trace_stop"() : () -> ()
    %cst_18 = arith.constant 0.353553385 : f32
    %15 = vector.broadcast %cst_18 : f32 to vector<8x8xf32>
    %16 = arith.mulf %14, %15 : vector<8x8xf32>
    %cst_19 = arith.constant dense<0xFF800000> : vector<8xf32>
    %17 = vector.multi_reduction <maximumf>, %16, %cst_19 [1] : vector<8x8xf32> to vector<8xf32>
    %18 = vector.shape_cast %17 : vector<8xf32> to vector<8x1xf32>
    %19 = vector.broadcast %18 : vector<8x1xf32> to vector<8x8xf32>
    %20 = arith.subf %16, %19 : vector<8x8xf32>
    %21 = math.exp %20 : vector<8x8xf32>
    %cst_20 = arith.constant dense<0.000000e+00> : vector<8xf32>
    %22 = vector.multi_reduction <add>, %21, %cst_20 [1] : vector<8x8xf32> to vector<8xf32>
    %23 = vector.shape_cast %22 : vector<8xf32> to vector<8x1xf32>
    %24 = tpu.reciprocal %23 {approx = true} : vector<8x1xf32> -> vector<8x1xf32>
    %25 = vector.broadcast %24 : vector<8x1xf32> to vector<8x8xf32>
    %26 = arith.mulf %21, %25 : vector<8x8xf32>
    %cst_21 = arith.constant dense<0.000000e+00> : vector<8x8xf32>
    %27 = tpu.matmul %26, %13, %cst_21 {dimension_numbers = #tpu.dot_dimension_numbers<[1], [0], [0], [1], [0, 0, 1, 1], [], []>} : vector<8x8xf32>, vector<8x8xf32>, vector<8x8xf32> -> vector<8x8xf32>
    %c0_22 = arith.constant 0 : index
    %c0_23 = arith.constant 0 : index
    %c0_24 = arith.constant 0 : index
    %28 = vector.load %arg6[%c0_22, %c0_23, %c0_24] : memref<4x8x32xf32, #tpu.memory_space<vmem>>, vector<1x8x32xf32>
    %29 = vector.shape_cast %28 : vector<1x8x32xf32> to vector<8x32xf32>
    %cst_25 = arith.constant dense<0.000000e+00> : vector<8x32xf32>
    %30 = tpu.matmul %27, %29, %cst_25 {dimension_numbers = #tpu.dot_dimension_numbers<[1], [0], [0], [1], [0, 0, 1, 1], [], []>} : vector<8x8xf32>, vector<8x32xf32>, vector<8x32xf32> -> vector<8x32xf32>
    %31 = arith.addf %4, %30 : vector<8x32xf32>
    %c1 = arith.constant 1 : index
    %c0_26 = arith.constant 0 : index
    %c0_27 = arith.constant 0 : index
    %32 = vector.load %arg3[%c1, %c0_26, %c0_27] : memref<4x32x8xf32, #tpu.memory_space<vmem>>, vector<1x32x8xf32>
    %33 = vector.shape_cast %32 : vector<1x32x8xf32> to vector<32x8xf32>
    %cst_28 = arith.constant dense<0.000000e+00> : vector<8x8xf32>
    %34 = tpu.matmul %1, %33, %cst_28 {dimension_numbers = #tpu.dot_dimension_numbers<[1], [0], [0], [1], [0, 0, 1, 1], [], []>} : vector<8x32xf32>, vector<32x8xf32>, vector<8x8xf32> -> vector<8x8xf32>
    %c1_29 = arith.constant 1 : index
    %c0_30 = arith.constant 0 : index
    %c0_31 = arith.constant 0 : index
    %35 = vector.load %arg4[%c1_29, %c0_30, %c0_31] : memref<4x32x8xf32, #tpu.memory_space<vmem>>, vector<1x32x8xf32>
    %36 = vector.shape_cast %35 : vector<1x32x8xf32> to vector<32x8xf32>
    %cst_32 = arith.constant dense<0.000000e+00> : vector<8x8xf32>
    %37 = tpu.matmul %3, %36, %cst_32 {dimension_numbers = #tpu.dot_dimension_numbers<[1], [0], [0], [1], [0, 0, 1, 1], [], []>} : vector<8x32xf32>, vector<32x8xf32>, vector<8x8xf32> -> vector<8x8xf32>
    %c1_33 = arith.constant 1 : index
    %c0_34 = arith.constant 0 : index
    %c0_35 = arith.constant 0 : index
    %38 = vector.load %arg5[%c1_33, %c0_34, %c0_35] : memref<4x32x8xf32, #tpu.memory_space<vmem>>, vector<1x32x8xf32>
    %39 = vector.shape_cast %38 : vector<1x32x8xf32> to vector<32x8xf32>
    %cst_36 = arith.constant dense<0.000000e+00> : vector<8x8xf32>
    %40 = tpu.matmul %3, %39, %cst_36 {dimension_numbers = #tpu.dot_dimension_numbers<[1], [0], [0], [1], [0, 0, 1, 1], [], []>} : vector<8x32xf32>, vector<32x8xf32>, vector<8x8xf32> -> vector<8x8xf32>
    "tpu.trace_start"() <{level = 10 : i32, message = "qd,kd->qk"}> : () -> ()
    %cst_37 = arith.constant dense<0.000000e+00> : vector<8x8xf32>
    %41 = tpu.matmul %34, %37, %cst_37 {dimension_numbers = #tpu.dot_dimension_numbers<[1], [1], [0], [0], [0, 0, 1, 0], [], []>} : vector<8x8xf32>, vector<8x8xf32>, vector<8x8xf32> -> vector<8x8xf32>
    "tpu.trace_stop"() : () -> ()
    %cst_38 = arith.constant 0.353553385 : f32
    %42 = vector.broadcast %cst_38 : f32 to vector<8x8xf32>
    %43 = arith.mulf %41, %42 : vector<8x8xf32>
    %cst_39 = arith.constant dense<0xFF800000> : vector<8xf32>
    %44 = vector.multi_reduction <maximumf>, %43, %cst_39 [1] : vector<8x8xf32> to vector<8xf32>
    %45 = vector.shape_cast %44 : vector<8xf32> to vector<8x1xf32>
    %46 = vector.broadcast %45 : vector<8x1xf32> to vector<8x8xf32>
    %47 = arith.subf %43, %46 : vector<8x8xf32>
    %48 = math.exp %47 : vector<8x8xf32>
    %cst_40 = arith.constant dense<0.000000e+00> : vector<8xf32>
    %49 = vector.multi_reduction <add>, %48, %cst_40 [1] : vector<8x8xf32> to vector<8xf32>
    %50 = vector.shape_cast %49 : vector<8xf32> to vector<8x1xf32>
    %51 = tpu.reciprocal %50 {approx = true} : vector<8x1xf32> -> vector<8x1xf32>
    %52 = vector.broadcast %51 : vector<8x1xf32> to vector<8x8xf32>
    %53 = arith.mulf %48, %52 : vector<8x8xf32>
    %cst_41 = arith.constant dense<0.000000e+00> : vector<8x8xf32>
    %54 = tpu.matmul %53, %40, %cst_41 {dimension_numbers = #tpu.dot_dimension_numbers<[1], [0], [0], [1], [0, 0, 1, 1], [], []>} : vector<8x8xf32>, vector<8x8xf32>, vector<8x8xf32> -> vector<8x8xf32>
    %c1_42 = arith.constant 1 : index
    %c0_43 = arith.constant 0 : index
    %c0_44 = arith.constant 0 : index
    %55 = vector.load %arg6[%c1_42, %c0_43, %c0_44] : memref<4x8x32xf32, #tpu.memory_space<vmem>>, vector<1x8x32xf32>
    %56 = vector.shape_cast %55 : vector<1x8x32xf32> to vector<8x32xf32>
    %cst_45 = arith.constant dense<0.000000e+00> : vector<8x32xf32>
    %57 = tpu.matmul %54, %56, %cst_45 {dimension_numbers = #tpu.dot_dimension_numbers<[1], [0], [0], [1], [0, 0, 1, 1], [], []>} : vector<8x8xf32>, vector<8x32xf32>, vector<8x32xf32> -> vector<8x32xf32>
    %58 = arith.addf %31, %57 : vector<8x32xf32>
    %c2 = arith.constant 2 : index
    %c0_46 = arith.constant 0 : index
    %c0_47 = arith.constant 0 : index
    %59 = vector.load %arg3[%c2, %c0_46, %c0_47] : memref<4x32x8xf32, #tpu.memory_space<vmem>>, vector<1x32x8xf32>
    %60 = vector.shape_cast %59 : vector<1x32x8xf32> to vector<32x8xf32>
    %cst_48 = arith.constant dense<0.000000e+00> : vector<8x8xf32>
    %61 = tpu.matmul %1, %60, %cst_48 {dimension_numbers = #tpu.dot_dimension_numbers<[1], [0], [0], [1], [0, 0, 1, 1], [], []>} : vector<8x32xf32>, vector<32x8xf32>, vector<8x8xf32> -> vector<8x8xf32>
    %c2_49 = arith.constant 2 : index
    %c0_50 = arith.constant 0 : index
    %c0_51 = arith.constant 0 : index
    %62 = vector.load %arg4[%c2_49, %c0_50, %c0_51] : memref<4x32x8xf32, #tpu.memory_space<vmem>>, vector<1x32x8xf32>
    %63 = vector.shape_cast %62 : vector<1x32x8xf32> to vector<32x8xf32>
    %cst_52 = arith.constant dense<0.000000e+00> : vector<8x8xf32>
    %64 = tpu.matmul %3, %63, %cst_52 {dimension_numbers = #tpu.dot_dimension_numbers<[1], [0], [0], [1], [0, 0, 1, 1], [], []>} : vector<8x32xf32>, vector<32x8xf32>, vector<8x8xf32> -> vector<8x8xf32>
    %c2_53 = arith.constant 2 : index
    %c0_54 = arith.constant 0 : index
    %c0_55 = arith.constant 0 : index
    %65 = vector.load %arg5[%c2_53, %c0_54, %c0_55] : memref<4x32x8xf32, #tpu.memory_space<vmem>>, vector<1x32x8xf32>
    %66 = vector.shape_cast %65 : vector<1x32x8xf32> to vector<32x8xf32>
    %cst_56 = arith.constant dense<0.000000e+00> : vector<8x8xf32>
    %67 = tpu.matmul %3, %66, %cst_56 {dimension_numbers = #tpu.dot_dimension_numbers<[1], [0], [0], [1], [0, 0, 1, 1], [], []>} : vector<8x32xf32>, vector<32x8xf32>, vector<8x8xf32> -> vector<8x8xf32>
    "tpu.trace_start"() <{level = 10 : i32, message = "qd,kd->qk"}> : () -> ()
    %cst_57 = arith.constant dense<0.000000e+00> : vector<8x8xf32>
    %68 = tpu.matmul %61, %64, %cst_57 {dimension_numbers = #tpu.dot_dimension_numbers<[1], [1], [0], [0], [0, 0, 1, 0], [], []>} : vector<8x8xf32>, vector<8x8xf32>, vector<8x8xf32> -> vector<8x8xf32>
    "tpu.trace_stop"() : () -> ()
    %cst_58 = arith.constant 0.353553385 : f32
    %69 = vector.broadcast %cst_58 : f32 to vector<8x8xf32>
    %70 = arith.mulf %68, %69 : vector<8x8xf32>
    %cst_59 = arith.constant dense<0xFF800000> : vector<8xf32>
    %71 = vector.multi_reduction <maximumf>, %70, %cst_59 [1] : vector<8x8xf32> to vector<8xf32>
    %72 = vector.shape_cast %71 : vector<8xf32> to vector<8x1xf32>
    %73 = vector.broadcast %72 : vector<8x1xf32> to vector<8x8xf32>
    %74 = arith.subf %70, %73 : vector<8x8xf32>
    %75 = math.exp %74 : vector<8x8xf32>
    %cst_60 = arith.constant dense<0.000000e+00> : vector<8xf32>
    %76 = vector.multi_reduction <add>, %75, %cst_60 [1] : vector<8x8xf32> to vector<8xf32>
    %77 = vector.shape_cast %76 : vector<8xf32> to vector<8x1xf32>
    %78 = tpu.reciprocal %77 {approx = true} : vector<8x1xf32> -> vector<8x1xf32>
    %79 = vector.broadcast %78 : vector<8x1xf32> to vector<8x8xf32>
    %80 = arith.mulf %75, %79 : vector<8x8xf32>
    %cst_61 = arith.constant dense<0.000000e+00> : vector<8x8xf32>
    %81 = tpu.matmul %80, %67, %cst_61 {dimension_numbers = #tpu.dot_dimension_numbers<[1], [0], [0], [1], [0, 0, 1, 1], [], []>} : vector<8x8xf32>, vector<8x8xf32>, vector<8x8xf32> -> vector<8x8xf32>
    %c2_62 = arith.constant 2 : index
    %c0_63 = arith.constant 0 : index
    %c0_64 = arith.constant 0 : index
    %82 = vector.load %arg6[%c2_62, %c0_63, %c0_64] : memref<4x8x32xf32, #tpu.memory_space<vmem>>, vector<1x8x32xf32>
    %83 = vector.shape_cast %82 : vector<1x8x32xf32> to vector<8x32xf32>
    %cst_65 = arith.constant dense<0.000000e+00> : vector<8x32xf32>
    %84 = tpu.matmul %81, %83, %cst_65 {dimension_numbers = #tpu.dot_dimension_numbers<[1], [0], [0], [1], [0, 0, 1, 1], [], []>} : vector<8x8xf32>, vector<8x32xf32>, vector<8x32xf32> -> vector<8x32xf32>
    %85 = arith.addf %58, %84 : vector<8x32xf32>
    %c3 = arith.constant 3 : index
    %c0_66 = arith.constant 0 : index
    %c0_67 = arith.constant 0 : index
    %86 = vector.load %arg3[%c3, %c0_66, %c0_67] : memref<4x32x8xf32, #tpu.memory_space<vmem>>, vector<1x32x8xf32>
    %87 = vector.shape_cast %86 : vector<1x32x8xf32> to vector<32x8xf32>
    %cst_68 = arith.constant dense<0.000000e+00> : vector<8x8xf32>
    %88 = tpu.matmul %1, %87, %cst_68 {dimension_numbers = #tpu.dot_dimension_numbers<[1], [0], [0], [1], [0, 0, 1, 1], [], []>} : vector<8x32xf32>, vector<32x8xf32>, vector<8x8xf32> -> vector<8x8xf32>
    %c3_69 = arith.constant 3 : index
    %c0_70 = arith.constant 0 : index
    %c0_71 = arith.constant 0 : index
    %89 = vector.load %arg4[%c3_69, %c0_70, %c0_71] : memref<4x32x8xf32, #tpu.memory_space<vmem>>, vector<1x32x8xf32>
    %90 = vector.shape_cast %89 : vector<1x32x8xf32> to vector<32x8xf32>
    %cst_72 = arith.constant dense<0.000000e+00> : vector<8x8xf32>
    %91 = tpu.matmul %3, %90, %cst_72 {dimension_numbers = #tpu.dot_dimension_numbers<[1], [0], [0], [1], [0, 0, 1, 1], [], []>} : vector<8x32xf32>, vector<32x8xf32>, vector<8x8xf32> -> vector<8x8xf32>
    %c3_73 = arith.constant 3 : index
    %c0_74 = arith.constant 0 : index
    %c0_75 = arith.constant 0 : index
    %92 = vector.load %arg5[%c3_73, %c0_74, %c0_75] : memref<4x32x8xf32, #tpu.memory_space<vmem>>, vector<1x32x8xf32>
    %93 = vector.shape_cast %92 : vector<1x32x8xf32> to vector<32x8xf32>
    %cst_76 = arith.constant dense<0.000000e+00> : vector<8x8xf32>
    %94 = tpu.matmul %3, %93, %cst_76 {dimension_numbers = #tpu.dot_dimension_numbers<[1], [0], [0], [1], [0, 0, 1, 1], [], []>} : vector<8x32xf32>, vector<32x8xf32>, vector<8x8xf32> -> vector<8x8xf32>
    "tpu.trace_start"() <{level = 10 : i32, message = "qd,kd->qk"}> : () -> ()
    %cst_77 = arith.constant dense<0.000000e+00> : vector<8x8xf32>
    %95 = tpu.matmul %88, %91, %cst_77 {dimension_numbers = #tpu.dot_dimension_numbers<[1], [1], [0], [0], [0, 0, 1, 0], [], []>} : vector<8x8xf32>, vector<8x8xf32>, vector<8x8xf32> -> vector<8x8xf32>
    "tpu.trace_stop"() : () -> ()
    %cst_78 = arith.constant 0.353553385 : f32
    %96 = vector.broadcast %cst_78 : f32 to vector<8x8xf32>
    %97 = arith.mulf %95, %96 : vector<8x8xf32>
    %cst_79 = arith.constant dense<0xFF800000> : vector<8xf32>
    %98 = vector.multi_reduction <maximumf>, %97, %cst_79 [1] : vector<8x8xf32> to vector<8xf32>
    %99 = vector.shape_cast %98 : vector<8xf32> to vector<8x1xf32>
    %100 = vector.broadcast %99 : vector<8x1xf32> to vector<8x8xf32>
    %101 = arith.subf %97, %100 : vector<8x8xf32>
    %102 = math.exp %101 : vector<8x8xf32>
    %cst_80 = arith.constant dense<0.000000e+00> : vector<8xf32>
    %103 = vector.multi_reduction <add>, %102, %cst_80 [1] : vector<8x8xf32> to vector<8xf32>
    %104 = vector.shape_cast %103 : vector<8xf32> to vector<8x1xf32>
    %105 = tpu.reciprocal %104 {approx = true} : vector<8x1xf32> -> vector<8x1xf32>
    %106 = vector.broadcast %105 : vector<8x1xf32> to vector<8x8xf32>
    %107 = arith.mulf %102, %106 : vector<8x8xf32>
    %cst_81 = arith.constant dense<0.000000e+00> : vector<8x8xf32>
    %108 = tpu.matmul %107, %94, %cst_81 {dimension_numbers = #tpu.dot_dimension_numbers<[1], [0], [0], [1], [0, 0, 1, 1], [], []>} : vector<8x8xf32>, vector<8x8xf32>, vector<8x8xf32> -> vector<8x8xf32>
    %c3_82 = arith.constant 3 : index
    %c0_83 = arith.constant 0 : index
    %c0_84 = arith.constant 0 : index
    %109 = vector.load %arg6[%c3_82, %c0_83, %c0_84] : memref<4x8x32xf32, #tpu.memory_space<vmem>>, vector<1x8x32xf32>
    %110 = vector.shape_cast %109 : vector<1x8x32xf32> to vector<8x32xf32>
    %cst_85 = arith.constant dense<0.000000e+00> : vector<8x32xf32>
    %111 = tpu.matmul %108, %110, %cst_85 {dimension_numbers = #tpu.dot_dimension_numbers<[1], [0], [0], [1], [0, 0, 1, 1], [], []>} : vector<8x8xf32>, vector<8x32xf32>, vector<8x32xf32> -> vector<8x32xf32>
    %112 = arith.addf %85, %111 : vector<8x32xf32>
    %113 = arith.addf %1, %112 : vector<8x32xf32>
    %cst_86 = arith.constant dense<0.000000e+00> : vector<8xf32>
    %114 = vector.multi_reduction <add>, %113, %cst_86 [1] : vector<8x32xf32> to vector<8xf32>
    %115 = vector.shape_cast %114 : vector<8xf32> to vector<8x1xf32>
    %cst_87 = arith.constant 3.200000e+01 : f32
    %116 = vector.broadcast %cst_87 : f32 to vector<8x1xf32>
    %117 = arith.divf %115, %116 : vector<8x1xf32>
    %118 = vector.broadcast %117 : vector<8x1xf32> to vector<8x32xf32>
    %119 = arith.subf %113, %118 : vector<8x32xf32>
    %120 = arith.mulf %119, %119 : vector<8x32xf32>
    %cst_88 = arith.constant dense<0.000000e+00> : vector<8xf32>
    %121 = vector.multi_reduction <add>, %120, %cst_88 [1] : vector<8x32xf32> to vector<8xf32>
    %122 = vector.shape_cast %121 : vector<8xf32> to vector<8x1xf32>
    %cst_89 = arith.constant 3.200000e+01 : f32
    %123 = vector.broadcast %cst_89 : f32 to vector<8x1xf32>
    %124 = arith.divf %122, %123 : vector<8x1xf32>
    %cst_90 = arith.constant 9.99999974E-6 : f32
    %125 = vector.broadcast %cst_90 : f32 to vector<8x1xf32>
    %126 = arith.addf %124, %125 : vector<8x1xf32>
    %127 = math.rsqrt %126 : vector<8x1xf32>
    %128 = vector.broadcast %127 : vector<8x1xf32> to vector<8x32xf32>
    %129 = arith.mulf %119, %128 : vector<8x32xf32>
    %c0_91 = arith.constant 0 : index
    %c0_92 = arith.constant 0 : index
    %130 = vector.load %arg7[%c0_91, %c0_92] : memref<32x64xf32, #tpu.memory_space<vmem>>, vector<32x64xf32>
    %cst_93 = arith.constant dense<0.000000e+00> : vector<8x64xf32>
    %131 = tpu.matmul %129, %130, %cst_93 {dimension_numbers = #tpu.dot_dimension_numbers<[1], [0], [0], [1], [0, 0, 1, 1], [], []>} : vector<8x32xf32>, vector<32x64xf32>, vector<8x64xf32> -> vector<8x64xf32>
    %c0_94 = arith.constant 0 : index
    %c0_95 = arith.constant 0 : index
    %132 = vector.load %arg8[%c0_94, %c0_95] : memref<1x64xf32, #tpu.memory_space<vmem>>, vector<1x64xf32>
    %133 = vector.broadcast %132 : vector<1x64xf32> to vector<8x64xf32>
    %134 = arith.addf %131, %133 : vector<8x64xf32>
    %cst_96 = arith.constant 0.000000e+00 : f32
    %135 = vector.broadcast %cst_96 : f32 to vector<8x64xf32>
    %136 = arith.maximumf %134, %135 : vector<8x64xf32>
    %c0_97 = arith.constant 0 : index
    %c0_98 = arith.constant 0 : index
    %137 = vector.load %arg9[%c0_97, %c0_98] : memref<64x32xf32, #tpu.memory_space<vmem>>, vector<64x32xf32>
    %cst_99 = arith.constant dense<0.000000e+00> : vector<8x32xf32>
    %138 = tpu.matmul %136, %137, %cst_99 {dimension_numbers = #tpu.dot_dimension_numbers<[1], [0], [0], [1], [0, 0, 1, 1], [], []>} : vector<8x64xf32>, vector<64x32xf32>, vector<8x32xf32> -> vector<8x32xf32>
    %c0_100 = arith.constant 0 : index
    %c0_101 = arith.constant 0 : index
    %139 = vector.load %arg10[%c0_100, %c0_101] : memref<1x32xf32, #tpu.memory_space<vmem>>, vector<1x32xf32>
    %140 = vector.broadcast %139 : vector<1x32xf32> to vector<8x32xf32>
    %141 = arith.addf %138, %140 : vector<8x32xf32>
    %142 = arith.addf %129, %141 : vector<8x32xf32>
    %cst_102 = arith.constant dense<0.000000e+00> : vector<8xf32>
    %143 = vector.multi_reduction <add>, %142, %cst_102 [1] : vector<8x32xf32> to vector<8xf32>
    %144 = vector.shape_cast %143 : vector<8xf32> to vector<8x1xf32>
    %cst_103 = arith.constant 3.200000e+01 : f32
    %145 = vector.broadcast %cst_103 : f32 to vector<8x1xf32>
    %146 = arith.divf %144, %145 : vector<8x1xf32>
    %147 = vector.broadcast %146 : vector<8x1xf32> to vector<8x32xf32>
    %148 = arith.subf %142, %147 : vector<8x32xf32>
    %149 = arith.mulf %148, %148 : vector<8x32xf32>
    %cst_104 = arith.constant dense<0.000000e+00> : vector<8xf32>
    %150 = vector.multi_reduction <add>, %149, %cst_104 [1] : vector<8x32xf32> to vector<8xf32>
    %151 = vector.shape_cast %150 : vector<8xf32> to vector<8x1xf32>
    %cst_105 = arith.constant 3.200000e+01 : f32
    %152 = vector.broadcast %cst_105 : f32 to vector<8x1xf32>
    %153 = arith.divf %151, %152 : vector<8x1xf32>
    %cst_106 = arith.constant 9.99999974E-6 : f32
    %154 = vector.broadcast %cst_106 : f32 to vector<8x1xf32>
    %155 = arith.addf %153, %154 : vector<8x1xf32>
    %156 = math.rsqrt %155 : vector<8x1xf32>
    %157 = vector.broadcast %156 : vector<8x1xf32> to vector<8x32xf32>
    %158 = arith.mulf %148, %157 : vector<8x32xf32>
    %c0_107 = arith.constant 0 : index
    %c0_108 = arith.constant 0 : index
    %c0_109 = arith.constant 0 : index
    %159 = vector.load %arg11[%c0_107, %c0_108, %c0_109] : memref<1x8x32xf32, #tpu.memory_space<vmem>>, vector<1x8x32xf32>
    %160 = vector.shape_cast %159 : vector<1x8x32xf32> to vector<8x32xf32>
    %161 = vector.shape_cast %158 : vector<8x32xf32> to vector<1x8x32xf32>
    tpu.vector_store %arg11[%c0_107, %c0_108, %c0_109], %161 {strides = array<i32>} : memref<1x8x32xf32, #tpu.memory_space<vmem>>, vector<1x8x32xf32>,
    return
  }
  func.func @transform_0(%arg0: i32) -> (i32, i32, i32) {
    %c0_i32 = arith.constant 0 : i32
    %c0_i32_0 = arith.constant 0 : i32
    %c0_i32_1 = arith.constant 0 : i32
    return %arg0, %c0_i32, %c0_i32_0 : i32, i32, i32
  }
  func.func @transform_1(%arg0: i32) -> (i32, i32, i32) {
    %c0_i32 = arith.constant 0 : i32
    %c0_i32_0 = arith.constant 0 : i32
    %c0_i32_1 = arith.constant 0 : i32
    return %arg0, %c0_i32, %c0_i32_0 : i32, i32, i32
  }
  func.func @transform_2(%arg0: i32) -> (i32, i32, i32) {
    %c0_i32 = arith.constant 0 : i32
    %c0_i32_0 = arith.constant 0 : i32
    %c0_i32_1 = arith.constant 0 : i32
    %c0_i32_2 = arith.constant 0 : i32
    return %c0_i32, %c0_i32_0, %c0_i32_1 : i32, i32, i32
  }
  func.func @transform_3(%arg0: i32) -> (i32, i32, i32) {
    %c0_i32 = arith.constant 0 : i32
    %c0_i32_0 = arith.constant 0 : i32
    %c0_i32_1 = arith.constant 0 : i32
    %c0_i32_2 = arith.constant 0 : i32
    return %c0_i32, %c0_i32_0, %c0_i32_1 : i32, i32, i32
  }
  func.func @transform_4(%arg0: i32) -> (i32, i32, i32) {
    %c0_i32 = arith.constant 0 : i32
    %c0_i32_0 = arith.constant 0 : i32
    %c0_i32_1 = arith.constant 0 : i32
    %c0_i32_2 = arith.constant 0 : i32
    return %c0_i32, %c0_i32_0, %c0_i32_1 : i32, i32, i32
  }
  func.func @transform_5(%arg0: i32) -> (i32, i32, i32) {
    %c0_i32 = arith.constant 0 : i32
    %c0_i32_0 = arith.constant 0 : i32
    %c0_i32_1 = arith.constant 0 : i32
    %c0_i32_2 = arith.constant 0 : i32
    return %c0_i32, %c0_i32_0, %c0_i32_1 : i32, i32, i32
  }
  func.func @transform_6(%arg0: i32) -> (i32, i32) {
    %c0_i32 = arith.constant 0 : i32
    %c0_i32_0 = arith.constant 0 : i32
    %c0_i32_1 = arith.constant 0 : i32
    return %c0_i32, %c0_i32_0 : i32, i32
  }
  func.func @transform_7(%arg0: i32) -> (i32, i32) {
    %c0_i32 = arith.constant 0 : i32
    %c0_i32_0 = arith.constant 0 : i32
    %c0_i32_1 = arith.constant 0 : i32
    return %c0_i32, %c0_i32_0 : i32, i32
  }
  func.func @transform_8(%arg0: i32) -> (i32, i32) {
    %c0_i32 = arith.constant 0 : i32
    %c0_i32_0 = arith.constant 0 : i32
    %c0_i32_1 = arith.constant 0 : i32
    return %c0_i32, %c0_i32_0 : i32, i32
  }
  func.func @transform_9(%arg0: i32) -> (i32, i32) {
    %c0_i32 = arith.constant 0 : i32
    %c0_i32_0 = arith.constant 0 : i32
    %c0_i32_1 = arith.constant 0 : i32
    return %c0_i32, %c0_i32_0 : i32, i32
  }
  func.func @transform_10(%arg0: i32) -> (i32, i32, i32) {
    %c0_i32 = arith.constant 0 : i32
    %c0_i32_0 = arith.constant 0 : i32
    %c0_i32_1 = arith.constant 0 : i32
    return %arg0, %c0_i32, %c0_i32_0 : i32, i32, i32
  }
}

module attributes {stable_mosaic.version = 11 : i64} {
  func.func @_proj_softmax_kernel(%arg0: memref<16x32xf32, #tpu.memory_space<vmem>>, %arg1: memref<32x4xf32, #tpu.memory_space<vmem>>, %arg2: memref<16x4xf32, #tpu.memory_space<vmem>>) attributes {dimension_semantics = [], scalar_prefetch = 0 : i64, scratch_operands = 0 : i64, tpu.core_type = #tpu.core_type<tc>} {
    %c0 = arith.constant 0 : index
    %c0_0 = arith.constant 0 : index
    %0 = vector.load %arg0[%c0, %c0_0] : memref<16x32xf32, #tpu.memory_space<vmem>>, vector<16x32xf32>
    %c0_1 = arith.constant 0 : index
    %c0_2 = arith.constant 0 : index
    %1 = vector.load %arg1[%c0_1, %c0_2] : memref<32x4xf32, #tpu.memory_space<vmem>>, vector<32x4xf32>
    %cst = arith.constant dense<0.000000e+00> : vector<16x4xf32>
    %2 = tpu.matmul %0, %1, %cst {dimension_numbers = #tpu.dot_dimension_numbers<[1], [0], [0], [1], [0, 0, 1, 1], [], []>} : vector<16x32xf32>, vector<32x4xf32>, vector<16x4xf32> -> vector<16x4xf32>
    %cst_3 = arith.constant dense<0xFF800000> : vector<16xf32>
    %3 = vector.multi_reduction <maximumf>, %2, %cst_3 [1] : vector<16x4xf32> to vector<16xf32>
    %4 = vector.shape_cast %3 : vector<16xf32> to vector<16x1xf32>
    %5 = vector.broadcast %4 : vector<16x1xf32> to vector<16x4xf32>
    %6 = arith.subf %2, %5 : vector<16x4xf32>
    %7 = math.exp %6 : vector<16x4xf32>
    %cst_4 = arith.constant dense<0.000000e+00> : vector<16xf32>
    %8 = vector.multi_reduction <add>, %7, %cst_4 [1] : vector<16x4xf32> to vector<16xf32>
    %9 = vector.shape_cast %8 : vector<16xf32> to vector<16x1xf32>
    %10 = vector.broadcast %9 : vector<16x1xf32> to vector<16x4xf32>
    %11 = arith.divf %7, %10 : vector<16x4xf32>
    %c0_5 = arith.constant 0 : index
    %c0_6 = arith.constant 0 : index
    %12 = vector.load %arg2[%c0_5, %c0_6] : memref<16x4xf32, #tpu.memory_space<vmem>>, vector<16x4xf32>
    tpu.vector_store %arg2[%c0_5, %c0_6], %11 {strides = array<i32>} : memref<16x4xf32, #tpu.memory_space<vmem>>, vector<16x4xf32>,
    return
  }
}

</mosaic_0001>

<bundles_post_ra>
// kernel: two_encoder_transformer_forward.10
= control target key start
LH: loop header
LB: loop body
LE: loop exit
PB: predicated region body
PF: predicated region fallthrough
CT: control target
= control target key end

     0   :  { %vm14_vm0 = vcmask 64512   ;;  %vm96_vm1 = vcmask 261120   ;;  %s143_s1 = inlined_call_operand.vmem [shape: f32[8,32], index: 1, kind: input, shape index: {}]   ;;  %s144_s0 = inlined_call_operand.vmem [shape: f32[16,8], index: 0, kind: input, shape index: {}]   ;;  %s145_s2 = inlined_call_operand.vmem [shape: f32[16,32], index: 2, kind: output, shape index: {}]  }
   0x1   :  { %v13_v0 = vld [vmem:[%s143_s1] sm:$0xff]  ;;  %v12_v2 = vld [vmem:[%s144_s0 + $0x8] sm:$0xff] }
   0x2   :  { %v11_v1 = vld [vmem:[%s144_s0] sm:$0xff]  ;;  %108 = vmatprep.subr.mxu0 %v13_v0 }
   0x3   :  { %110 = vmatprep.mubr.msk.f32.mxu0 %vm14_vm0, %v11_v1  ;;  %109 = vmatpush3.msra.mxu0 %v13_v0 }
   0x4   :  { %111 = vmatmul.mubr.msk.f32.vlgmr.msra.gmra.mrb[0].mxu0 %vm14_vm0, %v12_v2 }
  0xd7   :  { %v112_v3 = vpop.f32.mrb[0].mxu0 }
  0xd8   :  { %98 = vst.msk [vmem:[%s145_s2 + $0x8] sm:$0xff] %vm96_vm1, %v112_v3  ;;  %v87_v4 = vpop.f32.mrb[1].mxu0 }
  0xd9   :  { %97 = vst.msk [vmem:[%s145_s2] sm:$0xff] %vm96_vm1, %v87_v4 }

// kernel: two_encoder_transformer_forward.7
= control target key start
LH: loop header
LB: loop body
LE: loop exit
PB: predicated region body
PF: predicated region fallthrough
CT: control target
= control target key end

     0   :  { %vm22_vm0 = vcmask 1043456   ;;  %vm15_vm1 = vcmask 97280   ;;  %vm129_vm2 = vmmov 1   ;;  %vm101_vm4 = vcmask 261120   ;;  %s163_s1 = inlined_call_operand.vmem [shape: f32[12,32], index: 1, kind: input, shape index: {}]   ;;  %s164_s0 = inlined_call_operand.vmem [shape: f32[16,12], index: 0, kind: input, shape index: {}]   ;;  %s165_s2 = inlined_call_operand.vmem [shape: f32[16,32], index: 2, kind: output, shape index: {}]  }
   0x1   :  { %v13_v0 = vld [vmem:[%s163_s1] sm:$0xff]  ;;  %v14_v1 = vld [vmem:[%s163_s1 + $0x8] sm:$0xf]  ;;  %vm123_vm3 = vmpackc.low %vm22_vm0, %vm129_vm2 }
   0x2   :  { %v122_v2 = vpack.c.bf16 %v14_v1, %v13_v0  ;;  %v11_v3 = vld [vmem:[%s164_s0] sm:$0xff]  ;;  %v12_v4 = vld [vmem:[%s164_s0 + $0x8] sm:$0xff] }
   0x3   :  { %119 = vmatprep.mubr.msk.f32.mxu0 %vm15_vm1, %v11_v3 }
   0x4   :  { %124 = vmatprep.subr.msk.bf16.mxu0 %vm123_vm3, %v122_v2 }
   0x5   :  { %127 = vmatpush3.bf16.msk.msra.mxu0 %vm123_vm3, %v122_v2 }
   0x8   :  { %120 = vmatmul.mubr.msk.f32.vlgmr.msra.gmra.mrb[0].mxu0 %vm15_vm1, %v12_v4 }
  0xdb   :  { %v121_v5 = vpop.f32.mrb[0].mxu0 }
  0xdc   :  { %103 = vst.msk [vmem:[%s165_s2 + $0x8] sm:$0xff] %vm101_vm4, %v121_v5  ;;  %v92_v6 = vpop.f32.mrb[1].mxu0 }
  0xdd   :  { %102 = vst.msk [vmem:[%s165_s2] sm:$0xff] %vm101_vm4, %v92_v6 }

// kernel: two_encoder_transformer_forward.13
= control target key start
LH: loop header
LB: loop body
LE: loop exit
PB: predicated region body
PF: predicated region fallthrough
CT: control target
= control target key end

     0   :  { %vm17_vm0 = vcmask 261120   ;;  %vm99_vm1 = vcmask 31744   ;;  %s208_s1 = inlined_call_operand.vmem [shape: f32[32,4], index: 1, kind: input, shape index: {}]   ;;  %s209_s0 = inlined_call_operand.vmem [shape: f32[16,32], index: 0, kind: input, shape index: {}]   ;;  %s210_s2 = inlined_call_operand.vmem [shape: f32[16,4], index: 2, kind: output, shape index: {}]  }
   0x1   :  { %v13_v0 = vld [vmem:[%s208_s1] sm:$0xff]  ;;  %v14_v1 = vld [vmem:[%s208_s1 + $0x8] sm:$0xff]  ;;  %v15_v2 = vld [vmem:[%s208_s1 + $0x10] sm:$0xff] }
   0x2   :  { %v147_v3 = vpack.c.bf16 %v14_v1, %v13_v0  ;;  %v16_v4 = vld [vmem:[%s208_s1 + $0x18] sm:$0xff]  ;;  %v11_v5 = vld [vmem:[%s209_s0] sm:$0xff]  ;;  %v12_v7 = vld [vmem:[%s209_s0 + $0x8] sm:$0xff] }
   0x3   :  { %v151_v6 = vpack.c.bf16 %v16_v4, %v15_v2  ;;  %144 = vmatprep.mubr.msk.f32.mxu0 %vm17_vm0, %v11_v5 }
   0x4   :  { %148 = vmatprep.subr.bf16.mxu0 %v147_v3 }
   0x5   :  { %150 = vmatpush3.bf16.msra.mxu0 %v147_v3 }
   0x6   :  { %152 = vmatprep.subr.bf16.mxu0 %v151_v6 }
   0x9   :  { %154 = vmatpush3.bf16.msra.mxu0 %v151_v6 }
   0xc   :  { %145 = vmatmul.mubr.msk.f32.vlgmr.msra.gmra.mrb[0].mxu0 %vm17_vm0, %v12_v7 }
  0xdf   :  { %v146_v8 = vpop.f32.mrb[0].mxu0 }
  0xe0   :  { %v90_v9 = vpop.f32.mrb[1].mxu0  ;;  %v103_v11 = vsel %vm99_vm1, %v146_v8, -inf }
  0xe1   :  { %v100_v10 = vsel %vm99_vm1, %v90_v9, -inf }
  0xe2   :  { %101 = vmax.xlane.f32.xlu0 %v100_v10 }
  0xe6   :  { %104 = vmax.xlane.f32.xlu0 %v103_v11 }
 0x16f   :  { %v102_v12 = vpop.xlane.xlu0 %101 }
 0x170   :  { %v106_v13 = vsub.f32 %v90_v9, %v102_v12 }
 0x172   :  { %v108_v14 = vmul.f32 1.442695, %v106_v13 }
 0x173   :  { %v105_v15 = vpop.xlane.xlu0 %104 }
 0x174   :  { %155 = vpow2.f32 %v108_v14  ;;  %v107_v16 = vsub.f32 %v146_v8, %v105_v15 }
 0x176   :  { %v110_v17 = vmul.f32 1.442695, %v107_v16 }
 0x178   :  { %157 = vpow2.f32 %v110_v17 }
 0x17e   :  { %v156_v18 = vpop.eup %155 }
 0x17f   :  { %v112_v19 = vsel %vm99_vm1, %v156_v18, 0.0 }
 0x180   :  { %113 = vadd.xlane.f32.xlu1 %v112_v19 }
 0x182   :  { %v158_v20 = vpop.eup %157 }
 0x183   :  { %v115_v21 = vsel %vm99_vm1, %v158_v20, 0.0 }
 0x184   :  { %116 = vadd.xlane.f32.xlu1 %v115_v21 }
 0x20d   :  { %v114_v22 = vpop.xlane.xlu1 %113 }
 0x20e   :  { %159 = vrcp.f32 %v114_v22 }
 0x211   :  { %v117_v23 = vpop.xlane.xlu1 %116 }
 0x212   :  { %161 = vrcp.f32 %v117_v23 }
 0x218   :  { %v160_v24 = vpop.eup %159 }
 0x219   :  { %v119_v25 = vmul.f32 %v160_v24, %v156_v18 }
 0x21b   :  { %122 = vst.msk [vmem:[%s210_s2] sm:$0xff] %vm99_vm1, %v119_v25 }
 0x21c   :  { %v162_v26 = vpop.eup %161 }
 0x21d   :  { %v121_v27 = vmul.f32 %v162_v26, %v158_v20 }
 0x21f   :  { %123 = vst.msk [vmem:[%s210_s2 + $0x8] sm:$0xff] %vm99_vm1, %v121_v27 }

// kernel: two_encoder_transformer_forward.11
= control target key start
LH: loop header
LB: loop body
LE: loop exit
PB: predicated region body
PF: predicated region fallthrough
CT: control target
= control target key end

     0   :  { %s3081_s13 = smov 0   ;;  %s3460_s0 = inlined_call_operand.vmem [shape: f32[2,8,32], index: 0, kind: input, shape index: {}]   ;;  %s3461_s1 = inlined_call_operand.vmem [shape: f32[2,8,32], index: 1, kind: input, shape index: {}]   ;;  %s3462_s2 = inlined_call_operand.vmem [shape: f32[4,32,8], index: 2, kind: input, shape index: {}]   ;;  %s3463_s3 = inlined_call_operand.vmem [shape: f32[4,32,8], index: 3, kind: input, shape index: {}]   ;;  %s3464_s4 = inlined_call_operand.vmem [shape: f32[4,32,8], index: 4, kind: input, shape index: {}]   ;;  %s3465_s5 = inlined_call_operand.vmem [shape: f32[4,8,32], index: 5, kind: input, shape index: {}]   ;;  %s3466_s6 = inlined_call_operand.vmem [shape: f32[32,64], index: 6, kind: input, shape index: {}]   ;;  %s3467_s7 = inlined_call_operand.vmem [shape: f32[1,64], index: 7, kind: input, shape index: {}]   ;;  %s3468_s8 = inlined_call_operand.vmem [shape: f32[64,32], index: 8, kind: input, shape index: {}]   ;;  %s3469_s9 = inlined_call_operand.vmem [shape: f32[1,32], index: 9, kind: input, shape index: {}]   ;;  %s3470_s10 = inlined_call_operand.vmem [shape: f32[2,8,32], index: 10, kind: output, shape index: {}]  }
   0x1 LB: > { %s2493_s14 = sadd.s32 4294967295, %s3021_s13   ;;  %p2497_p0 = scmp.ge.s32.totalorder %s3021_s13, 1  ;;  %s3021_s13 = sphi %s3081_s13, %s20_s13  }
   0x2   : > { %p320_p1 = scmp.lt.s32.totalorder %s3021_s13, 3 }
   0x4   : > { %p321_p2 = pnand %p2497_p0, %p320_p1 }
   0x5   : > { %v452_v0 = vld [vmem:[%s3463_s3] sm:$0xff] (!%p321_p2)  ;;  %v453_v1 = vld [vmem:[%s3463_s3 + $0x8] sm:$0xff] (!%p321_p2)  ;;  %v3023_v3 = vmov (!%p321_p2), 0.0|0.0   ;;  %v454_v6 = vld [vmem:[%s3463_s3 + $0x10] sm:$0xff] (!%p321_p2)  ;;  %p360_p3 = scmp.lt.s32.totalorder (!%p321_p2), %s2493_s14, 1  ;;  %vm3024_vm0 = vmmov (!%p321_p2), 0  }
   0x6   : > { %324 = sbr.rel (%p321_p2) target bundleno = 4913 (0x1331), region = 60  ;;  %v374_v2 = vld [vmem:[%s3462_s2] sm:$0xff] (!%p321_p2)  ;;  %2900 = vmatprep.subr.bf16.mxu1 (!%p321_p2), %v3023_v3  ;;  %v2901_v4 = vpack.c.bf16 (!%p321_p2), %v453_v1, %v452_v0  ;;  %2894 = vmatprep.subr.bf16.mxu0 (!%p321_p2), %v3023_v3  ;;  %v375_v5 = vld [vmem:[%s3462_s2 + $0x8] sm:$0xff] (!%p321_p2)  ;;  %v455_v7 = vld [vmem:[%s3463_s3 + $0x18] sm:$0xff] (!%p321_p2)  ;;  %v3025_v11 = vmov (!%p321_p2), 0.0   ;;  %vm378_vm1 = vcmask (!%p321_p2), 261120  }
   0x7   : > { %v2895_v8 = vpack.c.bf16 (!%p321_p2), %v375_v5, %v374_v2  ;;  %v376_v9 = vld [vmem:[%s3462_s2 + $0x10] sm:$0xff] (!%p321_p2)  ;;  %v377_v10 = vld [vmem:[%s3462_s2 + $0x18] sm:$0xff] (!%p321_p2)  ;;  %2691 = vmatprep.mubr.msk.f32.mxu1 (!%p321_p2), %vm3024_vm0, %v3025_v11  ;;  %2680 = vmatprep.mubr.msk.f32.mxu0 (!%p321_p2), %vm3024_vm0, %v3025_v11  ;;  %v2904_v12 = vpack.c.bf16 (!%p321_p2), %v455_v7, %v454_v6  ;;  %v529_v14 = vld [vmem:[%s3464_s4] sm:$0xff] (!%p321_p2)  ;;  %vm603_vm2 = vcmask (!%p321_p2), 64512   ;;  %vm2339_vm3 = vcmask (!%p321_p2), 523264  }
   0x8   : > { %2902 = vmatpush3.bf16.msra.mxu1 (!%p321_p2), %v2901_v4  ;;  %v2898_v13 = vpack.c.bf16 (!%p321_p2), %v377_v10, %v376_v9  ;;  %v530_v15 = vld [vmem:[%s3464_s4 + $0x8] sm:$0xff] (!%p321_p2)  ;;  %v531_v19 = vld [vmem:[%s3464_s4 + $0x10] sm:$0xff] (!%p321_p2)  ;;  %v532_v20 = vld [vmem:[%s3464_s4 + $0x18] sm:$0xff] (!%p321_p2) }
   0x9   : > { %2896 = vmatpush3.bf16.msra.mxu0 (!%p321_p2), %v2895_v8  ;;  %2903 = vmatprep.subr.bf16.mxu1 (!%p321_p2), %v3023_v3  ;;  %v2907_v18 = vpack.c.bf16 (!%p321_p2), %v530_v15, %v529_v14  ;;  %v2910_v21 = vpack.c.bf16 (!%p321_p2), %v532_v20, %v531_v19  ;;  %v2507_v37 = vld [vmem:[%s3462_s2 + $0x20] sm:$0xff] (!%p321_p2)  ;;  %v2508_v38 = vld [vmem:[%s3462_s2 + $0x28] sm:$0xff] (!%p321_p2)  ;;  %v2509_v40 = vld [vmem:[%s3462_s2 + $0x30] sm:$0xff] (!%p321_p2) }
   0xa   : > { %2897 = vmatprep.subr.bf16.mxu0 (!%p321_p2), %v3023_v3  ;;  %v2913_v39 = vpack.c.bf16 (!%p321_p2), %v2508_v38, %v2507_v37  ;;  %v2510_v41 = vld [vmem:[%s3462_s2 + $0x38] sm:$0xff] (!%p321_p2)  ;;  %v2512_v44 = vld [vmem:[%s3463_s3 + $0x20] sm:$0xff] (!%p321_p2)  ;;  %v2513_v45 = vld [vmem:[%s3463_s3 + $0x28] sm:$0xff] (!%p321_p2) }
   0xb   : > { %v2916_v42 = vpack.c.bf16 (!%p321_p2), %v2510_v41, %v2509_v40  ;;  %v2919_v47 = vpack.c.bf16 (!%p321_p2), %v2513_v45, %v2512_v44  ;;  %v2514_v49 = vld [vmem:[%s3463_s3 + $0x30] sm:$0xff] (!%p321_p2)  ;;  %v2515_v50 = vld [vmem:[%s3463_s3 + $0x38] sm:$0xff] (!%p321_p2)  ;;  %v2517_v58 = vld [vmem:[%s3464_s4 + $0x20] sm:$0xff] (!%p321_p2) }
   0xc   : > { %2905 = vmatpush3.bf16.msra.mxu1 (!%p321_p2), %v2904_v12  ;;  %v2922_v51 = vpack.c.bf16 (!%p321_p2), %v2515_v50, %v2514_v49  ;;  %v2518_v59 = vld [vmem:[%s3464_s4 + $0x28] sm:$0xff] (!%p321_p2)  ;;  %v2519_v60 = vld [vmem:[%s3464_s4 + $0x30] sm:$0xff] (!%p321_p2)  ;;  %v2520_v62 = vld [vmem:[%s3464_s4 + $0x38] sm:$0xff] (!%p321_p2) }
   0xd   : > { %s3472_s14 = smov (!%p360_p3, %s2493_s14), 1  ;;  %2899 = vmatpush3.bf16.msra.mxu0 %v2898_v13  ;;  %2710 = vmatprep.subr.mxu1 %v3025_v11  ;;  %v2925_v61 = vpack.c.bf16 %v2518_v59, %v2517_v58  ;;  %v2928_v63 = vpack.c.bf16 %v2520_v62, %v2519_v60  ;;  %v2525_v13 = vld [vmem:[%s3465_s5 + $0x8] sm:$0xff]  ;;  %v765_v19 = vld [vmem:[%s3465_s5] sm:$0xff]  ;;  %v2540_v45 = vld [vmem:[%s3464_s4 + $0x50] sm:$0xff] }
   0xe   : > { %s3121_s11 = sshll.u32 %s3472_s14, 3  ;;  %2906 = vmatprep.subr.bf16.mxu0 %v3023_v3  ;;  %v2533_v20 = vld [vmem:[%s3463_s3 + $0x40] sm:$0xff]  ;;  %v2539_v44 = vld [vmem:[%s3464_s4 + $0x48] sm:$0xff]  ;;  %v2546_v60 = vld [vmem:[%s3465_s5 + $0x10] sm:$0xff] }
   0xf   : > { %s367_s20 = scalar_lea.vmem %s3461_s1, %s3121_s11  ;;  %s363_s23 = scalar_lea.vmem %s3460_s0, %s3121_s11 }
  0x10   : > { %v3137_v16 = vld [vmem:[%s367_s20] sm:$0xff]  ;;  %s371_s29 = scalar_lea.vmem %s3470_s10, %s3121_s11 }
  0x11   : > { %v3139_v17 = vld [vmem:[%s363_s23] sm:$0xff]  ;;  %2692 = vmatmul.mubr.msk.f32.vlgmr.msra.gmra.mrb[0].mxu1 %vm378_vm1, %v3137_v16 }
  0x12   : > { %2681 = vmatmul.mubr.msk.f32.vlgmr.msra.gmra.mrb[0].mxu0 %vm378_vm1, %v3139_v17  ;;  %2712 = vmatprep.mubr.msk.f32.mxu1 %vm3024_vm0, %v3025_v11 }
  0x13   : > { %2908 = vmatpush3.bf16.msra.mxu0 %v2907_v18  ;;  %2702 = vmatprep.mubr.msk.f32.mxu0 %vm3024_vm0, %v3025_v11 }
  0x14   : > { %2909 = vmatprep.subr.bf16.mxu0 %v3023_v3 }
  0x17   : > { %2911 = vmatpush3.bf16.msra.mxu0 %v2910_v21  ;;  %v2534_v21 = vld [vmem:[%s3463_s3 + $0x48] sm:$0xff] }
  0x18   : > { %2705 = vmatprep.subr.mxu0 %v3025_v11 }
  0x1a   : > { %2703 = vmatmul.mubr.msk.f32.vlgmr.msra.gmra.mrb[2].mxu0 %vm378_vm1, %v3137_v16 }
  0x1b   : > { %2707 = vmatprep.mubr.msk.f32.mxu0 %vm3024_vm0, %v3025_v11 }
  0xe4   : > { %v525_v22 = vpop.f32.mrb[0].mxu1 }
  0xe5   : > { %v2693_v23 = vpop.f32.mrb[1].mxu1  ;;  %2706 = vmatpush3.xpose.msk.msra.mxu0 %vm603_vm2, %v525_v22  ;;  %v448_v24 = vpop.f32.mrb[0].mxu0  ;;  %v2937_v22 = vpack.c.bf16 %v2534_v21, %v2533_v20 }
  0xe6   : > { %v2682_v25 = vpop.f32.mrb[1].mxu0  ;;  %2912 = vmatprep.subr.bf16.mxu0 %v3023_v3  ;;  %v2535_v23 = vld [vmem:[%s3463_s3 + $0x50] sm:$0xff] }
  0xe8   : > { %2708 = vmatmul.mubr.msk.f32.vlgmr.msra.gmra.mrb[4].mxu0 %vm603_vm2, %v448_v24  ;;  %v2536_v24 = vld [vmem:[%s3463_s3 + $0x58] sm:$0xff] }
  0xe9   : > { %2723 = vmatprep.mubr.msk.f32.mxu0 %vm3024_vm0, %v3025_v11  ;;  %2914 = vmatpush3.bf16.msra.mxu0 %v2913_v39  ;;  %v2940_v25 = vpack.c.bf16 %v2536_v24, %v2535_v23 }
  0xea   : > { %2915 = vmatprep.subr.bf16.mxu0 %v3023_v3 }
  0xed   : > { %v599_v26 = vpop.f32.mrb[2].mxu0  ;;  %2917 = vmatpush3.bf16.msra.mxu0 %v2916_v42 }
  0xee   : > { %v2704_v27 = vpop.f32.mrb[3].mxu0  ;;  %2711 = vmatpush3.msra.mxu1 %v599_v26  ;;  %2924 = vmatprep.subr.bf16.mxu0 %v3023_v3  ;;  %v2528_v26 = vld [vmem:[%s3462_s2 + $0x40] sm:$0xff] }
  0xef   : > { %2918 = vmatprep.subr.bf16.mxu1 %v3023_v3  ;;  %v2529_v27 = vld [vmem:[%s3462_s2 + $0x48] sm:$0xff] }
  0xf0   : > { %2724 = vmatmul.mubr.msk.f32.vlgmr.msra.gmra.mrb[6].mxu0 %vm378_vm1, %v3139_v17 }
  0xf1   : > { %2745 = vmatprep.mubr.msk.f32.mxu0 %vm3024_vm0, %v3025_v11  ;;  %2926 = vmatpush3.bf16.msra.mxu0 %v2925_v61 }
  0xf2   : > { %2927 = vmatprep.subr.bf16.mxu0 %v3023_v3 }
  0xf5   : > { %2929 = vmatpush3.bf16.msra.mxu0 %v2928_v63 }
  0xf6   : > { %2758 = vmatprep.subr.mxu0 %v3025_v11 }
  0xf8   : > { %2746 = vmatmul.mubr.msk.f32.vlgmr.msra.gmra.mrb[8].mxu0 %vm378_vm1, %v3137_v16 }
  0xf9   : > { %2760 = vmatprep.mubr.msk.f32.mxu0 %vm3024_vm0, %v3025_v11  ;;  %2759 = vmatpush3.msra.mxu0 %v2525_v13 }
  0xfa   : > { %2930 = vmatprep.subr.bf16.mxu0 %v3023_v3 }
 0x1bb   : > { %v676_v28 = vpop.f32.mrb[4].mxu0 }
 0x1bc   : > { %v680_v29 = vmul.f32 0.35355338, %v676_v28  ;;  %v2709_v30 = vpop.f32.mrb[5].mxu0  ;;  %v2931_v28 = vpack.c.bf16 %v2529_v27, %v2528_v26  ;;  %v2559_v26 = vld [vmem:[%s3464_s4 + $0x68] sm:$0xff]  ;;  %v2560_v27 = vld [vmem:[%s3464_s4 + $0x70] sm:$0xff] }
 0x1bd   : > { %v2531_v30 = vld [vmem:[%s3462_s2 + $0x58] sm:$0xff] }
 0x1be   : > { %v681_v31 = vsel %vm603_vm2, %v680_v29, -inf }
 0x1bf   : > { %682 = vmax.xlane.f32.xlu0 %v681_v31 }
 0x1c3   : > { %v837_v52 = vpop.f32.mrb[6].mxu0 }
 0x1c4   : > { %v2725_v53 = vpop.f32.mrb[7].mxu0 }
 0x1cb   : > { %v987_v10 = vpop.f32.mrb[8].mxu0 }
 0x1cc   : > { %v2747_v12 = vpop.f32.mrb[9].mxu0 }
 0x1cd   : > { %v2556_v12 = vld [vmem:[%s3463_s3 + $0x78] sm:$0xff] }
 0x24c   : > { %v683_v32 = vpop.xlane.xlu0 %682 }
 0x24d   : > { %v684_v33 = vsub.f32 %v680_v29, %v683_v32  ;;  %v2530_v29 = vld [vmem:[%s3462_s2 + $0x50] sm:$0xff] }
 0x24f   : > { %v685_v34 = vmul.f32 1.442695, %v684_v33  ;;  %v2934_v33 = vpack.c.bf16 %v2531_v30, %v2530_v29  ;;  %v2561_v29 = vld [vmem:[%s3464_s4 + $0x78] sm:$0xff] }
 0x250   : > { %v2964_v30 = vpack.c.bf16 %v2561_v29, %v2560_v27 }
 0x251   : > { %2995 = vpow2.f32 %v685_v34 }
 0x25b   : > { %v2996_v35 = vpop.eup %2995 }
 0x25c   : > { %v687_v36 = vsel %vm603_vm2, %v2996_v35, 0.0 }
 0x25d   : > { %688 = vadd.xlane.f32.xlu0 %v687_v36 }
 0x2ea   : > { %v689_v43 = vpop.xlane.xlu0 %688 }
 0x2eb   : > { %2997 = vrcp.f32 %v689_v43  ;;  %v2538_v43 = vld [vmem:[%s3464_s4 + $0x40] sm:$0xff] }
 0x2f5   : > { %v2998_v46 = vpop.eup %2997 }
 0x2f6   : > { %v691_v48 = vmul.f32 %v2998_v46, %v2996_v35  ;;  %v2943_v46 = vpack.c.bf16 %v2539_v44, %v2538_v43 }
 0x2f8   : > { %2713 = vmatmul.mubr.msk.f32.vlgmr.msra.gmra.mrb[2].mxu1 %vm603_vm2, %v691_v48 }
 0x2f9   : > { %2920 = vmatpush3.bf16.msra.mxu1 %v2919_v47  ;;  %2734 = vmatprep.mubr.msk.f32.mxu1 %vm3024_vm0, %v3025_v11  ;;  %v2541_v47 = vld [vmem:[%s3464_s4 + $0x58] sm:$0xff] }
 0x2fa   : > { %2921 = vmatprep.subr.bf16.mxu1 %v3023_v3  ;;  %v2946_v48 = vpack.c.bf16 %v2541_v47, %v2540_v45 }
 0x2fd   : > { %2923 = vmatpush3.bf16.msra.mxu1 %v2922_v51 }
 0x2fe   : > { %2748 = vmatprep.subr.mxu1 %v3025_v11 }
 0x300   : > { %2735 = vmatmul.mubr.msk.f32.vlgmr.msra.gmra.mrb[4].mxu1 %vm378_vm1, %v3137_v16 }
 0x301   : > { %2750 = vmatprep.mubr.msk.f32.mxu1 %vm3024_vm0, %v3025_v11 }
 0x3cb   : > { %v761_v54 = vpop.f32.mrb[2].mxu1 }
 0x3cc   : > { %v2714_v55 = vpop.f32.mrb[3].mxu1 }
 0x3d3   : > { %v912_v56 = vpop.f32.mrb[4].mxu1 }
 0x3d4   : > { %v2736_v57 = vpop.f32.mrb[5].mxu1  ;;  %2749 = vmatpush3.xpose.msk.msra.mxu1 %vm603_vm2, %v912_v56 }
 0x3d5   : > { %2753 = vmatprep.subr.mxu1 %v3025_v11 }
 0x3d7   : > { %2751 = vmatmul.mubr.msk.f32.vlgmr.msra.gmra.mrb[6].mxu1 %vm603_vm2, %v837_v52 }
 0x3d8   : > { %2755 = vmatprep.mubr.msk.f32.mxu1 %vm3024_vm0, %v3025_v11  ;;  %2754 = vmatpush3.msra.mxu1 %v987_v10  ;;  %v2555_v10 = vld [vmem:[%s3463_s3 + $0x70] sm:$0xff] }
 0x3d9   : > { %2763 = vmatprep.subr.mxu1 %v3025_v11 }
 0x4aa   : > { %v1063_v0 = vpop.f32.mrb[6].mxu1 }
 0x4ab   : > { %v1067_v1 = vmul.f32 0.35355338, %v1063_v0  ;;  %v2752_v2 = vpop.f32.mrb[7].mxu1  ;;  %v2548_v0 = vld [vmem:[%s3462_s2 + $0x60] sm:$0xff] }
 0x4ad   : > { %v1068_v4 = vsel %vm603_vm2, %v1067_v1, -inf }
 0x4ae   : > { %1069 = vmax.xlane.f32.xlu1 %v1068_v4  ;;  %v2550_v4 = vld [vmem:[%s3462_s2 + $0x70] sm:$0xff] }
 0x53b   : > { %v1070_v5 = vpop.xlane.xlu1 %1069 }
 0x53c   : > { %v1071_v6 = vsub.f32 %v1067_v1, %v1070_v5  ;;  %v2549_v1 = vld [vmem:[%s3462_s2 + $0x68] sm:$0xff]  ;;  %v2551_v5 = vld [vmem:[%s3462_s2 + $0x78] sm:$0xff] }
 0x53d   : > { %v2949_v2 = vpack.c.bf16 %v2549_v1, %v2548_v0  ;;  %v2327_v1 = vld [vmem:[%s3468_s8 + $0x18] sm:$0xff] }
 0x53e   : > { %v1072_v7 = vmul.f32 1.442695, %v1071_v6  ;;  %v2952_v6 = vpack.c.bf16 %v2551_v5, %v2550_v4  ;;  %v2328_v4 = vld [vmem:[%s3468_s8 + $0x20] sm:$0xff]  ;;  %v2329_v5 = vld [vmem:[%s3468_s8 + $0x28] sm:$0xff] }
 0x540   : > { %2999 = vpow2.f32 %v1072_v7  ;;  %v2553_v7 = vld [vmem:[%s3463_s3 + $0x60] sm:$0xff] }
 0x54a   : > { %v3000_v8 = vpop.eup %2999 }
 0x54b   : > { %v1074_v9 = vsel %vm603_vm2, %v3000_v8, 0.0 }
 0x54c   : > { %1075 = vadd.xlane.f32.xlu1 %v1074_v9 }
 0x5d9   : > { %v1076_v14 = vpop.xlane.xlu1 %1075 }
 0x5da   : > { %3001 = vrcp.f32 %v1076_v14 }
 0x5e4   : > { %v3002_v15 = vpop.eup %3001 }
 0x5e5   : > { %v1078_v18 = vmul.f32 %v3002_v15, %v3000_v8  ;;  %v2554_v8 = vld [vmem:[%s3463_s3 + $0x68] sm:$0xff]  ;;  %v2958_v15 = vpack.c.bf16 %v2556_v12, %v2555_v10 }
 0x5e6   : > { %v2955_v9 = vpack.c.bf16 %v2554_v8, %v2553_v7 }
 0x5e7   : > { %2756 = vmatmul.mubr.msk.f32.vlgmr.msra.gmra.mrb[8].mxu1 %vm603_vm2, %v1078_v18 }
 0x5e8   : > { %2764 = vmatpush3.msra.mxu1 %v765_v19  ;;  %2765 = vmatprep.mubr.msk.f32.mxu1 %vm3024_vm0, %v3025_v11 }
 0x5e9   : > { %2936 = vmatprep.subr.bf16.mxu1 %v3023_v3 }
 0x5eb   : > { %2766 = vmatmul.mubr.msk.f32.vlgmr.msra.gmra.mrb[10].mxu1 %vm603_vm2, %v761_v54 }
 0x5ec   : > { %2938 = vmatpush3.bf16.msra.mxu1 %v2937_v22  ;;  %2787 = vmatprep.mubr.msk.f32.mxu1 %vm3024_vm0, %v3025_v11 }
 0x5ed   : > { %2939 = vmatprep.subr.bf16.mxu1 %v3023_v3 }
 0x5f0   : > { %2941 = vmatpush3.bf16.msra.mxu1 %v2940_v25  ;;  %v2558_v25 = vld [vmem:[%s3464_s4 + $0x60] sm:$0xff] }
 0x5f1   : > { %2801 = vmatprep.subr.mxu1 %v3025_v11 }
 0x5f3   : > { %2788 = vmatmul.mubr.msk.f32.vlgmr.msra.gmra.mrb[12].mxu1 %vm378_vm1, %v3137_v16 }
 0x5f4   : > { %2803 = vmatprep.mubr.msk.f32.mxu1 %vm3024_vm0, %v3025_v11 }
 0x6ba   : > { %v1148_v31 = vpop.f32.mrb[8].mxu1 }
 0x6bb   : > { %v2757_v32 = vpop.f32.mrb[9].mxu1  ;;  %2761 = vmatmul.mubr.msk.f32.vlgmr.msra.gmra.mrb[10].mxu0 %vm603_vm2, %v1148_v31 }
 0x6bc   : > { %2932 = vmatpush3.bf16.msra.mxu0 %v2931_v28  ;;  %2776 = vmatprep.mubr.msk.f32.mxu0 %vm3024_vm0, %v3025_v11  ;;  %v2961_v28 = vpack.c.bf16 %v2559_v26, %v2558_v25 }
 0x6bd   : > { %2933 = vmatprep.subr.bf16.mxu0 %v3023_v3 }
 0x6be   : > { %v1296_v34 = vpop.f32.mrb[10].mxu1 }
 0x6bf   : > { %v2767_v35 = vpop.f32.mrb[11].mxu1 }
 0x6c0   : > { %2935 = vmatpush3.bf16.msra.mxu0 %v2934_v33 }
 0x6c1   : > { %2942 = vmatprep.subr.bf16.mxu0 %v3023_v3 }
 0x6c3   : > { %2777 = vmatmul.mubr.msk.f32.vlgmr.msra.gmra.mrb[12].mxu0 %vm378_vm1, %v3139_v17 }
 0x6c4   : > { %2798 = vmatprep.mubr.msk.f32.mxu0 %vm3024_vm0, %v3025_v11  ;;  %2944 = vmatpush3.bf16.msra.mxu0 %v2943_v46 }
 0x6c5   : > { %2945 = vmatprep.subr.bf16.mxu0 %v3023_v3 }
 0x6c6   : > { %v1446_v36 = vpop.f32.mrb[12].mxu1 }
 0x6c7   : > { %v2789_v37 = vpop.f32.mrb[13].mxu1  ;;  %2802 = vmatpush3.xpose.msk.msra.mxu1 %vm603_vm2, %v1446_v36 }
 0x6c8   : > { %2806 = vmatprep.subr.mxu1 %v3025_v11  ;;  %2947 = vmatpush3.bf16.msra.mxu0 %v2946_v48 }
 0x6c9   : > { %2811 = vmatprep.subr.mxu0 %v3025_v11 }
 0x6cb   : > { %2799 = vmatmul.mubr.msk.f32.vlgmr.msra.gmra.mrb[14].mxu0 %vm378_vm1, %v3137_v16 }
 0x6cc   : > { %2813 = vmatprep.mubr.msk.f32.mxu0 %vm3024_vm0, %v3025_v11  ;;  %2812 = vmatpush3.msra.mxu0 %v2546_v60 }
 0x6cd   : > { %2954 = vmatprep.subr.bf16.mxu0 %v3023_v3 }
 0x78e   : > { %v1223_v38 = vpop.f32.mrb[10].mxu0 }
 0x78f   : > { %v3291_v39 = vadd.f32 %v1296_v34, %v1223_v38  ;;  %v2762_v40 = vpop.f32.mrb[11].mxu0 }
 0x796   : > { %v1371_v41 = vpop.f32.mrb[12].mxu0 }
 0x797   : > { %v2778_v42 = vpop.f32.mrb[13].mxu0  ;;  %2804 = vmatmul.mubr.msk.f32.vlgmr.msra.gmra.mrb[14].mxu1 %vm603_vm2, %v1371_v41 }
 0x798   : > { %2808 = vmatprep.mubr.msk.f32.mxu1 %vm3024_vm0, %v3025_v11 }
 0x79e   : > { %v1521_v58 = vpop.f32.mrb[14].mxu0 }
 0x79f   : > { %v2800_v59 = vpop.f32.mrb[15].mxu0  ;;  %2807 = vmatpush3.msra.mxu1 %v1521_v58 }
 0x7a0   : > { %2948 = vmatprep.subr.bf16.mxu1 %v3023_v3  ;;  %v2242_v59 = vld [vmem:[%s3466_s6 + $0x18] sm:$0xff] }
 0x86a   : > { %v1597_v49 = vpop.f32.mrb[14].mxu1 }
 0x86b   : > { %v1601_v50 = vmul.f32 0.35355338, %v1597_v49  ;;  %v2805_v51 = vpop.f32.mrb[15].mxu1 }
 0x86d   : > { %v1602_v52 = vsel %vm603_vm2, %v1601_v50, -inf }
 0x86e   : > { %1603 = vmax.xlane.f32.xlu0 %v1602_v52 }
 0x8fb   : > { %v1604_v53 = vpop.xlane.xlu0 %1603 }
 0x8fc   : > { %v1605_v54 = vsub.f32 %v1601_v50, %v1604_v53 }
 0x8fe   : > { %v1606_v55 = vmul.f32 1.442695, %v1605_v54 }
 0x900   : > { %3003 = vpow2.f32 %v1606_v55 }
 0x90a   : > { %v3004_v56 = vpop.eup %3003 }
 0x90b   : > { %v1608_v57 = vsel %vm603_vm2, %v3004_v56, 0.0 }
 0x90c   : > { %1609 = vadd.xlane.f32.xlu1 %v1608_v57  ;;  %v2239_v57 = vld [vmem:[%s3466_s6] sm:$0xff] }
 0x999   : > { %v1610_v61 = vpop.xlane.xlu1 %1609 }
 0x99a   : > { %3005 = vrcp.f32 %v1610_v61  ;;  %v2324_v61 = vld [vmem:[%s3468_s8] sm:$0xff] }
 0x9a4   : > { %v3006_v62 = vpop.eup %3005 }
 0x9a5   : > { %v1612_v63 = vmul.f32 %v3006_v62, %v3004_v56  ;;  %v2325_v62 = vld [vmem:[%s3468_s8 + $0x8] sm:$0xff] }
 0x9a6   : > { %v2973_v0 = vpack.c.bf16 %v2325_v62, %v2324_v61 }
 0x9a7   : > { %2809 = vmatmul.mubr.msk.f32.vlgmr.msra.gmra.mrb[16].mxu1 %vm603_vm2, %v1612_v63  ;;  %v2326_v63 = vld [vmem:[%s3468_s8 + $0x10] sm:$0xff] }
 0x9a8   : > { %2824 = vmatprep.mubr.msk.f32.mxu1 %vm3024_vm0, %v3025_v11  ;;  %2950 = vmatpush3.bf16.msra.mxu1 %v2949_v2  ;;  %v2976_v2 = vpack.c.bf16 %v2327_v1, %v2326_v63 }
 0x9a9   : > { %2951 = vmatprep.subr.bf16.mxu1 %v3023_v3 }
 0x9ac   : > { %2953 = vmatpush3.bf16.msra.mxu1 %v2952_v6  ;;  %v2979_v6 = vpack.c.bf16 %v2329_v5, %v2328_v4 }
 0x9ad   : > { %2960 = vmatprep.subr.bf16.mxu1 %v3023_v3 }
 0x9af   : > { %2825 = vmatmul.mubr.msk.f32.vlgmr.msra.gmra.mrb[18].mxu1 %vm378_vm1, %v3139_v17 }
 0x9b0   : > { %2846 = vmatprep.mubr.msk.f32.mxu1 %vm3024_vm0, %v3025_v11  ;;  %2962 = vmatpush3.bf16.msra.mxu1 %v2961_v28 }
 0x9b1   : > { %2963 = vmatprep.subr.bf16.mxu1 %v3023_v3 }
 0x9b4   : > { %2965 = vmatpush3.bf16.msra.mxu1 %v2964_v30 }
 0x9b5   : > { %2859 = vmatprep.subr.mxu1 %v3025_v11 }
 0x9b7   : > { %2847 = vmatmul.mubr.msk.f32.vlgmr.msra.gmra.mrb[20].mxu1 %vm378_vm1, %v3137_v16 }
 0x9b8   : > { %2861 = vmatprep.mubr.msk.f32.mxu1 %vm3024_vm0, %v3025_v11 }
 0xa7a   : > { %v1682_v13 = vpop.f32.mrb[16].mxu1 }
 0xa7b   : > { %v2810_v14 = vpop.f32.mrb[17].mxu1  ;;  %2814 = vmatmul.mubr.msk.f32.vlgmr.msra.gmra.mrb[16].mxu0 %vm603_vm2, %v1682_v13  ;;  %v2330_v13 = vld [vmem:[%s3468_s8 + $0x30] sm:$0xff] }
 0xa7c   : > { %2956 = vmatpush3.bf16.msra.mxu0 %v2955_v9  ;;  %2835 = vmatprep.mubr.msk.f32.mxu0 %vm3024_vm0, %v3025_v11  ;;  %v2331_v14 = vld [vmem:[%s3468_s8 + $0x38] sm:$0xff] }
 0xa7d   : > { %2957 = vmatprep.subr.bf16.mxu0 %v3023_v3 }
 0xa80   : > { %2959 = vmatpush3.bf16.msra.mxu0 %v2958_v15  ;;  %v2982_v15 = vpack.c.bf16 %v2331_v14, %v2330_v13 }
 0xa81   : > { %2849 = vmatprep.subr.mxu0 %v3025_v11 }
 0xa82   : > { %v1833_v18 = vpop.f32.mrb[18].mxu1 }
 0xa83   : > { %2836 = vmatmul.mubr.msk.f32.vlgmr.msra.gmra.mrb[18].mxu0 %vm378_vm1, %v3137_v16  ;;  %v2826_v19 = vpop.f32.mrb[19].mxu1  ;;  %v2566_v16 = vld [vmem:[%s3465_s5 + $0x18] sm:$0xff] }
 0xa84   : > { %2851 = vmatprep.mubr.msk.f32.mxu0 %vm3024_vm0, %v3025_v11  ;;  %2860 = vmatpush3.msra.mxu1 %v2566_v16 }
 0xa85   : > { %2972 = vmatprep.subr.bf16.mxu1 %v3023_v3 }
 0xa8a   : > { %v1983_v40 = vpop.f32.mrb[20].mxu1 }
 0xa8b   : > { %v2848_v41 = vpop.f32.mrb[21].mxu1 }
 0xb4e   : > { %v1757_v20 = vpop.f32.mrb[16].mxu0 }
 0xb4f   : > { %v1761_v21 = vadd.f32 %v1757_v20, %v3291_v39  ;;  %v2815_v22 = vpop.f32.mrb[17].mxu0 }
 0xb50   : > { %v2570_v22 = vld [vmem:[%s3469_s9] ss:$0 sm:$0xff] }
 0xb56   : > { %v1908_v23 = vpop.f32.mrb[18].mxu0 }
 0xb57   : > { %v2837_v24 = vpop.f32.mrb[19].mxu0  ;;  %2850 = vmatpush3.xpose.msk.msra.mxu0 %vm603_vm2, %v1908_v23 }
 0xb58   : > { %2854 = vmatprep.subr.mxu0 %v3025_v11 }
 0xb5a   : > { %2852 = vmatmul.mubr.msk.f32.vlgmr.msra.gmra.mrb[20].mxu0 %vm603_vm2, %v1833_v18 }
 0xb5b   : > { %2856 = vmatprep.mubr.msk.f32.mxu0 %vm3024_vm0, %v3025_v11  ;;  %2855 = vmatpush3.msra.mxu0 %v1983_v40 }
 0xb5c   : > { %2966 = vmatprep.subr.bf16.mxu0 %v3023_v3 }
 0xc2d   : > { %v2059_v31 = vpop.f32.mrb[20].mxu0 }
 0xc2e   : > { %v2063_v32 = vmul.f32 0.35355338, %v2059_v31  ;;  %v2853_v33 = vpop.f32.mrb[21].mxu0 }
 0xc30   : > { %v2064_v34 = vsel %vm603_vm2, %v2063_v32, -inf }
 0xc31   : > { %2065 = vmax.xlane.f32.xlu0 %v2064_v34 }
 0xcbe   : > { %v2066_v35 = vpop.xlane.xlu0 %2065 }
 0xcbf   : > { %v2067_v36 = vsub.f32 %v2063_v32, %v2066_v35 }
 0xcc1   : > { %v2068_v37 = vmul.f32 1.442695, %v2067_v36 }
 0xcc3   : > { %3007 = vpow2.f32 %v2068_v37 }
 0xccd   : > { %v3008_v38 = vpop.eup %3007 }
 0xcce   : > { %v2070_v39 = vsel %vm603_vm2, %v3008_v38, 0.0 }
 0xccf   : > { %2071 = vadd.xlane.f32.xlu1 %v2070_v39 }
 0xd5c   : > { %v2072_v42 = vpop.xlane.xlu1 %2071 }
 0xd5d   : > { %3009 = vrcp.f32 %v2072_v42 }
 0xd67   : > { %v3010_v43 = vpop.eup %3009 }
 0xd68   : > { %v2074_v44 = vmul.f32 %v3010_v43, %v3008_v38 }
 0xd6a   : > { %2857 = vmatmul.mubr.msk.f32.vlgmr.msra.gmra.mrb[22].mxu0 %vm603_vm2, %v2074_v44 }
 0xd6b   : > { %2872 = vmatprep.mubr.msk.f32.mxu0 %vm3024_vm0, %v3025_v11 }
 0xe3d   : > { %v2144_v45 = vpop.f32.mrb[22].mxu0 }
 0xe3e   : > { %v2858_v46 = vpop.f32.mrb[23].mxu0  ;;  %2862 = vmatmul.mubr.msk.f32.vlgmr.msra.gmra.mrb[22].mxu1 %vm603_vm2, %v2144_v45 }
 0xe3f   : > { %2891 = vmatprep.mubr.msk.f32.mxu1 %vm3024_vm0, %v3025_v11  ;;  %v2240_v11 = vld [vmem:[%s3466_s6 + $0x8] sm:$0xff]  ;;  %2974 = vmatpush3.bf16.msra.mxu1 %v2973_v0 }
 0xe40   : > { %v2967_v58 = vpack.c.bf16 %v2240_v11, %v2239_v57  ;;  %2975 = vmatprep.subr.bf16.mxu1 %v3023_v3 }
 0xe42   : > { %2968 = vmatpush3.bf16.msra.mxu0 %v2967_v58 }
 0xe43   : > { %2969 = vmatprep.subr.bf16.mxu0 %v3023_v3  ;;  %2977 = vmatpush3.bf16.msra.mxu1 %v2976_v2 }
 0xe44   : > { %2978 = vmatprep.subr.bf16.mxu1 %v3023_v3 }
 0xe47   : > { %2980 = vmatpush3.bf16.msra.mxu1 %v2979_v6 }
 0xe48   : > { %2981 = vmatprep.subr.bf16.mxu1 %v3023_v3  ;;  %v2568_v3 = vld [vmem:[%s3467_s7] ss:$0 sm:$0xff] }
 0xe4b   : > { %2983 = vmatpush3.bf16.msra.mxu1 %v2982_v15 }
 0xf11   : > { %v2219_v47 = vpop.f32.mrb[22].mxu1 }
 0xf12   : > { %v2223_v48 = vadd.f32 %v2219_v47, %v1761_v21  ;;  %v2863_v49 = vpop.f32.mrb[23].mxu1 }
 0xf14   : > { %v2224_v50 = vadd.f32 %v2223_v48, %v3139_v17  ;;  %v2241_v17 = vld [vmem:[%s3466_s6 + $0x10] sm:$0xff] }
 0xf15   : > { %v2970_v60 = vpack.c.bf16 %v2242_v59, %v2241_v17 }
 0xf16   : > { %v2225_v51 = vsel %vm378_vm1, %v2224_v50, 0.0 }
 0xf17   : > { %2226 = vadd.xlane.f32.xlu0 %v2225_v51  ;;  %2971 = vmatpush3.bf16.msra.mxu0 %v2970_v60 }
 0xfa4   : > { %v2227_v52 = vpop.xlane.xlu0 %2226 }
 0xfa5   : > { %v2229_v53 = vmul.f32 0.03125, %v2227_v52 }
 0xfa7   : > { %v2230_v54 = vsub.f32 %v2224_v50, %v2229_v53 }
 0xfa9   : > { %v2231_v55 = vmul.f32 %v2230_v54, %v2230_v54 }
 0xfab   : > { %v2232_v56 = vsel %vm378_vm1, %v2231_v55, 0.0 }
 0xfac   : > { %2233 = vadd.xlane.f32.xlu1 %v2232_v56 }
0x1039   : > { %v2234_v7 = vpop.xlane.xlu1 %2233 }
0x103a   : > { %v2235_v8 = vmul.f32 0.03125, %v2234_v7 }
0x103c   : > { %v2236_v9 = vadd.f32 1e-05, %v2235_v8 }
0x103e   : > { %3011 = vrsqrt.f32 %v2236_v9 }
0x1048   : > { %v3012_v10 = vpop.eup %3011 }
0x1049   : > { %v2238_v12 = vmul.f32 %v3012_v10, %v2230_v54 }
0x104b   : > { %2873 = vmatmul.mubr.msk.f32.vlgmr.msra.gmra.mrb[24].mxu0 %vm378_vm1, %v2238_v12 }
0x111e   : > { %v2319_v18 = vpop.f32.mrb[24].mxu0 }
0x111f   : > { %v2320_v19 = vadd.f32 %v2568_v3, %v2319_v18  ;;  %v2874_v20 = vpop.f32.mrb[25].mxu0 }
0x1121   : > { %v2323_v21 = vmax.f32 %v2320_v19, 0.0 }
0x1123   : > { %2892 = vmatmul.mubr.msk.f32.vlgmr.msra.gmra.mrb[24].mxu1 %vm2339_vm3, %v2323_v21 }
0x11f6   : > { %v2409_v23 = vpop.f32.mrb[24].mxu1 }
0x11f7   : > { %v2410_v24 = vadd.f32 %v2570_v22, %v2409_v23  ;;  %v2893_v25 = vpop.f32.mrb[25].mxu1 }
0x11f9   : > { %v2413_v26 = vadd.f32 %v2410_v24, %v2238_v12 }
0x11fb   : > { %v2414_v27 = vsel %vm378_vm1, %v2413_v26, 0.0 }
0x11fc   : > { %2415 = vadd.xlane.f32.xlu0 %v2414_v27 }
0x1289   : > { %v2416_v28 = vpop.xlane.xlu0 %2415 }
0x128a   : > { %v2417_v29 = vmul.f32 0.03125, %v2416_v28 }
0x128c   : > { %v2418_v30 = vsub.f32 %v2413_v26, %v2417_v29 }
0x128e   : > { %v2419_v31 = vmul.f32 %v2418_v30, %v2418_v30 }
0x1290   : > { %v2420_v32 = vsel %vm378_vm1, %v2419_v31, 0.0 }
0x1291   : > { %2421 = vadd.xlane.f32.xlu1 %v2420_v32 }
0x131e   : > { %v2422_v33 = vpop.xlane.xlu1 %2421 }
0x131f   : > { %v2423_v34 = vmul.f32 0.03125, %v2422_v33 }
0x1321   : > { %v2424_v35 = vadd.f32 1e-05, %v2423_v34 }
0x1323   : > { %3013 = vrsqrt.f32 %v2424_v35 }
0x132d   : > { %v3014_v36 = vpop.eup %3013 }
0x132e   : > { %v2426_v37 = vmul.f32 %v3014_v36, %v2418_v30 }
0x1330   : > { %2427 = vst.msk [vmem:[%s371_s29] sm:$0xff] %vm378_vm1, %v2426_v37 }
0x1331 PF: > { %s20_s13 = sadd.s32 1, %s3021_s13  }
0x1332   : > { %p17_p4 = scmp.ge.s32.totalorder %s20_s13, 4  }
0x1334   :  { %19 = sbr.rel (!%p17_p4) target bundleno = 1 (0x1), region = 105 }

// kernel: two_encoder_transformer_forward.8
= control target key start
LH: loop header
LB: loop body
LE: loop exit
PB: predicated region body
PF: predicated region fallthrough
CT: control target
= control target key end

     0   :  { %s3975_s25 = smov 0   ;;  %s4521_s0 = inlined_call_operand.vmem [shape: f32[2,8,32], index: 0, kind: input, shape index: {}]   ;;  %s4522_s1 = inlined_call_operand.vmem [shape: f32[4,32,8], index: 1, kind: input, shape index: {}]   ;;  %s4523_s2 = inlined_call_operand.vmem [shape: f32[4,32,8], index: 2, kind: input, shape index: {}]   ;;  %s4524_s3 = inlined_call_operand.vmem [shape: f32[4,32,8], index: 3, kind: input, shape index: {}]   ;;  %s4525_s4 = inlined_call_operand.vmem [shape: f32[4,32,8], index: 4, kind: input, shape index: {}]   ;;  %s4526_s5 = inlined_call_operand.vmem [shape: f32[4,32,8], index: 5, kind: input, shape index: {}]   ;;  %s4527_s6 = inlined_call_operand.vmem [shape: f32[4,8,32], index: 6, kind: input, shape index: {}]   ;;  %s4528_s7 = inlined_call_operand.vmem [shape: f32[8,8], index: 7, kind: input, shape index: {}]   ;;  %s4529_s8 = inlined_call_operand.vmem [shape: f32[8,8], index: 8, kind: input, shape index: {}]   ;;  %s4530_s9 = inlined_call_operand.vmem [shape: f32[32,64], index: 9, kind: input, shape index: {}]   ;;  %s4531_s10 = inlined_call_operand.vmem [shape: f32[1,64], index: 10, kind: input, shape index: {}]   ;;  %s4532_s11 = inlined_call_operand.vmem [shape: f32[64,32], index: 11, kind: input, shape index: {}]   ;;  %s4533_s12 = inlined_call_operand.vmem [shape: f32[1,32], index: 12, kind: input, shape index: {}]   ;;  %s4534_s13 = inlined_call_operand.vmem [shape: f32[2,8,32], index: 13, kind: output, shape index: {}]  }
   0x1 LB: > { %s3165_s26 = sadd.s32 4294967295, %s3900_s25   ;;  %p3169_p0 = scmp.ge.s32.totalorder %s3900_s25, 1  ;;  %s3900_s25 = sphi %s3975_s25, %s23_s25  }
   0x2   : > { %p386_p1 = scmp.lt.s32.totalorder %s3900_s25, 3 }
   0x4   : > { %p387_p2 = pnand %p3169_p0, %p386_p1 }
   0x5   : > { %v439_v0 = vld [vmem:[%s4522_s1] sm:$0xff] (!%p387_p2)  ;;  %v440_v1 = vld [vmem:[%s4522_s1 + $0x8] sm:$0xff] (!%p387_p2)  ;;  %v3902_v3 = vmov (!%p387_p2), 0.0|0.0   ;;  %v441_v6 = vld [vmem:[%s4522_s1 + $0x10] sm:$0xff] (!%p387_p2)  ;;  %p428_p3 = scmp.lt.s32.totalorder (!%p387_p2), %s3165_s26, 1  ;;  %vm3903_vm0 = vmmov (!%p387_p2), 0  }
   0x6   : > { %390 = sbr.rel (%p387_p2) target bundleno = 4964 (0x1364), region = 72  ;;  %v518_v2 = vld [vmem:[%s4525_s4] sm:$0xff] (!%p387_p2)  ;;  %3725 = vmatprep.subr.bf16.mxu0 (!%p387_p2), %v3902_v3  ;;  %3731 = vmatprep.subr.bf16.mxu1 (!%p387_p2), %v3902_v3  ;;  %v3726_v4 = vpack.c.bf16 (!%p387_p2), %v440_v1, %v439_v0  ;;  %v519_v5 = vld [vmem:[%s4525_s4 + $0x8] sm:$0xff] (!%p387_p2)  ;;  %v442_v7 = vld [vmem:[%s4522_s1 + $0x18] sm:$0xff] (!%p387_p2)  ;;  %v3904_v11 = vmov (!%p387_p2), 0.0   ;;  %vm443_vm1 = vcmask (!%p387_p2), 261120  }
   0x7   : > { %v3732_v8 = vpack.c.bf16 (!%p387_p2), %v519_v5, %v518_v2  ;;  %v520_v9 = vld [vmem:[%s4525_s4 + $0x10] sm:$0xff] (!%p387_p2)  ;;  %v521_v10 = vld [vmem:[%s4525_s4 + $0x18] sm:$0xff] (!%p387_p2)  ;;  %3423 = vmatprep.mubr.msk.f32.mxu0 (!%p387_p2), %vm3903_vm0, %v3904_v11  ;;  %3434 = vmatprep.mubr.msk.f32.mxu1 (!%p387_p2), %vm3903_vm0, %v3904_v11  ;;  %v3729_v12 = vpack.c.bf16 (!%p387_p2), %v442_v7, %v441_v6  ;;  %v594_v14 = vld [vmem:[%s4523_s2] sm:$0xff] (!%p387_p2)  ;;  %vm819_vm2 = vcmask (!%p387_p2), 64512   ;;  %vm3023_vm3 = vcmask (!%p387_p2), 523264  }
   0x8   : > { %3727 = vmatpush3.bf16.msra.mxu0 (!%p387_p2), %v3726_v4  ;;  %v3735_v13 = vpack.c.bf16 (!%p387_p2), %v521_v10, %v520_v9  ;;  %v595_v15 = vld [vmem:[%s4523_s2 + $0x8] sm:$0xff] (!%p387_p2)  ;;  %v669_v16 = vld [vmem:[%s4526_s5] sm:$0xff] (!%p387_p2)  ;;  %v596_v21 = vld [vmem:[%s4523_s2 + $0x10] sm:$0xff] (!%p387_p2) }
   0x9   : > { %3733 = vmatpush3.bf16.msra.mxu1 (!%p387_p2), %v3732_v8  ;;  %3728 = vmatprep.subr.bf16.mxu0 (!%p387_p2), %v3902_v3  ;;  %v670_v17 = vld [vmem:[%s4526_s5 + $0x8] sm:$0xff] (!%p387_p2)  ;;  %v3738_v19 = vpack.c.bf16 (!%p387_p2), %v595_v15, %v594_v14  ;;  %v597_v22 = vld [vmem:[%s4523_s2 + $0x18] sm:$0xff] (!%p387_p2)  ;;  %v671_v23 = vld [vmem:[%s4526_s5 + $0x10] sm:$0xff] (!%p387_p2) }
   0xa   : > { %3734 = vmatprep.subr.bf16.mxu1 (!%p387_p2), %v3902_v3  ;;  %v3744_v20 = vpack.c.bf16 (!%p387_p2), %v670_v17, %v669_v16  ;;  %v672_v24 = vld [vmem:[%s4526_s5 + $0x18] sm:$0xff] (!%p387_p2)  ;;  %v3741_v25 = vpack.c.bf16 (!%p387_p2), %v597_v22, %v596_v21  ;;  %v745_v27 = vld [vmem:[%s4524_s3] sm:$0xff] (!%p387_p2)  ;;  %v746_v28 = vld [vmem:[%s4524_s3 + $0x8] sm:$0xff] (!%p387_p2) }
   0xb   : > { %v3747_v26 = vpack.c.bf16 (!%p387_p2), %v672_v24, %v671_v23  ;;  %v3750_v29 = vpack.c.bf16 (!%p387_p2), %v746_v28, %v745_v27  ;;  %v747_v30 = vld [vmem:[%s4524_s3 + $0x10] sm:$0xff] (!%p387_p2)  ;;  %v748_v31 = vld [vmem:[%s4524_s3 + $0x18] sm:$0xff] (!%p387_p2)  ;;  %v4092_v33 = vld [vmem:[%s4528_s7] sm:$0xff] (!%p387_p2) }
   0xc   : > { %3730 = vmatpush3.bf16.msra.mxu0 (!%p387_p2), %v3729_v12  ;;  %v3753_v32 = vpack.c.bf16 (!%p387_p2), %v748_v31, %v747_v30  ;;  %v4097_v34 = vld [vmem:[%s4529_s8] sm:$0xff] (!%p387_p2)  ;;  %v3181_v61 = vld [vmem:[%s4522_s1 + $0x28] sm:$0xff] (!%p387_p2)  ;;  %v3182_v63 = vld [vmem:[%s4522_s1 + $0x30] sm:$0xff] (!%p387_p2) }
   0xd   : > { %s4536_s26 = smov (!%p428_p3, %s3165_s26), 1  ;;  %3736 = vmatpush3.bf16.msra.mxu1 %v3735_v13  ;;  %3737 = vmatprep.subr.bf16.mxu0 %v3902_v3  ;;  %v3180_v60 = vld [vmem:[%s4522_s1 + $0x20] sm:$0xff]  ;;  %v3183_v0 = vld [vmem:[%s4522_s1 + $0x38] sm:$0xff]  ;;  %v3191_v4 = vld [vmem:[%s4523_s2 + $0x28] sm:$0xff] }
   0xe   : > { %s3170_s15 = sshll.u32 %s4536_s26, 3  ;;  %3743 = vmatprep.subr.bf16.mxu1 %v3902_v3  ;;  %v3756_v62 = vpack.c.bf16 %v3181_v61, %v3180_v60  ;;  %v3759_v1 = vpack.c.bf16 %v3183_v0, %v3182_v63  ;;  %v3190_v2 = vld [vmem:[%s4523_s2 + $0x20] sm:$0xff]  ;;  %v3192_v6 = vld [vmem:[%s4523_s2 + $0x30] sm:$0xff]  ;;  %v3193_v7 = vld [vmem:[%s4523_s2 + $0x38] sm:$0xff] }
   0xf   : > { %s431_s22 = scalar_lea.vmem %s4521_s0, %s3170_s15  ;;  %v3768_v5 = vpack.c.bf16 %v3191_v4, %v3190_v2  ;;  %v3771_v8 = vpack.c.bf16 %v3193_v7, %v3192_v6  ;;  %v3185_v10 = vld [vmem:[%s4525_s4 + $0x20] sm:$0xff]  ;;  %v3186_v12 = vld [vmem:[%s4525_s4 + $0x28] sm:$0xff]  ;;  %v3187_v16 = vld [vmem:[%s4525_s4 + $0x30] sm:$0xff]  ;;  %s435_s19 = scalar_lea.vmem %s4534_s13, %s3170_s15 }
  0x10   : > { %v4035_v18 = vld [vmem:[%s431_s22] sm:$0xff]  ;;  %v3762_v14 = vpack.c.bf16 %v3186_v12, %v3185_v10  ;;  %v3188_v17 = vld [vmem:[%s4525_s4 + $0x38] sm:$0xff]  ;;  %v3196_v21 = vld [vmem:[%s4526_s5 + $0x28] sm:$0xff] }
  0x11   : > { %3424 = vmatmul.mubr.msk.f32.vlgmr.msra.gmra.mrb[0].mxu0 %vm443_vm1, %v4035_v18  ;;  %3435 = vmatmul.mubr.msk.f32.vlgmr.msra.gmra.mrb[0].mxu1 %vm443_vm1, %v4035_v18  ;;  %v3197_v23 = vld [vmem:[%s4526_s5 + $0x30] sm:$0xff]  ;;  %v3198_v24 = vld [vmem:[%s4526_s5 + $0x38] sm:$0xff]  ;;  %v3208_v61 = vld [vmem:[%s4527_s6 + $0x8] sm:$0xff] }
  0x12   : > { %3739 = vmatpush3.bf16.msra.mxu0 %v3738_v19  ;;  %3745 = vmatpush3.bf16.msra.mxu1 %v3744_v20  ;;  %v3765_v19 = vpack.c.bf16 %v3188_v17, %v3187_v16  ;;  %v3195_v20 = vld [vmem:[%s4526_s5 + $0x20] sm:$0xff]  ;;  %v3217_v4 = vld [vmem:[%s4525_s4 + $0x48] sm:$0xff]  ;;  %v3218_v6 = vld [vmem:[%s4525_s4 + $0x50] sm:$0xff] }
  0x13   : > { %3740 = vmatprep.subr.bf16.mxu0 %v3902_v3  ;;  %3746 = vmatprep.subr.bf16.mxu1 %v3902_v3  ;;  %v3774_v22 = vpack.c.bf16 %v3196_v21, %v3195_v20  ;;  %v3216_v2 = vld [vmem:[%s4525_s4 + $0x40] sm:$0xff]  ;;  %v3219_v7 = vld [vmem:[%s4525_s4 + $0x58] sm:$0xff]  ;;  %v3227_v10 = vld [vmem:[%s4526_s5 + $0x48] sm:$0xff] }
  0x14   : > { %3445 = vmatprep.mubr.msk.f32.mxu0 %vm3903_vm0, %v3904_v11  ;;  %3456 = vmatprep.mubr.msk.f32.mxu1 %vm3903_vm0, %v3904_v11  ;;  %v3211_v16 = vld [vmem:[%s4522_s1 + $0x40] sm:$0xff]  ;;  %v3212_v17 = vld [vmem:[%s4522_s1 + $0x48] sm:$0xff]  ;;  %v3213_v20 = vld [vmem:[%s4522_s1 + $0x50] sm:$0xff] }
  0x15   : > { %v3214_v21 = vld [vmem:[%s4522_s1 + $0x58] sm:$0xff] }
  0x16   : > { %3742 = vmatpush3.bf16.msra.mxu0 %v3741_v25  ;;  %3748 = vmatpush3.bf16.msra.mxu1 %v3747_v26  ;;  %v3777_v25 = vpack.c.bf16 %v3198_v24, %v3197_v23  ;;  %v3789_v24 = vpack.c.bf16 %v3214_v21, %v3213_v20  ;;  %v3253_v21 = vld [vmem:[%s4523_s2 + $0x70] sm:$0xff] }
  0x17   : > { %3749 = vmatprep.subr.bf16.mxu0 %v3902_v3  ;;  %3475 = vmatprep.subr.mxu1 %v3904_v11 }
  0x19   : > { %3446 = vmatmul.mubr.msk.f32.vlgmr.msra.gmra.mrb[2].mxu0 %vm443_vm1, %v4035_v18  ;;  %3457 = vmatmul.mubr.msk.f32.vlgmr.msra.gmra.mrb[2].mxu1 %vm443_vm1, %v4035_v18 }
  0x1a   : > { %3467 = vmatprep.mubr.msk.f32.mxu0 %vm3903_vm0, %v3904_v11  ;;  %3477 = vmatprep.mubr.msk.f32.mxu1 %vm3903_vm0, %v3904_v11 }
  0x1b   : > { %3751 = vmatpush3.bf16.msra.mxu0 %v3750_v29 }
  0x1c   : > { %3752 = vmatprep.subr.bf16.mxu0 %v3902_v3 }
  0x1f   : > { %3754 = vmatpush3.bf16.msra.mxu0 %v3753_v32 }
  0x20   : > { %3470 = vmatprep.subr.mxu0 %v3904_v11 }
  0x22   : > { %3468 = vmatmul.mubr.msk.f32.vlgmr.msra.gmra.mrb[4].mxu0 %vm443_vm1, %v4035_v18 }
  0x23   : > { %3472 = vmatprep.mubr.msk.f32.mxu0 %vm3903_vm0, %v3904_v11 }
  0xe4   : > { %v513_v35 = vpop.f32.mrb[0].mxu0  ;;  %v588_v37 = vpop.f32.mrb[0].mxu1 }
  0xe5   : > { %v517_v36 = vmul.f32 %v513_v35, %v4092_v33  ;;  %v3425_v38 = vpop.f32.mrb[1].mxu0  ;;  %v592_v39 = vmul.f32 %v588_v37, %v4097_v34  ;;  %v3436_v40 = vpop.f32.mrb[1].mxu1 }
  0xe7   : > { %v593_v41 = vadd.f32 %v592_v39, %v517_v36 }
  0xec   : > { %v664_v42 = vpop.f32.mrb[2].mxu0  ;;  %v739_v44 = vpop.f32.mrb[2].mxu1 }
  0xed   : > { %v668_v43 = vmul.f32 %v664_v42, %v4092_v33  ;;  %v3447_v45 = vpop.f32.mrb[3].mxu0  ;;  %v743_v46 = vmul.f32 %v739_v44, %v4097_v34  ;;  %v3458_v47 = vpop.f32.mrb[3].mxu1  ;;  %v3200_v44 = vld [vmem:[%s4524_s3 + $0x20] sm:$0xff] }
  0xee   : > { %v3201_v45 = vld [vmem:[%s4524_s3 + $0x28] sm:$0xff] }
  0xef   : > { %v744_v48 = vadd.f32 %v743_v46, %v668_v43  ;;  %v3202_v46 = vld [vmem:[%s4524_s3 + $0x30] sm:$0xff]  ;;  %v3780_v47 = vpack.c.bf16 %v3201_v45, %v3200_v44 }
  0xf1   : > { %3471 = vmatpush3.xpose.msk.msra.mxu0 %vm819_vm2, %v744_v48  ;;  %v3203_v48 = vld [vmem:[%s4524_s3 + $0x38] sm:$0xff] }
  0xf2   : > { %3755 = vmatprep.subr.bf16.mxu0 %v3902_v3 }
  0xf4   : > { %3473 = vmatmul.mubr.msk.f32.vlgmr.msra.gmra.mrb[6].mxu0 %vm819_vm2, %v593_v41 }
  0xf5   : > { %3488 = vmatprep.mubr.msk.f32.mxu0 %vm3903_vm0, %v3904_v11  ;;  %v815_v49 = vpop.f32.mrb[4].mxu0  ;;  %3757 = vmatpush3.bf16.msra.mxu0 %v3756_v62 }
  0xf6   : > { %v3469_v50 = vpop.f32.mrb[5].mxu0  ;;  %3476 = vmatpush3.msra.mxu1 %v815_v49  ;;  %3758 = vmatprep.subr.bf16.mxu0 %v3902_v3  ;;  %v3783_v49 = vpack.c.bf16 %v3203_v48, %v3202_v46 }
  0xf7   : > { %3761 = vmatprep.subr.bf16.mxu1 %v3902_v3 }
  0xf9   : > { %3760 = vmatpush3.bf16.msra.mxu0 %v3759_v1  ;;  %v981_v1 = vld [vmem:[%s4527_s6] sm:$0xff] }
  0xfa   : > { %3767 = vmatprep.subr.bf16.mxu0 %v3902_v3 }
  0xfc   : > { %3489 = vmatmul.mubr.msk.f32.vlgmr.msra.gmra.mrb[8].mxu0 %vm443_vm1, %v4035_v18 }
  0xfd   : > { %3769 = vmatpush3.bf16.msra.mxu0 %v3768_v5  ;;  %3510 = vmatprep.mubr.msk.f32.mxu0 %vm3903_vm0, %v3904_v11  ;;  %v3792_v5 = vpack.c.bf16 %v3217_v4, %v3216_v2 }
  0xfe   : > { %3770 = vmatprep.subr.bf16.mxu0 %v3902_v3 }
 0x101   : > { %3772 = vmatpush3.bf16.msra.mxu0 %v3771_v8  ;;  %v3795_v8 = vpack.c.bf16 %v3219_v7, %v3218_v6  ;;  %v3239_v6 = vld [vmem:[%s4527_s6 + $0x10] sm:$0xff] }
 0x102   : > { %3779 = vmatprep.subr.bf16.mxu0 %v3902_v3 }
 0x104   : > { %3511 = vmatmul.mubr.msk.f32.vlgmr.msra.gmra.mrb[10].mxu0 %vm443_vm1, %v4035_v18 }
 0x105   : > { %3532 = vmatprep.mubr.msk.f32.mxu0 %vm3903_vm0, %v3904_v11  ;;  %3781 = vmatpush3.bf16.msra.mxu0 %v3780_v47 }
 0x106   : > { %3782 = vmatprep.subr.bf16.mxu0 %v3902_v3 }
 0x109   : > { %3784 = vmatpush3.bf16.msra.mxu0 %v3783_v49 }
 0x10a   : > { %3545 = vmatprep.subr.mxu0 %v3904_v11 }
 0x10c   : > { %3533 = vmatmul.mubr.msk.f32.vlgmr.msra.gmra.mrb[12].mxu0 %vm443_vm1, %v4035_v18 }
 0x10d   : > { %3547 = vmatprep.mubr.msk.f32.mxu0 %vm3903_vm0, %v3904_v11  ;;  %3546 = vmatpush3.msra.mxu0 %v3208_v61 }
 0x10e   : > { %3785 = vmatprep.subr.bf16.mxu0 %v3902_v3 }
 0x1c7   : > { %v892_v51 = vpop.f32.mrb[6].mxu0 }
 0x1c8   : > { %v896_v52 = vmul.f32 0.35355338, %v892_v51  ;;  %v3474_v53 = vpop.f32.mrb[7].mxu0 }
 0x1ca   : > { %v897_v54 = vsel %vm819_vm2, %v896_v52, -inf }
 0x1cb   : > { %898 = vmax.xlane.f32.xlu0 %v897_v54 }
 0x1cf   : > { %v1053_v26 = vpop.f32.mrb[8].mxu0 }
 0x1d0   : > { %v3490_v27 = vpop.f32.mrb[9].mxu0  ;;  %v1057_v32 = vmul.f32 %v1053_v26, %v4092_v33  ;;  %v3222_v26 = vld [vmem:[%s4523_s2 + $0x48] sm:$0xff] }
 0x1d7   : > { %v1206_v28 = vpop.f32.mrb[10].mxu0 }
 0x1d8   : > { %v3512_v29 = vpop.f32.mrb[11].mxu0  ;;  %v1210_v39 = vmul.f32 %v1206_v28, %v4092_v33 }
 0x258   : > { %v899_v55 = vpop.xlane.xlu0 %898 }
 0x259   : > { %v900_v56 = vsub.f32 %v896_v52, %v899_v55 }
 0x25b   : > { %v901_v57 = vmul.f32 1.442695, %v900_v56 }
 0x25d   : > { %3874 = vpow2.f32 %v901_v57 }
 0x267   : > { %v3875_v58 = vpop.eup %3874 }
 0x268   : > { %v903_v59 = vsel %vm819_vm2, %v3875_v58, 0.0 }
 0x269   : > { %904 = vadd.xlane.f32.xlu0 %v903_v59  ;;  %v1359_v59 = vpop.f32.mrb[12].mxu0 }
 0x26a   : > { %v3534_v60 = vpop.f32.mrb[13].mxu0 }
 0x2f6   : > { %v905_v9 = vpop.xlane.xlu0 %904 }
 0x2f7   : > { %3876 = vrcp.f32 %v905_v9  ;;  %v3226_v9 = vld [vmem:[%s4526_s5 + $0x40] sm:$0xff] }
 0x2f8   : > { %v3804_v12 = vpack.c.bf16 %v3227_v10, %v3226_v9  ;;  %v3241_v10 = vld [vmem:[%s4522_s1 + $0x60] sm:$0xff] }
 0x301   : > { %v3877_v13 = vpop.eup %3876 }
 0x302   : > { %v907_v15 = vmul.f32 %v3877_v13, %v3875_v58  ;;  %v3228_v13 = vld [vmem:[%s4526_s5 + $0x50] sm:$0xff] }
 0x304   : > { %3478 = vmatmul.mubr.msk.f32.vlgmr.msra.gmra.mrb[4].mxu1 %vm819_vm2, %v907_v15 }
 0x305   : > { %3763 = vmatpush3.bf16.msra.mxu1 %v3762_v14  ;;  %3499 = vmatprep.mubr.msk.f32.mxu1 %vm3903_vm0, %v3904_v11  ;;  %v3229_v14 = vld [vmem:[%s4526_s5 + $0x58] sm:$0xff] }
 0x306   : > { %3764 = vmatprep.subr.bf16.mxu1 %v3902_v3  ;;  %v3807_v15 = vpack.c.bf16 %v3229_v14, %v3228_v13  ;;  %v3243_v14 = vld [vmem:[%s4522_s1 + $0x70] sm:$0xff] }
 0x309   : > { %3766 = vmatpush3.bf16.msra.mxu1 %v3765_v19  ;;  %v3786_v19 = vpack.c.bf16 %v3212_v17, %v3211_v16  ;;  %v3251_v17 = vld [vmem:[%s4523_s2 + $0x60] sm:$0xff] }
 0x30a   : > { %3773 = vmatprep.subr.bf16.mxu1 %v3902_v3 }
 0x30c   : > { %3500 = vmatmul.mubr.msk.f32.vlgmr.msra.gmra.mrb[6].mxu1 %vm443_vm1, %v4035_v18 }
 0x30d   : > { %3775 = vmatpush3.bf16.msra.mxu1 %v3774_v22  ;;  %3521 = vmatprep.mubr.msk.f32.mxu1 %vm3903_vm0, %v3904_v11 }
 0x30e   : > { %3776 = vmatprep.subr.bf16.mxu1 %v3902_v3 }
 0x311   : > { %3778 = vmatpush3.bf16.msra.mxu1 %v3777_v25  ;;  %v3221_v25 = vld [vmem:[%s4523_s2 + $0x40] sm:$0xff] }
 0x312   : > { %3535 = vmatprep.subr.mxu1 %v3904_v11  ;;  %v3798_v29 = vpack.c.bf16 %v3222_v26, %v3221_v25  ;;  %v3247_v25 = vld [vmem:[%s4525_s4 + $0x68] sm:$0xff] }
 0x314   : > { %3522 = vmatmul.mubr.msk.f32.vlgmr.msra.gmra.mrb[8].mxu1 %vm443_vm1, %v4035_v18 }
 0x315   : > { %3537 = vmatprep.mubr.msk.f32.mxu1 %vm3903_vm0, %v3904_v11 }
 0x3d7   : > { %v977_v30 = vpop.f32.mrb[4].mxu1 }
 0x3d8   : > { %v3479_v31 = vpop.f32.mrb[5].mxu1 }
 0x3d9   : > { %v3224_v31 = vld [vmem:[%s4523_s2 + $0x58] sm:$0xff] }
 0x3df   : > { %v1129_v35 = vpop.f32.mrb[6].mxu1 }
 0x3e0   : > { %v1133_v36 = vmul.f32 %v1129_v35, %v4097_v34  ;;  %v3501_v37 = vpop.f32.mrb[7].mxu1 }
 0x3e2   : > { %v1134_v38 = vadd.f32 %v1133_v36, %v1057_v32 }
 0x3e7   : > { %v1282_v40 = vpop.f32.mrb[8].mxu1 }
 0x3e8   : > { %v1286_v41 = vmul.f32 %v1282_v40, %v4097_v34  ;;  %v3523_v42 = vpop.f32.mrb[9].mxu1 }
 0x3ea   : > { %v1287_v43 = vadd.f32 %v1286_v41, %v1210_v39 }
 0x3ec   : > { %3536 = vmatpush3.xpose.msk.msra.mxu1 %vm819_vm2, %v1287_v43 }
 0x3ed   : > { %3540 = vmatprep.subr.mxu1 %v3904_v11 }
 0x3ef   : > { %3538 = vmatmul.mubr.msk.f32.vlgmr.msra.gmra.mrb[10].mxu1 %vm819_vm2, %v1134_v38 }
 0x3f0   : > { %3542 = vmatprep.mubr.msk.f32.mxu1 %vm3903_vm0, %v3904_v11  ;;  %3541 = vmatpush3.msra.mxu1 %v1359_v59 }
 0x3f1   : > { %3550 = vmatprep.subr.mxu1 %v3904_v11 }
 0x4c2   : > { %v1435_v50 = vpop.f32.mrb[10].mxu1 }
 0x4c3   : > { %v1439_v51 = vmul.f32 0.35355338, %v1435_v50  ;;  %v3539_v52 = vpop.f32.mrb[11].mxu1 }
 0x4c4   : > { %v3231_v52 = vld [vmem:[%s4524_s3 + $0x40] sm:$0xff] }
 0x4c5   : > { %v1440_v53 = vsel %vm819_vm2, %v1439_v51, -inf }
 0x4c6   : > { %1441 = vmax.xlane.f32.xlu1 %v1440_v53  ;;  %v3232_v53 = vld [vmem:[%s4524_s3 + $0x48] sm:$0xff] }
 0x553   : > { %v1442_v54 = vpop.xlane.xlu1 %1441 }
 0x554   : > { %v1443_v55 = vsub.f32 %v1439_v51, %v1442_v54  ;;  %v3233_v54 = vld [vmem:[%s4524_s3 + $0x50] sm:$0xff] }
 0x556   : > { %v1444_v56 = vmul.f32 1.442695, %v1443_v55  ;;  %v3810_v55 = vpack.c.bf16 %v3232_v53, %v3231_v52 }
 0x558   : > { %3878 = vpow2.f32 %v1444_v56  ;;  %v3234_v56 = vld [vmem:[%s4524_s3 + $0x58] sm:$0xff] }
 0x562   : > { %v3879_v57 = vpop.eup %3878 }
 0x563   : > { %v1446_v58 = vsel %vm819_vm2, %v3879_v57, 0.0 }
 0x564   : > { %1447 = vadd.xlane.f32.xlu1 %v1446_v58 }
 0x5f1   : > { %v1448_v62 = vpop.xlane.xlu1 %1447 }
 0x5f2   : > { %3880 = vrcp.f32 %v1448_v62 }
 0x5fc   : > { %v3881_v63 = vpop.eup %3880 }
 0x5fd   : > { %v1450_v0 = vmul.f32 %v3881_v63, %v3879_v57  ;;  %v3813_v57 = vpack.c.bf16 %v3234_v56, %v3233_v54 }
 0x5ff   : > { %3543 = vmatmul.mubr.msk.f32.vlgmr.msra.gmra.mrb[12].mxu1 %vm819_vm2, %v1450_v0 }
 0x600   : > { %3551 = vmatpush3.msra.mxu1 %v981_v1  ;;  %3552 = vmatprep.mubr.msk.f32.mxu1 %vm3903_vm0, %v3904_v11 }
 0x601   : > { %3791 = vmatprep.subr.bf16.mxu1 %v3902_v3 }
 0x603   : > { %3553 = vmatmul.mubr.msk.f32.vlgmr.msra.gmra.mrb[14].mxu1 %vm819_vm2, %v977_v30  ;;  %v3223_v30 = vld [vmem:[%s4523_s2 + $0x50] sm:$0xff] }
 0x604   : > { %3574 = vmatprep.mubr.msk.f32.mxu1 %vm3903_vm0, %v3904_v11  ;;  %3793 = vmatpush3.bf16.msra.mxu1 %v3792_v5  ;;  %v3801_v32 = vpack.c.bf16 %v3224_v31, %v3223_v30 }
 0x605   : > { %3794 = vmatprep.subr.bf16.mxu1 %v3902_v3 }
 0x608   : > { %3796 = vmatpush3.bf16.msra.mxu1 %v3795_v8 }
 0x609   : > { %3803 = vmatprep.subr.bf16.mxu1 %v3902_v3 }
 0x60b   : > { %3575 = vmatmul.mubr.msk.f32.vlgmr.msra.gmra.mrb[16].mxu1 %vm443_vm1, %v4035_v18 }
 0x60c   : > { %3805 = vmatpush3.bf16.msra.mxu1 %v3804_v12  ;;  %3596 = vmatprep.mubr.msk.f32.mxu1 %vm3903_vm0, %v3904_v11  ;;  %v3242_v12 = vld [vmem:[%s4522_s1 + $0x68] sm:$0xff] }
 0x60d   : > { %3806 = vmatprep.subr.bf16.mxu1 %v3902_v3  ;;  %v3816_v13 = vpack.c.bf16 %v3242_v12, %v3241_v10 }
 0x610   : > { %3808 = vmatpush3.bf16.msra.mxu1 %v3807_v15  ;;  %v3244_v15 = vld [vmem:[%s4522_s1 + $0x78] sm:$0xff] }
 0x611   : > { %3610 = vmatprep.subr.mxu1 %v3904_v11  ;;  %v3819_v16 = vpack.c.bf16 %v3244_v15, %v3243_v14 }
 0x613   : > { %3597 = vmatmul.mubr.msk.f32.vlgmr.msra.gmra.mrb[18].mxu1 %vm443_vm1, %v4035_v18 }
 0x614   : > { %3612 = vmatprep.mubr.msk.f32.mxu1 %vm3903_vm0, %v3904_v11 }
 0x6d2   : > { %v1520_v22 = vpop.f32.mrb[12].mxu1 }
 0x6d3   : > { %v3544_v23 = vpop.f32.mrb[13].mxu1  ;;  %3548 = vmatmul.mubr.msk.f32.vlgmr.msra.gmra.mrb[14].mxu0 %vm819_vm2, %v1520_v22  ;;  %v3254_v22 = vld [vmem:[%s4523_s2 + $0x78] sm:$0xff] }
 0x6d4   : > { %3787 = vmatpush3.bf16.msra.mxu0 %v3786_v19  ;;  %3563 = vmatprep.mubr.msk.f32.mxu0 %vm3903_vm0, %v3904_v11  ;;  %v3252_v19 = vld [vmem:[%s4523_s2 + $0x68] sm:$0xff]  ;;  %v3831_v23 = vpack.c.bf16 %v3254_v22, %v3253_v21 }
 0x6d5   : > { %3788 = vmatprep.subr.bf16.mxu0 %v3902_v3  ;;  %v3828_v20 = vpack.c.bf16 %v3252_v19, %v3251_v17 }
 0x6d6   : > { %v1668_v27 = vpop.f32.mrb[14].mxu1 }
 0x6d7   : > { %v3554_v28 = vpop.f32.mrb[15].mxu1 }
 0x6d8   : > { %3790 = vmatpush3.bf16.msra.mxu0 %v3789_v24  ;;  %v3246_v24 = vld [vmem:[%s4525_s4 + $0x60] sm:$0xff]  ;;  %v3249_v28 = vld [vmem:[%s4525_s4 + $0x78] sm:$0xff] }
 0x6d9   : > { %3797 = vmatprep.subr.bf16.mxu0 %v3902_v3  ;;  %v3822_v26 = vpack.c.bf16 %v3247_v25, %v3246_v24 }
 0x6db   : > { %3564 = vmatmul.mubr.msk.f32.vlgmr.msra.gmra.mrb[16].mxu0 %vm443_vm1, %v4035_v18 }
 0x6dc   : > { %3799 = vmatpush3.bf16.msra.mxu0 %v3798_v29  ;;  %3585 = vmatprep.mubr.msk.f32.mxu0 %vm3903_vm0, %v3904_v11 }
 0x6dd   : > { %3800 = vmatprep.subr.bf16.mxu0 %v3902_v3 }
 0x6de   : > { %v1819_v35 = vpop.f32.mrb[16].mxu1 }
 0x6df   : > { %v3576_v36 = vpop.f32.mrb[17].mxu1  ;;  %v1823_v42 = vmul.f32 %v1819_v35, %v4097_v34  ;;  %v3257_v35 = vld [vmem:[%s4526_s5 + $0x68] sm:$0xff] }
 0x6e0   : > { %3802 = vmatpush3.bf16.msra.mxu0 %v3801_v32  ;;  %v3256_v32 = vld [vmem:[%s4526_s5 + $0x60] sm:$0xff] }
 0x6e1   : > { %3809 = vmatprep.subr.bf16.mxu0 %v3902_v3  ;;  %v3834_v36 = vpack.c.bf16 %v3257_v35, %v3256_v32  ;;  %v3009_v32 = vld [vmem:[%s4532_s11 + $0x8] sm:$0xff]  ;;  %v3010_v35 = vld [vmem:[%s4532_s11 + $0x10] sm:$0xff] }
 0x6e3   : > { %3586 = vmatmul.mubr.msk.f32.vlgmr.msra.gmra.mrb[18].mxu0 %vm443_vm1, %v4035_v18 }
 0x6e4   : > { %3607 = vmatprep.mubr.msk.f32.mxu0 %vm3903_vm0, %v3904_v11  ;;  %3811 = vmatpush3.bf16.msra.mxu0 %v3810_v55 }
 0x6e5   : > { %3812 = vmatprep.subr.bf16.mxu0 %v3902_v3 }
 0x6e6   : > { %v1972_v37 = vpop.f32.mrb[18].mxu1 }
 0x6e7   : > { %v3598_v38 = vpop.f32.mrb[19].mxu1  ;;  %v1976_v47 = vmul.f32 %v1972_v37, %v4097_v34  ;;  %v3258_v37 = vld [vmem:[%s4526_s5 + $0x70] sm:$0xff] }
 0x6e8   : > { %3814 = vmatpush3.bf16.msra.mxu0 %v3813_v57  ;;  %v3259_v38 = vld [vmem:[%s4526_s5 + $0x78] sm:$0xff] }
 0x6e9   : > { %3620 = vmatprep.subr.mxu0 %v3904_v11 }
 0x6eb   : > { %3608 = vmatmul.mubr.msk.f32.vlgmr.msra.gmra.mrb[20].mxu0 %vm443_vm1, %v4035_v18 }
 0x6ec   : > { %3622 = vmatprep.mubr.msk.f32.mxu0 %vm3903_vm0, %v3904_v11  ;;  %3621 = vmatpush3.msra.mxu0 %v3239_v6 }
 0x6ed   : > { %3821 = vmatprep.subr.bf16.mxu0 %v3902_v3 }
 0x7a6   : > { %v1595_v39 = vpop.f32.mrb[14].mxu0 }
 0x7a7   : > { %v4305_v40 = vadd.f32 %v1668_v27, %v1595_v39  ;;  %v3549_v41 = vpop.f32.mrb[15].mxu0  ;;  %v3248_v27 = vld [vmem:[%s4525_s4 + $0x70] sm:$0xff]  ;;  %v3837_v39 = vpack.c.bf16 %v3259_v38, %v3258_v37  ;;  %v3011_v37 = vld [vmem:[%s4532_s11 + $0x18] sm:$0xff] }
 0x7a8   : > { %v3825_v31 = vpack.c.bf16 %v3249_v28, %v3248_v27  ;;  %v2923_v27 = vld [vmem:[%s4530_s9] sm:$0xff]  ;;  %v3855_v38 = vpack.c.bf16 %v3011_v37, %v3010_v35 }
 0x7ae   : > { %v1743_v43 = vpop.f32.mrb[16].mxu0 }
 0x7af   : > { %v1747_v44 = vmul.f32 %v1743_v43, %v4092_v33  ;;  %v3565_v45 = vpop.f32.mrb[17].mxu0 }
 0x7b1   : > { %v1824_v46 = vadd.f32 %v1823_v42, %v1747_v44 }
 0x7b6   : > { %v1896_v48 = vpop.f32.mrb[18].mxu0 }
 0x7b7   : > { %v1900_v49 = vmul.f32 %v1896_v48, %v4092_v33  ;;  %v3587_v50 = vpop.f32.mrb[19].mxu0 }
 0x7b9   : > { %v1977_v51 = vadd.f32 %v1976_v47, %v1900_v49 }
 0x7bb   : > { %3611 = vmatpush3.xpose.msk.msra.mxu1 %vm819_vm2, %v1977_v51 }
 0x7bc   : > { %3615 = vmatprep.subr.mxu1 %v3904_v11 }
 0x7be   : > { %3613 = vmatmul.mubr.msk.f32.vlgmr.msra.gmra.mrb[20].mxu1 %vm819_vm2, %v1824_v46  ;;  %v2049_v4 = vpop.f32.mrb[20].mxu0 }
 0x7bf   : > { %3617 = vmatprep.mubr.msk.f32.mxu1 %vm3903_vm0, %v3904_v11  ;;  %v3609_v5 = vpop.f32.mrb[21].mxu0  ;;  %3616 = vmatpush3.msra.mxu1 %v2049_v4 }
 0x7c0   : > { %3815 = vmatprep.subr.bf16.mxu1 %v3902_v3 }
 0x891   : > { %v2125_v58 = vpop.f32.mrb[20].mxu1 }
 0x892   : > { %v2129_v59 = vmul.f32 0.35355338, %v2125_v58  ;;  %v3614_v60 = vpop.f32.mrb[21].mxu1 }
 0x894   : > { %v2130_v61 = vsel %vm819_vm2, %v2129_v59, -inf }
 0x895   : > { %2131 = vmax.xlane.f32.xlu0 %v2130_v61 }
 0x922   : > { %v2132_v62 = vpop.xlane.xlu0 %2131 }
 0x923   : > { %v2133_v63 = vsub.f32 %v2129_v59, %v2132_v62  ;;  %v3264_v59 = vld [vmem:[%s4524_s3 + $0x78] sm:$0xff] }
 0x925   : > { %v2134_v0 = vmul.f32 1.442695, %v2133_v63 }
 0x927   : > { %3882 = vpow2.f32 %v2134_v0 }
 0x931   : > { %v3883_v1 = vpop.eup %3882 }
 0x932   : > { %v2136_v2 = vsel %vm819_vm2, %v3883_v1, 0.0 }
 0x933   : > { %2137 = vadd.xlane.f32.xlu1 %v2136_v2 }
 0x9c0   : > { %v2138_v7 = vpop.xlane.xlu1 %2137 }
 0x9c1   : > { %3884 = vrcp.f32 %v2138_v7 }
 0x9cb   : > { %v3885_v8 = vpop.eup %3884 }
 0x9cc   : > { %v2140_v9 = vmul.f32 %v3885_v8, %v3883_v1 }
 0x9ce   : > { %3618 = vmatmul.mubr.msk.f32.vlgmr.msra.gmra.mrb[22].mxu1 %vm819_vm2, %v2140_v9  ;;  %v3269_v9 = vld [vmem:[%s4527_s6 + $0x18] sm:$0xff] }
 0x9cf   : > { %3633 = vmatprep.mubr.msk.f32.mxu1 %vm3903_vm0, %v3904_v11  ;;  %3817 = vmatpush3.bf16.msra.mxu1 %v3816_v13 }
 0x9d0   : > { %3818 = vmatprep.subr.bf16.mxu1 %v3902_v3 }
 0x9d3   : > { %3820 = vmatpush3.bf16.msra.mxu1 %v3819_v16 }
 0x9d4   : > { %3827 = vmatprep.subr.bf16.mxu1 %v3902_v3 }
 0x9d6   : > { %3634 = vmatmul.mubr.msk.f32.vlgmr.msra.gmra.mrb[24].mxu1 %vm443_vm1, %v4035_v18 }
 0x9d7   : > { %3829 = vmatpush3.bf16.msra.mxu1 %v3828_v20  ;;  %3655 = vmatprep.mubr.msk.f32.mxu1 %vm3903_vm0, %v3904_v11 }
 0x9d8   : > { %3830 = vmatprep.subr.bf16.mxu1 %v3902_v3 }
 0x9db   : > { %3832 = vmatpush3.bf16.msra.mxu1 %v3831_v23 }
 0x9dc   : > { %3839 = vmatprep.subr.bf16.mxu1 %v3902_v3 }
 0x9de   : > { %3656 = vmatmul.mubr.msk.f32.vlgmr.msra.gmra.mrb[26].mxu1 %vm443_vm1, %v4035_v18 }
 0x9df   : > { %3677 = vmatprep.mubr.msk.f32.mxu1 %vm3903_vm0, %v3904_v11 }
 0xaa1   : > { %v2210_v29 = vpop.f32.mrb[22].mxu1 }
 0xaa2   : > { %v3619_v30 = vpop.f32.mrb[23].mxu1  ;;  %3623 = vmatmul.mubr.msk.f32.vlgmr.msra.gmra.mrb[22].mxu0 %vm819_vm2, %v2210_v29  ;;  %v2926_v29 = vld [vmem:[%s4530_s9 + $0x18] sm:$0xff] }
 0xaa3   : > { %3823 = vmatpush3.bf16.msra.mxu0 %v3822_v26  ;;  %3644 = vmatprep.mubr.msk.f32.mxu0 %vm3903_vm0, %v3904_v11 }
 0xaa4   : > { %3824 = vmatprep.subr.bf16.mxu0 %v3902_v3 }
 0xaa7   : > { %3826 = vmatpush3.bf16.msra.mxu0 %v3825_v31  ;;  %v3008_v31 = vld [vmem:[%s4532_s11] sm:$0xff] }
 0xaa8   : > { %3833 = vmatprep.subr.bf16.mxu0 %v3902_v3 }
 0xaa9   : > { %v2361_v41 = vpop.f32.mrb[24].mxu1 }
 0xaaa   : > { %3645 = vmatmul.mubr.msk.f32.vlgmr.msra.gmra.mrb[24].mxu0 %vm443_vm1, %v4035_v18  ;;  %v3635_v42 = vpop.f32.mrb[25].mxu1  ;;  %v2365_v48 = vmul.f32 %v2361_v41, %v4092_v33  ;;  %v3013_v41 = vld [vmem:[%s4532_s11 + $0x28] sm:$0xff] }
 0xaab   : > { %3835 = vmatpush3.bf16.msra.mxu0 %v3834_v36  ;;  %3666 = vmatprep.mubr.msk.f32.mxu0 %vm3903_vm0, %v3904_v11  ;;  %v3852_v36 = vpack.c.bf16 %v3009_v32, %v3008_v31 }
 0xaac   : > { %3836 = vmatprep.subr.bf16.mxu0 %v3902_v3 }
 0xaaf   : > { %3838 = vmatpush3.bf16.msra.mxu0 %v3837_v39  ;;  %v3012_v39 = vld [vmem:[%s4532_s11 + $0x20] sm:$0xff] }
 0xab0   : > { %3680 = vmatprep.subr.mxu0 %v3904_v11  ;;  %v3858_v42 = vpack.c.bf16 %v3013_v41, %v3012_v39 }
 0xab1   : > { %v2514_v43 = vpop.f32.mrb[26].mxu1 }
 0xab2   : > { %3667 = vmatmul.mubr.msk.f32.vlgmr.msra.gmra.mrb[26].mxu0 %vm443_vm1, %v4035_v18  ;;  %v3657_v44 = vpop.f32.mrb[27].mxu1  ;;  %v2518_v53 = vmul.f32 %v2514_v43, %v4092_v33  ;;  %v3262_v33 = vld [vmem:[%s4524_s3 + $0x68] sm:$0xff] }
 0xab3   : > { %3682 = vmatprep.mubr.msk.f32.mxu0 %vm3903_vm0, %v3904_v11 }
 0xb75   : > { %v2285_v45 = vpop.f32.mrb[22].mxu0 }
 0xb76   : > { %v2289_v46 = vadd.f32 %v2285_v45, %v4305_v40  ;;  %v3624_v47 = vpop.f32.mrb[23].mxu0  ;;  %v3261_v40 = vld [vmem:[%s4524_s3 + $0x60] sm:$0xff] }
 0xb77   : > { %v3840_v58 = vpack.c.bf16 %v3262_v33, %v3261_v40 }
 0xb79   : > { %3841 = vmatpush3.bf16.msra.mxu1 %v3840_v58 }
 0xb7a   : > { %3842 = vmatprep.subr.bf16.mxu1 %v3902_v3 }
 0xb7d   : > { %v2437_v49 = vpop.f32.mrb[24].mxu0 }
 0xb7e   : > { %v2441_v50 = vmul.f32 %v2437_v49, %v4097_v34  ;;  %v3646_v51 = vpop.f32.mrb[25].mxu0  ;;  %v3015_v49 = vld [vmem:[%s4532_s11 + $0x38] sm:$0xff] }
 0xb80   : > { %v2442_v52 = vadd.f32 %v2441_v50, %v2365_v48  ;;  %v3014_v48 = vld [vmem:[%s4532_s11 + $0x30] sm:$0xff] }
 0xb81   : > { %v3861_v50 = vpack.c.bf16 %v3015_v49, %v3014_v48 }
 0xb85   : > { %v2590_v54 = vpop.f32.mrb[26].mxu0 }
 0xb86   : > { %v2594_v55 = vmul.f32 %v2590_v54, %v4097_v34  ;;  %v3668_v56 = vpop.f32.mrb[27].mxu0  ;;  %v3263_v34 = vld [vmem:[%s4524_s3 + $0x70] sm:$0xff] }
 0xb87   : > { %v3843_v60 = vpack.c.bf16 %v3264_v59, %v3263_v34 }
 0xb88   : > { %v2595_v57 = vadd.f32 %v2594_v55, %v2518_v53  ;;  %v3273_v55 = vld [vmem:[%s4533_s12] ss:$0 sm:$0xff] }
 0xb89   : > { %3844 = vmatpush3.bf16.msra.mxu1 %v3843_v60 }
 0xb8a   : > { %3681 = vmatpush3.xpose.msk.msra.mxu0 %vm819_vm2, %v2595_v57  ;;  %3690 = vmatprep.subr.mxu1 %v3904_v11 }
 0xb8b   : > { %3685 = vmatprep.subr.mxu0 %v3904_v11 }
 0xb8c   : > { %3678 = vmatmul.mubr.msk.f32.vlgmr.msra.gmra.mrb[28].mxu1 %vm443_vm1, %v4035_v18 }
 0xb8d   : > { %3683 = vmatmul.mubr.msk.f32.vlgmr.msra.gmra.mrb[28].mxu0 %vm819_vm2, %v2442_v52  ;;  %3692 = vmatprep.mubr.msk.f32.mxu1 %vm3903_vm0, %v3904_v11 }
 0xb8e   : > { %3687 = vmatprep.mubr.msk.f32.mxu0 %vm3903_vm0, %v3904_v11  ;;  %3691 = vmatpush3.msra.mxu1 %v3269_v9 }
 0xb8f   : > { %3851 = vmatprep.subr.bf16.mxu1 %v3902_v3 }
 0xc5f   : > { %v2667_v7 = vpop.f32.mrb[28].mxu1 }
 0xc60   : > { %v2743_v61 = vpop.f32.mrb[28].mxu0  ;;  %v3679_v8 = vpop.f32.mrb[29].mxu1  ;;  %3686 = vmatpush3.msra.mxu0 %v2667_v7 }
 0xc61   : > { %v2747_v62 = vmul.f32 0.35355338, %v2743_v61  ;;  %v3684_v63 = vpop.f32.mrb[29].mxu0  ;;  %3845 = vmatprep.subr.bf16.mxu0 %v3902_v3 }
 0xc63   : > { %v2748_v0 = vsel %vm819_vm2, %v2747_v62, -inf }
 0xc64   : > { %2749 = vmax.xlane.f32.xlu0 %v2748_v0 }
 0xcf1   : > { %v2750_v1 = vpop.xlane.xlu0 %2749 }
 0xcf2   : > { %v2751_v2 = vsub.f32 %v2747_v62, %v2750_v1 }
 0xcf4   : > { %v2752_v4 = vmul.f32 1.442695, %v2751_v2 }
 0xcf6   : > { %3886 = vpow2.f32 %v2752_v4 }
 0xd00   : > { %v3887_v5 = vpop.eup %3886 }
 0xd01   : > { %v2754_v6 = vsel %vm819_vm2, %v3887_v5, 0.0 }
 0xd02   : > { %2755 = vadd.xlane.f32.xlu1 %v2754_v6 }
 0xd8f   : > { %v2756_v10 = vpop.xlane.xlu1 %2755 }
 0xd90   : > { %3888 = vrcp.f32 %v2756_v10 }
 0xd9a   : > { %v3889_v12 = vpop.eup %3888 }
 0xd9b   : > { %v2758_v13 = vmul.f32 %v3889_v12, %v3887_v5 }
 0xd9d   : > { %3688 = vmatmul.mubr.msk.f32.vlgmr.msra.gmra.mrb[30].mxu0 %vm819_vm2, %v2758_v13 }
 0xd9e   : > { %3703 = vmatprep.mubr.msk.f32.mxu0 %vm3903_vm0, %v3904_v11 }
 0xe70   : > { %v2828_v14 = vpop.f32.mrb[30].mxu0 }
 0xe71   : > { %v3689_v15 = vpop.f32.mrb[31].mxu0  ;;  %3693 = vmatmul.mubr.msk.f32.vlgmr.msra.gmra.mrb[30].mxu1 %vm819_vm2, %v2828_v14 }
 0xe72   : > { %3722 = vmatprep.mubr.msk.f32.mxu1 %vm3903_vm0, %v3904_v11  ;;  %v2924_v11 = vld [vmem:[%s4530_s9 + $0x8] sm:$0xff]  ;;  %3853 = vmatpush3.bf16.msra.mxu1 %v3852_v36 }
 0xe73   : > { %v3846_v28 = vpack.c.bf16 %v2924_v11, %v2923_v27  ;;  %3854 = vmatprep.subr.bf16.mxu1 %v3902_v3 }
 0xe75   : > { %3847 = vmatpush3.bf16.msra.mxu0 %v3846_v28 }
 0xe76   : > { %3848 = vmatprep.subr.bf16.mxu0 %v3902_v3  ;;  %3856 = vmatpush3.bf16.msra.mxu1 %v3855_v38 }
 0xe77   : > { %3857 = vmatprep.subr.bf16.mxu1 %v3902_v3 }
 0xe7a   : > { %3859 = vmatpush3.bf16.msra.mxu1 %v3858_v42 }
 0xe7b   : > { %3860 = vmatprep.subr.bf16.mxu1 %v3902_v3  ;;  %v3271_v3 = vld [vmem:[%s4531_s10] ss:$0 sm:$0xff] }
 0xe7e   : > { %3862 = vmatpush3.bf16.msra.mxu1 %v3861_v50 }
 0xf44   : > { %v2903_v16 = vpop.f32.mrb[30].mxu1 }
 0xf45   : > { %v2907_v17 = vadd.f32 %v2903_v16, %v2289_v46  ;;  %v3694_v19 = vpop.f32.mrb[31].mxu1 }
 0xf47   : > { %v2908_v20 = vadd.f32 %v2907_v17, %v4035_v18  ;;  %v2925_v18 = vld [vmem:[%s4530_s9 + $0x10] sm:$0xff] }
 0xf48   : > { %v3849_v30 = vpack.c.bf16 %v2926_v29, %v2925_v18 }
 0xf49   : > { %v2909_v21 = vsel %vm443_vm1, %v2908_v20, 0.0 }
 0xf4a   : > { %2910 = vadd.xlane.f32.xlu0 %v2909_v21  ;;  %3850 = vmatpush3.bf16.msra.mxu0 %v3849_v30 }
 0xfd7   : > { %v2911_v22 = vpop.xlane.xlu0 %2910 }
 0xfd8   : > { %v2913_v23 = vmul.f32 0.03125, %v2911_v22 }
 0xfda   : > { %v2914_v24 = vsub.f32 %v2908_v20, %v2913_v23 }
 0xfdc   : > { %v2915_v25 = vmul.f32 %v2914_v24, %v2914_v24 }
 0xfde   : > { %v2916_v26 = vsel %vm443_vm1, %v2915_v25, 0.0 }
 0xfdf   : > { %2917 = vadd.xlane.f32.xlu1 %v2916_v26 }
0x106c   : > { %v2918_v43 = vpop.xlane.xlu1 %2917 }
0x106d   : > { %v2919_v44 = vmul.f32 0.03125, %v2918_v43 }
0x106f   : > { %v2920_v45 = vadd.f32 1e-05, %v2919_v44 }
0x1071   : > { %3890 = vrsqrt.f32 %v2920_v45 }
0x107b   : > { %v3891_v46 = vpop.eup %3890 }
0x107c   : > { %v2922_v47 = vmul.f32 %v3891_v46, %v2914_v24 }
0x107e   : > { %3704 = vmatmul.mubr.msk.f32.vlgmr.msra.gmra.mrb[32].mxu0 %vm443_vm1, %v2922_v47 }
0x1151   : > { %v3003_v51 = vpop.f32.mrb[32].mxu0 }
0x1152   : > { %v3004_v52 = vadd.f32 %v3271_v3, %v3003_v51  ;;  %v3705_v53 = vpop.f32.mrb[33].mxu0 }
0x1154   : > { %v3007_v54 = vmax.f32 %v3004_v52, 0.0 }
0x1156   : > { %3723 = vmatmul.mubr.msk.f32.vlgmr.msra.gmra.mrb[32].mxu1 %vm3023_vm3, %v3007_v54 }
0x1229   : > { %v3093_v56 = vpop.f32.mrb[32].mxu1 }
0x122a   : > { %v3094_v57 = vadd.f32 %v3273_v55, %v3093_v56  ;;  %v3724_v40 = vpop.f32.mrb[33].mxu1 }
0x122c   : > { %v3097_v33 = vadd.f32 %v3094_v57, %v2922_v47 }
0x122e   : > { %v3098_v34 = vsel %vm443_vm1, %v3097_v33, 0.0 }
0x122f   : > { %3099 = vadd.xlane.f32.xlu0 %v3098_v34 }
0x12bc   : > { %v3100_v58 = vpop.xlane.xlu0 %3099 }
0x12bd   : > { %v3101_v59 = vmul.f32 0.03125, %v3100_v58 }
0x12bf   : > { %v3102_v60 = vsub.f32 %v3097_v33, %v3101_v59 }
0x12c1   : > { %v3103_v61 = vmul.f32 %v3102_v60, %v3102_v60 }
0x12c3   : > { %v3104_v62 = vsel %vm443_vm1, %v3103_v61, 0.0 }
0x12c4   : > { %3105 = vadd.xlane.f32.xlu1 %v3104_v62 }
0x1351   : > { %v3106_v63 = vpop.xlane.xlu1 %3105 }
0x1352   : > { %v3107_v0 = vmul.f32 0.03125, %v3106_v63 }
0x1354   : > { %v3108_v1 = vadd.f32 1e-05, %v3107_v0 }
0x1356   : > { %3892 = vrsqrt.f32 %v3108_v1 }
0x1360   : > { %v3893_v2 = vpop.eup %3892 }
0x1361   : > { %v3110_v4 = vmul.f32 %v3893_v2, %v3102_v60 }
0x1363   : > { %3111 = vst.msk [vmem:[%s435_s19] sm:$0xff] %vm443_vm1, %v3110_v4 }
0x1364 PF: > { %s23_s25 = sadd.s32 1, %s3900_s25  }
0x1365   : > { %p20_p4 = scmp.ge.s32.totalorder %s23_s25, 4  }
0x1367   :  { %22 = sbr.rel (!%p20_p4) target bundleno = 1 (0x1), region = 120 }

</bundles_post_ra>
